<compile_context>
chip_gen: v5e
topology: v5e:2x2
jax: 0.10.0
libtpu: 0.0.40
codegen_flags: <defaults>
</compile_context>

<pallas_src>
import jax
import jax.numpy as jnp
from jax import lax
from jax.experimental import pallas as pl
from jax.experimental.pallas import tpu as pltpu


def _make_kernel(Cp, W, L, T):
    """Fused fixed-step Euler odeint over the whole trajectory (one call)."""
    # 3x3 tap offsets in row-major (di, dj) order; tap index ti = (di+1)*3+(dj+1).
    OFFSETS = [(di, dj) for di in (-1, 0, 1) for dj in (-1, 0, 1)]

    def kernel(dt_ref, x0_ref, w_ref, b_ref, mask_ref, out_ref, taps_ref):
        # dt_ref  : SMEM (T,)         dt[0] unused, dt[i] = t[i] - t[i-1]
        # x0_ref  : VMEM (Cp, L)      initial state; channels in sublanes,
        #                             lanes = b*H*W + h*W + w (batch in lanes)
        # w_ref   : VMEM (Cp, 9*Cp)   w[co, ti*Cp+ci] = conv_w[co, ci, di+1, dj+1]
        # b_ref   : VMEM (Cp, 1)      conv bias (zero rows for co >= C)
        # mask_ref: VMEM (9*Cp, L)    0/1 boundary masks, pre-broadcast over rows
        # out_ref : VMEM (T, Cp, L)   full trajectory
        # taps_ref: VMEM (9*Cp, L)    scratch: the 9 shifted/masked taps
        x0 = x0_ref[...]
        w = w_ref[...]                                    # hoisted (~3 vregs)
        bias = jnp.broadcast_to(b_ref[...], (Cp, L))      # hoisted broadcast

        out_ref[0] = x0                                   # odeint returns y(t0)

        def euler_step(t, y):
            # Stage the 9 shifted (and boundary-masked) copies of y, then do
            # the whole 3x3 channel mix as ONE MXU matmul (K = 9*Cp).
            for ti, (di, dj) in enumerate(OFFSETS):
                s = di * W + dj
                row = ti * Cp
                if s == 0:
                    taps_ref[row:row + Cp, :] = y
                else:
                    # shifted[p] = y[p + s] for in-image neighbours, else 0:
                    # lane roll (XLU) + 0/1 mask.  Every wrapped lane (incl.
                    # cross-batch wraps) is an out-of-image neighbour, so the
                    # mask zeroes it.
                    taps_ref[row:row + Cp, :] = (
                        pltpu.roll(y, (-s) % L, 1) * mask_ref[row:row + Cp, :])
            acc = jnp.dot(w, taps_ref[...],
                          preferred_element_type=jnp.float32) + bias   # MXU
            f = jnp.tanh(acc)                              # EUP
            y_new = y + dt_ref[t] * f                      # Euler step (VPU)
            out_ref[t] = y_new
            return y_new

        lax.fori_loop(1, T, euler_step, x0,
                      unroll=True if T <= 16 else 4)

    return kernel


def diffeq_solver_forward(first_point_nchw, time_steps, w_oihw, bias):
    """Pallas implementation of DiffEqSolver.forward (memory=False).

    first_point_nchw: (B, C, H, W) f32
    time_steps:       (T,)         f32
    w_oihw:           (C, C, 3, 3) f32   conv weight of the ode_func
    bias:             (C,)         f32
    returns:          (T, B, C, H, W) f32  -- same as torch odeint output
    """
    B, C, H, W = first_point_nchw.shape
    T = int(time_steps.shape[0])
    HW = H * W
    L = B * HW                      # batch folded into the lane axis
    Cp = ((C + 7) // 8) * 8         # pad channels to one full sublane tile

    # --- glue (plain JAX): layout & parameter reshuffling ---
    # state (Cp, B*HW): x0[c, b*HW + p] = first_point[b, c, p]
    x0 = first_point_nchw.astype(jnp.float32).reshape(B, C, HW)
    x0 = jnp.transpose(x0, (1, 0, 2)).reshape(C, L)
    x0 = jnp.pad(x0, ((0, Cp - C), (0, 0)))                          # (Cp, L)

    # weights (Cp, 9*Cp): w_flat[co, ti*Cp + ci] = w_oihw[co, ci, ti//3, ti%3]
    w_flat = jnp.transpose(w_oihw.astype(jnp.float32), (0, 2, 3, 1))  # (co,kh,kw,ci)
    w_flat = w_flat.reshape(C, 9, C)
    w_flat = jnp.pad(w_flat, ((0, Cp - C), (0, 0), (0, Cp - C)))
    w_flat = w_flat.reshape(Cp, 9 * Cp)

    bcol = jnp.pad(bias.astype(jnp.float32).reshape(C, 1),
                   ((0, Cp - C), (0, 0)))                            # (Cp, 1)

    # 0/1 boundary masks, tiled per batch along lanes and pre-broadcast to the
    # tap-row layout (row ti*Cp + ci is the mask of tap ti).
    ii, jj = jnp.meshgrid(jnp.arange(H), jnp.arange(W), indexing="ij")
    rows = []
    for di in (-1, 0, 1):
        for dj in (-1, 0, 1):
            ok = ((ii + di >= 0) & (ii + di < H) &
                  (jj + dj >= 0) & (jj + dj < W))
            rows.append(ok.reshape(-1).astype(jnp.float32))
    mask9 = jnp.stack(rows, axis=0)                                  # (9, HW)
    masks = jnp.repeat(jnp.tile(mask9, (1, B)), Cp, axis=0)          # (9*Cp, L)

    dt = jnp.concatenate([jnp.zeros((1,), jnp.float32),
                          jnp.diff(time_steps.astype(jnp.float32))])

    kernel = _make_kernel(Cp, W, L, T)
    out = pl.pallas_call(
        kernel,
        out_shape=jax.ShapeDtypeStruct((T, Cp, L), jnp.float32),
        grid_spec=pltpu.PrefetchScalarGridSpec(
            num_scalar_prefetch=0,
            grid=(1,),                                   # whole problem, one step
            in_specs=[
                pl.BlockSpec(memory_space=pltpu.MemorySpace.SMEM),   # dt
                pl.BlockSpec((Cp, L), lambda i: (0, 0)),             # x0
                pl.BlockSpec((Cp, 9 * Cp), lambda i: (0, 0)),        # weights
                pl.BlockSpec((Cp, 1), lambda i: (0, 0)),             # bias
                pl.BlockSpec((9 * Cp, L), lambda i: (0, 0)),         # masks
            ],
            out_specs=pl.BlockSpec((T, Cp, L), lambda i: (0, 0, 0)),
            scratch_shapes=[pltpu.VMEM((9 * Cp, L), jnp.float32)],   # taps
        ),
        compiler_params=pltpu.CompilerParams(
            dimension_semantics=("arbitrary",)),
    )(dt, x0, w_flat, bcol, masks)

    # (T, Cp, B*HW) -> (T, B, C, H, W)   (drop channel padding, unfold lanes)
    out = out[:, :C, :].reshape(T, C, B, H, W)
    return jnp.transpose(out, (0, 2, 1, 3, 4))


def reference_forward(first_point, time_steps, w_oihw, bias):
    """Pure-JAX reference: Euler odeint with lax.conv (independent code path)."""
    B, C, H, W = first_point.shape

    def f(y):
        conv = lax.conv_general_dilated(
            y, w_oihw, window_strides=(1, 1), padding="SAME",
            dimension_numbers=("NCHW", "OIHW", "NCHW"),
            precision=lax.Precision.HIGHEST)
        return jnp.tanh(conv + bias.reshape(1, C, 1, 1))

    ys = [first_point]
    for i in range(1, time_steps.shape[0]):
        dt = time_steps[i] - time_steps[i - 1]
        ys.append(ys[-1] + dt * f(ys[-1]))
    return jnp.stack(ys, axis=0)


if __name__ == "__main__":
    B, C, H, W, T = 2, 4, 16, 16, 8

    key = jax.random.PRNGKey(0)
    k1, k2, k3 = jax.random.split(key, 3)
    first_point = jax.random.normal(k1, (B, C, H, W), dtype=jnp.float32)
    time_steps = jnp.linspace(0.0, 1.0, T, dtype=jnp.float32)
    # deterministic synthetic ode_func parameters
    conv_w = 0.1 * jax.random.normal(k2, (C, C, 3, 3), dtype=jnp.float32)
    conv_b = 0.1 * jax.random.normal(k3, (C,), dtype=jnp.float32)

    pred_y = diffeq_solver_forward(first_point, time_steps, conv_w, conv_b)
    pred_y = jax.block_until_ready(pred_y)

    ref_y = reference_forward(first_point, time_steps, conv_w, conv_b)

    assert pred_y.shape == (T, B, C, H, W), pred_y.shape
    # f32 MXU accumulation differs from lax.conv only in summation order;
    # small margin over the previous 1e-4 check.
    assert jnp.allclose(pred_y, ref_y, rtol=1e-3, atol=1e-3), (
        float(jnp.max(jnp.abs(pred_y - ref_y))))

    print("KERNEL_OK")
</pallas_src>

<mosaic_0001>
module attributes {stable_mosaic.version = 11 : i64} {
  func.func @kernel(%arg0: i32, %arg1: memref<8xf32, #tpu.memory_space<smem>>, %arg2: memref<8x512xf32, #tpu.memory_space<vmem>>, %arg3: memref<8x72xf32, #tpu.memory_space<vmem>>, %arg4: memref<8x1xf32, #tpu.memory_space<vmem>>, %arg5: memref<72x512xf32, #tpu.memory_space<vmem>>, %arg6: memref<8x8x512xf32, #tpu.memory_space<vmem>>, %arg7: memref<72x512xf32, #tpu.memory_space<vmem>>) attributes {dimension_semantics = [#tpu.dimension_semantics<arbitrary>], iteration_bounds = array<i64: 1>, scalar_prefetch = 0 : i64, scratch_operands = 1 : i64, tpu.core_type = #tpu.core_type<tc>, window_params = [{transform_indices = @transform_0, window_bounds = array<i64: 8>}, {pipeline_mode = #tpu.pipeline_mode<synchronous>, transform_indices = @transform_1, window_bounds = array<i64: 8, 512>}, {pipeline_mode = #tpu.pipeline_mode<synchronous>, transform_indices = @transform_2, window_bounds = array<i64: 8, 72>}, {pipeline_mode = #tpu.pipeline_mode<synchronous>, transform_indices = @transform_3, window_bounds = array<i64: 8, 1>}, {pipeline_mode = #tpu.pipeline_mode<synchronous>, transform_indices = @transform_4, window_bounds = array<i64: 72, 512>}, {pipeline_mode = #tpu.pipeline_mode<synchronous>, transform_indices = @transform_5, window_bounds = array<i64: 8, 8, 512>}]} {
    %c0 = arith.constant 0 : index
    %c0_0 = arith.constant 0 : index
    %0 = vector.load %arg2[%c0, %c0_0] : memref<8x512xf32, #tpu.memory_space<vmem>>, vector<8x512xf32>
    %c0_1 = arith.constant 0 : index
    %c0_2 = arith.constant 0 : index
    %1 = vector.load %arg3[%c0_1, %c0_2] : memref<8x72xf32, #tpu.memory_space<vmem>>, vector<8x72xf32>
    %c0_3 = arith.constant 0 : index
    %c0_4 = arith.constant 0 : index
    %2 = vector.load %arg4[%c0_3, %c0_4] : memref<8x1xf32, #tpu.memory_space<vmem>>, vector<8x1xf32>
    %3 = vector.shape_cast %2 : vector<8x1xf32> to vector<8x1xf32>
    %4 = vector.broadcast %3 : vector<8x1xf32> to vector<8x512xf32>
    %c0_5 = arith.constant 0 : index
    %c0_6 = arith.constant 0 : index
    %c0_7 = arith.constant 0 : index
    %5 = vector.load %arg6[%c0_5, %c0_6, %c0_7] : memref<8x8x512xf32, #tpu.memory_space<vmem>>, vector<1x8x512xf32>
    %6 = vector.shape_cast %5 : vector<1x8x512xf32> to vector<8x512xf32>
    %7 = vector.shape_cast %0 : vector<8x512xf32> to vector<1x8x512xf32>
    tpu.vector_store %arg6[%c0_5, %c0_6, %c0_7], %7 {strides = array<i32>} : memref<8x8x512xf32, #tpu.memory_space<vmem>>, vector<1x8x512xf32>,
    %c1_i32 = arith.constant 1 : i32
    %c17_i32 = arith.constant 17 : i32
    %8 = tpu.dynamic_rotate %0 by %c17_i32 dim 1 : vector<8x512xf32>, i32 -> vector<8x512xf32>
    %c0_8 = arith.constant 0 : index
    %c0_9 = arith.constant 0 : index
    %9 = vector.load %arg5[%c0_8, %c0_9] : memref<72x512xf32, #tpu.memory_space<vmem>>, vector<8x512xf32>
    %10 = arith.mulf %8, %9 : vector<8x512xf32>
    %c0_10 = arith.constant 0 : index
    %c0_11 = arith.constant 0 : index
    %11 = vector.load %arg7[%c0_10, %c0_11] : memref<72x512xf32, #tpu.memory_space<vmem>>, vector<8x512xf32>
    tpu.vector_store %arg7[%c0_10, %c0_11], %10 {strides = array<i32>} : memref<72x512xf32, #tpu.memory_space<vmem>>, vector<8x512xf32>,
    %c16_i32 = arith.constant 16 : i32
    %12 = tpu.dynamic_rotate %0 by %c16_i32 dim 1 : vector<8x512xf32>, i32 -> vector<8x512xf32>
    %c8 = arith.constant 8 : index
    %c0_12 = arith.constant 0 : index
    %13 = vector.load %arg5[%c8, %c0_12] : memref<72x512xf32, #tpu.memory_space<vmem>>, vector<8x512xf32>
    %14 = arith.mulf %12, %13 : vector<8x512xf32>
    %c8_13 = arith.constant 8 : index
    %c0_14 = arith.constant 0 : index
    %15 = vector.load %arg7[%c8_13, %c0_14] : memref<72x512xf32, #tpu.memory_space<vmem>>, vector<8x512xf32>
    tpu.vector_store %arg7[%c8_13, %c0_14], %14 {strides = array<i32>} : memref<72x512xf32, #tpu.memory_space<vmem>>, vector<8x512xf32>,
    %c15_i32 = arith.constant 15 : i32
    %16 = tpu.dynamic_rotate %0 by %c15_i32 dim 1 : vector<8x512xf32>, i32 -> vector<8x512xf32>
    %c16 = arith.constant 16 : index
    %c0_15 = arith.constant 0 : index
    %17 = vector.load %arg5[%c16, %c0_15] : memref<72x512xf32, #tpu.memory_space<vmem>>, vector<8x512xf32>
    %18 = arith.mulf %16, %17 : vector<8x512xf32>
    %c16_16 = arith.constant 16 : index
    %c0_17 = arith.constant 0 : index
    %19 = vector.load %arg7[%c16_16, %c0_17] : memref<72x512xf32, #tpu.memory_space<vmem>>, vector<8x512xf32>
    tpu.vector_store %arg7[%c16_16, %c0_17], %18 {strides = array<i32>} : memref<72x512xf32, #tpu.memory_space<vmem>>, vector<8x512xf32>,
    %c1_i32_18 = arith.constant 1 : i32
    %20 = tpu.dynamic_rotate %0 by %c1_i32_18 dim 1 : vector<8x512xf32>, i32 -> vector<8x512xf32>
    %c24 = arith.constant 24 : index
    %c0_19 = arith.constant 0 : index
    %21 = vector.load %arg5[%c24, %c0_19] : memref<72x512xf32, #tpu.memory_space<vmem>>, vector<8x512xf32>
    %22 = arith.mulf %20, %21 : vector<8x512xf32>
    %c24_20 = arith.constant 24 : index
    %c0_21 = arith.constant 0 : index
    %23 = vector.load %arg7[%c24_20, %c0_21] : memref<72x512xf32, #tpu.memory_space<vmem>>, vector<8x512xf32>
    tpu.vector_store %arg7[%c24_20, %c0_21], %22 {strides = array<i32>} : memref<72x512xf32, #tpu.memory_space<vmem>>, vector<8x512xf32>,
    %c32 = arith.constant 32 : index
    %c0_22 = arith.constant 0 : index
    %24 = vector.load %arg7[%c32, %c0_22] : memref<72x512xf32, #tpu.memory_space<vmem>>, vector<8x512xf32>
    tpu.vector_store %arg7[%c32, %c0_22], %0 {strides = array<i32>} : memref<72x512xf32, #tpu.memory_space<vmem>>, vector<8x512xf32>,
    %c511_i32 = arith.constant 511 : i32
    %25 = tpu.dynamic_rotate %0 by %c511_i32 dim 1 : vector<8x512xf32>, i32 -> vector<8x512xf32>
    %c40 = arith.constant 40 : index
    %c0_23 = arith.constant 0 : index
    %26 = vector.load %arg5[%c40, %c0_23] : memref<72x512xf32, #tpu.memory_space<vmem>>, vector<8x512xf32>
    %27 = arith.mulf %25, %26 : vector<8x512xf32>
    %c40_24 = arith.constant 40 : index
    %c0_25 = arith.constant 0 : index
    %28 = vector.load %arg7[%c40_24, %c0_25] : memref<72x512xf32, #tpu.memory_space<vmem>>, vector<8x512xf32>
    tpu.vector_store %arg7[%c40_24, %c0_25], %27 {strides = array<i32>} : memref<72x512xf32, #tpu.memory_space<vmem>>, vector<8x512xf32>,
    %c497_i32 = arith.constant 497 : i32
    %29 = tpu.dynamic_rotate %0 by %c497_i32 dim 1 : vector<8x512xf32>, i32 -> vector<8x512xf32>
    %c48 = arith.constant 48 : index
    %c0_26 = arith.constant 0 : index
    %30 = vector.load %arg5[%c48, %c0_26] : memref<72x512xf32, #tpu.memory_space<vmem>>, vector<8x512xf32>
    %31 = arith.mulf %29, %30 : vector<8x512xf32>
    %c48_27 = arith.constant 48 : index
    %c0_28 = arith.constant 0 : index
    %32 = vector.load %arg7[%c48_27, %c0_28] : memref<72x512xf32, #tpu.memory_space<vmem>>, vector<8x512xf32>
    tpu.vector_store %arg7[%c48_27, %c0_28], %31 {strides = array<i32>} : memref<72x512xf32, #tpu.memory_space<vmem>>, vector<8x512xf32>,
    %c496_i32 = arith.constant 496 : i32
    %33 = tpu.dynamic_rotate %0 by %c496_i32 dim 1 : vector<8x512xf32>, i32 -> vector<8x512xf32>
    %c56 = arith.constant 56 : index
    %c0_29 = arith.constant 0 : index
    %34 = vector.load %arg5[%c56, %c0_29] : memref<72x512xf32, #tpu.memory_space<vmem>>, vector<8x512xf32>
    %35 = arith.mulf %33, %34 : vector<8x512xf32>
    %c56_30 = arith.constant 56 : index
    %c0_31 = arith.constant 0 : index
    %36 = vector.load %arg7[%c56_30, %c0_31] : memref<72x512xf32, #tpu.memory_space<vmem>>, vector<8x512xf32>
    tpu.vector_store %arg7[%c56_30, %c0_31], %35 {strides = array<i32>} : memref<72x512xf32, #tpu.memory_space<vmem>>, vector<8x512xf32>,
    %c495_i32 = arith.constant 495 : i32
    %37 = tpu.dynamic_rotate %0 by %c495_i32 dim 1 : vector<8x512xf32>, i32 -> vector<8x512xf32>
    %c64 = arith.constant 64 : index
    %c0_32 = arith.constant 0 : index
    %38 = vector.load %arg5[%c64, %c0_32] : memref<72x512xf32, #tpu.memory_space<vmem>>, vector<8x512xf32>
    %39 = arith.mulf %37, %38 : vector<8x512xf32>
    %c64_33 = arith.constant 64 : index
    %c0_34 = arith.constant 0 : index
    %40 = vector.load %arg7[%c64_33, %c0_34] : memref<72x512xf32, #tpu.memory_space<vmem>>, vector<8x512xf32>
    tpu.vector_store %arg7[%c64_33, %c0_34], %39 {strides = array<i32>} : memref<72x512xf32, #tpu.memory_space<vmem>>, vector<8x512xf32>,
    %c0_35 = arith.constant 0 : index
    %c0_36 = arith.constant 0 : index
    %41 = vector.load %arg7[%c0_35, %c0_36] : memref<72x512xf32, #tpu.memory_space<vmem>>, vector<72x512xf32>
    %cst = arith.constant dense<0.000000e+00> : vector<8x512xf32>
    %42 = tpu.matmul %1, %41, %cst {dimension_numbers = #tpu.dot_dimension_numbers<[1], [0], [0], [1], [0, 0, 1, 1], [], []>} : vector<8x72xf32>, vector<72x512xf32>, vector<8x512xf32> -> vector<8x512xf32>
    %43 = arith.addf %42, %4 : vector<8x512xf32>
    %44 = math.tanh %43 : vector<8x512xf32>
    %45 = arith.index_cast %c1_i32 : i32 to index
    %46 = memref.load %arg1[%45] : memref<8xf32, #tpu.memory_space<smem>>
    %47 = vector.broadcast %46 : f32 to vector<8x512xf32>
    %48 = arith.mulf %47, %44 : vector<8x512xf32>
    %49 = arith.addf %0, %48 : vector<8x512xf32>
    %50 = arith.index_cast %c1_i32 : i32 to index
    %c0_37 = arith.constant 0 : index
    %c0_38 = arith.constant 0 : index
    %51 = vector.load %arg6[%50, %c0_37, %c0_38] : memref<8x8x512xf32, #tpu.memory_space<vmem>>, vector<1x8x512xf32>
    %52 = vector.shape_cast %51 : vector<1x8x512xf32> to vector<8x512xf32>
    %53 = vector.shape_cast %49 : vector<8x512xf32> to vector<1x8x512xf32>
    tpu.vector_store %arg6[%50, %c0_37, %c0_38], %53 {strides = array<i32>} : memref<8x8x512xf32, #tpu.memory_space<vmem>>, vector<1x8x512xf32>,
    %c2_i32 = arith.constant 2 : i32
    %c17_i32_39 = arith.constant 17 : i32
    %54 = tpu.dynamic_rotate %49 by %c17_i32_39 dim 1 : vector<8x512xf32>, i32 -> vector<8x512xf32>
    %c0_40 = arith.constant 0 : index
    %c0_41 = arith.constant 0 : index
    %55 = vector.load %arg5[%c0_40, %c0_41] : memref<72x512xf32, #tpu.memory_space<vmem>>, vector<8x512xf32>
    %56 = arith.mulf %54, %55 : vector<8x512xf32>
    %c0_42 = arith.constant 0 : index
    %c0_43 = arith.constant 0 : index
    %57 = vector.load %arg7[%c0_42, %c0_43] : memref<72x512xf32, #tpu.memory_space<vmem>>, vector<8x512xf32>
    tpu.vector_store %arg7[%c0_42, %c0_43], %56 {strides = array<i32>} : memref<72x512xf32, #tpu.memory_space<vmem>>, vector<8x512xf32>,
    %c16_i32_44 = arith.constant 16 : i32
    %58 = tpu.dynamic_rotate %49 by %c16_i32_44 dim 1 : vector<8x512xf32>, i32 -> vector<8x512xf32>
    %c8_45 = arith.constant 8 : index
    %c0_46 = arith.constant 0 : index
    %59 = vector.load %arg5[%c8_45, %c0_46] : memref<72x512xf32, #tpu.memory_space<vmem>>, vector<8x512xf32>
    %60 = arith.mulf %58, %59 : vector<8x512xf32>
    %c8_47 = arith.constant 8 : index
    %c0_48 = arith.constant 0 : index
    %61 = vector.load %arg7[%c8_47, %c0_48] : memref<72x512xf32, #tpu.memory_space<vmem>>, vector<8x512xf32>
    tpu.vector_store %arg7[%c8_47, %c0_48], %60 {strides = array<i32>} : memref<72x512xf32, #tpu.memory_space<vmem>>, vector<8x512xf32>,
    %c15_i32_49 = arith.constant 15 : i32
    %62 = tpu.dynamic_rotate %49 by %c15_i32_49 dim 1 : vector<8x512xf32>, i32 -> vector<8x512xf32>
    %c16_50 = arith.constant 16 : index
    %c0_51 = arith.constant 0 : index
    %63 = vector.load %arg5[%c16_50, %c0_51] : memref<72x512xf32, #tpu.memory_space<vmem>>, vector<8x512xf32>
    %64 = arith.mulf %62, %63 : vector<8x512xf32>
    %c16_52 = arith.constant 16 : index
    %c0_53 = arith.constant 0 : index
    %65 = vector.load %arg7[%c16_52, %c0_53] : memref<72x512xf32, #tpu.memory_space<vmem>>, vector<8x512xf32>
    tpu.vector_store %arg7[%c16_52, %c0_53], %64 {strides = array<i32>} : memref<72x512xf32, #tpu.memory_space<vmem>>, vector<8x512xf32>,
    %c1_i32_54 = arith.constant 1 : i32
    %66 = tpu.dynamic_rotate %49 by %c1_i32_54 dim 1 : vector<8x512xf32>, i32 -> vector<8x512xf32>
    %c24_55 = arith.constant 24 : index
    %c0_56 = arith.constant 0 : index
    %67 = vector.load %arg5[%c24_55, %c0_56] : memref<72x512xf32, #tpu.memory_space<vmem>>, vector<8x512xf32>
    %68 = arith.mulf %66, %67 : vector<8x512xf32>
    %c24_57 = arith.constant 24 : index
    %c0_58 = arith.constant 0 : index
    %69 = vector.load %arg7[%c24_57, %c0_58] : memref<72x512xf32, #tpu.memory_space<vmem>>, vector<8x512xf32>
    tpu.vector_store %arg7[%c24_57, %c0_58], %68 {strides = array<i32>} : memref<72x512xf32, #tpu.memory_space<vmem>>, vector<8x512xf32>,
    %c32_59 = arith.constant 32 : index
    %c0_60 = arith.constant 0 : index
    %70 = vector.load %arg7[%c32_59, %c0_60] : memref<72x512xf32, #tpu.memory_space<vmem>>, vector<8x512xf32>
    tpu.vector_store %arg7[%c32_59, %c0_60], %49 {strides = array<i32>} : memref<72x512xf32, #tpu.memory_space<vmem>>, vector<8x512xf32>,
    %c511_i32_61 = arith.constant 511 : i32
    %71 = tpu.dynamic_rotate %49 by %c511_i32_61 dim 1 : vector<8x512xf32>, i32 -> vector<8x512xf32>
    %c40_62 = arith.constant 40 : index
    %c0_63 = arith.constant 0 : index
    %72 = vector.load %arg5[%c40_62, %c0_63] : memref<72x512xf32, #tpu.memory_space<vmem>>, vector<8x512xf32>
    %73 = arith.mulf %71, %72 : vector<8x512xf32>
    %c40_64 = arith.constant 40 : index
    %c0_65 = arith.constant 0 : index
    %74 = vector.load %arg7[%c40_64, %c0_65] : memref<72x512xf32, #tpu.memory_space<vmem>>, vector<8x512xf32>
    tpu.vector_store %arg7[%c40_64, %c0_65], %73 {strides = array<i32>} : memref<72x512xf32, #tpu.memory_space<vmem>>, vector<8x512xf32>,
    %c497_i32_66 = arith.constant 497 : i32
    %75 = tpu.dynamic_rotate %49 by %c497_i32_66 dim 1 : vector<8x512xf32>, i32 -> vector<8x512xf32>
    %c48_67 = arith.constant 48 : index
    %c0_68 = arith.constant 0 : index
    %76 = vector.load %arg5[%c48_67, %c0_68] : memref<72x512xf32, #tpu.memory_space<vmem>>, vector<8x512xf32>
    %77 = arith.mulf %75, %76 : vector<8x512xf32>
    %c48_69 = arith.constant 48 : index
    %c0_70 = arith.constant 0 : index
    %78 = vector.load %arg7[%c48_69, %c0_70] : memref<72x512xf32, #tpu.memory_space<vmem>>, vector<8x512xf32>
    tpu.vector_store %arg7[%c48_69, %c0_70], %77 {strides = array<i32>} : memref<72x512xf32, #tpu.memory_space<vmem>>, vector<8x512xf32>,
    %c496_i32_71 = arith.constant 496 : i32
    %79 = tpu.dynamic_rotate %49 by %c496_i32_71 dim 1 : vector<8x512xf32>, i32 -> vector<8x512xf32>
    %c56_72 = arith.constant 56 : index
    %c0_73 = arith.constant 0 : index
    %80 = vector.load %arg5[%c56_72, %c0_73] : memref<72x512xf32, #tpu.memory_space<vmem>>, vector<8x512xf32>
    %81 = arith.mulf %79, %80 : vector<8x512xf32>
    %c56_74 = arith.constant 56 : index
    %c0_75 = arith.constant 0 : index
    %82 = vector.load %arg7[%c56_74, %c0_75] : memref<72x512xf32, #tpu.memory_space<vmem>>, vector<8x512xf32>
    tpu.vector_store %arg7[%c56_74, %c0_75], %81 {strides = array<i32>} : memref<72x512xf32, #tpu.memory_space<vmem>>, vector<8x512xf32>,
    %c495_i32_76 = arith.constant 495 : i32
    %83 = tpu.dynamic_rotate %49 by %c495_i32_76 dim 1 : vector<8x512xf32>, i32 -> vector<8x512xf32>
    %c64_77 = arith.constant 64 : index
    %c0_78 = arith.constant 0 : index
    %84 = vector.load %arg5[%c64_77, %c0_78] : memref<72x512xf32, #tpu.memory_space<vmem>>, vector<8x512xf32>
    %85 = arith.mulf %83, %84 : vector<8x512xf32>
    %c64_79 = arith.constant 64 : index
    %c0_80 = arith.constant 0 : index
    %86 = vector.load %arg7[%c64_79, %c0_80] : memref<72x512xf32, #tpu.memory_space<vmem>>, vector<8x512xf32>
    tpu.vector_store %arg7[%c64_79, %c0_80], %85 {strides = array<i32>} : memref<72x512xf32, #tpu.memory_space<vmem>>, vector<8x512xf32>,
    %c0_81 = arith.constant 0 : index
    %c0_82 = arith.constant 0 : index
    %87 = vector.load %arg7[%c0_81, %c0_82] : memref<72x512xf32, #tpu.memory_space<vmem>>, vector<72x512xf32>
    %cst_83 = arith.constant dense<0.000000e+00> : vector<8x512xf32>
    %88 = tpu.matmul %1, %87, %cst_83 {dimension_numbers = #tpu.dot_dimension_numbers<[1], [0], [0], [1], [0, 0, 1, 1], [], []>} : vector<8x72xf32>, vector<72x512xf32>, vector<8x512xf32> -> vector<8x512xf32>
    %89 = arith.addf %88, %4 : vector<8x512xf32>
    %90 = math.tanh %89 : vector<8x512xf32>
    %91 = arith.index_cast %c2_i32 : i32 to index
    %92 = memref.load %arg1[%91] : memref<8xf32, #tpu.memory_space<smem>>
    %93 = vector.broadcast %92 : f32 to vector<8x512xf32>
    %94 = arith.mulf %93, %90 : vector<8x512xf32>
    %95 = arith.addf %49, %94 : vector<8x512xf32>
    %96 = arith.index_cast %c2_i32 : i32 to index
    %c0_84 = arith.constant 0 : index
    %c0_85 = arith.constant 0 : index
    %97 = vector.load %arg6[%96, %c0_84, %c0_85] : memref<8x8x512xf32, #tpu.memory_space<vmem>>, vector<1x8x512xf32>
    %98 = vector.shape_cast %97 : vector<1x8x512xf32> to vector<8x512xf32>
    %99 = vector.shape_cast %95 : vector<8x512xf32> to vector<1x8x512xf32>
    tpu.vector_store %arg6[%96, %c0_84, %c0_85], %99 {strides = array<i32>} : memref<8x8x512xf32, #tpu.memory_space<vmem>>, vector<1x8x512xf32>,
    %c3_i32 = arith.constant 3 : i32
    %c17_i32_86 = arith.constant 17 : i32
    %100 = tpu.dynamic_rotate %95 by %c17_i32_86 dim 1 : vector<8x512xf32>, i32 -> vector<8x512xf32>
    %c0_87 = arith.constant 0 : index
    %c0_88 = arith.constant 0 : index
    %101 = vector.load %arg5[%c0_87, %c0_88] : memref<72x512xf32, #tpu.memory_space<vmem>>, vector<8x512xf32>
    %102 = arith.mulf %100, %101 : vector<8x512xf32>
    %c0_89 = arith.constant 0 : index
    %c0_90 = arith.constant 0 : index
    %103 = vector.load %arg7[%c0_89, %c0_90] : memref<72x512xf32, #tpu.memory_space<vmem>>, vector<8x512xf32>
    tpu.vector_store %arg7[%c0_89, %c0_90], %102 {strides = array<i32>} : memref<72x512xf32, #tpu.memory_space<vmem>>, vector<8x512xf32>,
    %c16_i32_91 = arith.constant 16 : i32
    %104 = tpu.dynamic_rotate %95 by %c16_i32_91 dim 1 : vector<8x512xf32>, i32 -> vector<8x512xf32>
    %c8_92 = arith.constant 8 : index
    %c0_93 = arith.constant 0 : index
    %105 = vector.load %arg5[%c8_92, %c0_93] : memref<72x512xf32, #tpu.memory_space<vmem>>, vector<8x512xf32>
    %106 = arith.mulf %104, %105 : vector<8x512xf32>
    %c8_94 = arith.constant 8 : index
    %c0_95 = arith.constant 0 : index
    %107 = vector.load %arg7[%c8_94, %c0_95] : memref<72x512xf32, #tpu.memory_space<vmem>>, vector<8x512xf32>
    tpu.vector_store %arg7[%c8_94, %c0_95], %106 {strides = array<i32>} : memref<72x512xf32, #tpu.memory_space<vmem>>, vector<8x512xf32>,
    %c15_i32_96 = arith.constant 15 : i32
    %108 = tpu.dynamic_rotate %95 by %c15_i32_96 dim 1 : vector<8x512xf32>, i32 -> vector<8x512xf32>
    %c16_97 = arith.constant 16 : index
    %c0_98 = arith.constant 0 : index
    %109 = vector.load %arg5[%c16_97, %c0_98] : memref<72x512xf32, #tpu.memory_space<vmem>>, vector<8x512xf32>
    %110 = arith.mulf %108, %109 : vector<8x512xf32>
    %c16_99 = arith.constant 16 : index
    %c0_100 = arith.constant 0 : index
    %111 = vector.load %arg7[%c16_99, %c0_100] : memref<72x512xf32, #tpu.memory_space<vmem>>, vector<8x512xf32>
    tpu.vector_store %arg7[%c16_99, %c0_100], %110 {strides = array<i32>} : memref<72x512xf32, #tpu.memory_space<vmem>>, vector<8x512xf32>,
    %c1_i32_101 = arith.constant 1 : i32
    %112 = tpu.dynamic_rotate %95 by %c1_i32_101 dim 1 : vector<8x512xf32>, i32 -> vector<8x512xf32>
    %c24_102 = arith.constant 24 : index
    %c0_103 = arith.constant 0 : index
    %113 = vector.load %arg5[%c24_102, %c0_103] : memref<72x512xf32, #tpu.memory_space<vmem>>, vector<8x512xf32>
    %114 = arith.mulf %112, %113 : vector<8x512xf32>
    %c24_104 = arith.constant 24 : index
    %c0_105 = arith.constant 0 : index
    %115 = vector.load %arg7[%c24_104, %c0_105] : memref<72x512xf32, #tpu.memory_space<vmem>>, vector<8x512xf32>
    tpu.vector_store %arg7[%c24_104, %c0_105], %114 {strides = array<i32>} : memref<72x512xf32, #tpu.memory_space<vmem>>, vector<8x512xf32>,
    %c32_106 = arith.constant 32 : index
    %c0_107 = arith.constant 0 : index
    %116 = vector.load %arg7[%c32_106, %c0_107] : memref<72x512xf32, #tpu.memory_space<vmem>>, vector<8x512xf32>
    tpu.vector_store %arg7[%c32_106, %c0_107], %95 {strides = array<i32>} : memref<72x512xf32, #tpu.memory_space<vmem>>, vector<8x512xf32>,
    %c511_i32_108 = arith.constant 511 : i32
    %117 = tpu.dynamic_rotate %95 by %c511_i32_108 dim 1 : vector<8x512xf32>, i32 -> vector<8x512xf32>
    %c40_109 = arith.constant 40 : index
    %c0_110 = arith.constant 0 : index
    %118 = vector.load %arg5[%c40_109, %c0_110] : memref<72x512xf32, #tpu.memory_space<vmem>>, vector<8x512xf32>
    %119 = arith.mulf %117, %118 : vector<8x512xf32>
    %c40_111 = arith.constant 40 : index
    %c0_112 = arith.constant 0 : index
    %120 = vector.load %arg7[%c40_111, %c0_112] : memref<72x512xf32, #tpu.memory_space<vmem>>, vector<8x512xf32>
    tpu.vector_store %arg7[%c40_111, %c0_112], %119 {strides = array<i32>} : memref<72x512xf32, #tpu.memory_space<vmem>>, vector<8x512xf32>,
    %c497_i32_113 = arith.constant 497 : i32
    %121 = tpu.dynamic_rotate %95 by %c497_i32_113 dim 1 : vector<8x512xf32>, i32 -> vector<8x512xf32>
    %c48_114 = arith.constant 48 : index
    %c0_115 = arith.constant 0 : index
    %122 = vector.load %arg5[%c48_114, %c0_115] : memref<72x512xf32, #tpu.memory_space<vmem>>, vector<8x512xf32>
    %123 = arith.mulf %121, %122 : vector<8x512xf32>
    %c48_116 = arith.constant 48 : index
    %c0_117 = arith.constant 0 : index
    %124 = vector.load %arg7[%c48_116, %c0_117] : memref<72x512xf32, #tpu.memory_space<vmem>>, vector<8x512xf32>
    tpu.vector_store %arg7[%c48_116, %c0_117], %123 {strides = array<i32>} : memref<72x512xf32, #tpu.memory_space<vmem>>, vector<8x512xf32>,
    %c496_i32_118 = arith.constant 496 : i32
    %125 = tpu.dynamic_rotate %95 by %c496_i32_118 dim 1 : vector<8x512xf32>, i32 -> vector<8x512xf32>
    %c56_119 = arith.constant 56 : index
    %c0_120 = arith.constant 0 : index
    %126 = vector.load %arg5[%c56_119, %c0_120] : memref<72x512xf32, #tpu.memory_space<vmem>>, vector<8x512xf32>
    %127 = arith.mulf %125, %126 : vector<8x512xf32>
    %c56_121 = arith.constant 56 : index
    %c0_122 = arith.constant 0 : index
    %128 = vector.load %arg7[%c56_121, %c0_122] : memref<72x512xf32, #tpu.memory_space<vmem>>, vector<8x512xf32>
    tpu.vector_store %arg7[%c56_121, %c0_122], %127 {strides = array<i32>} : memref<72x512xf32, #tpu.memory_space<vmem>>, vector<8x512xf32>,
    %c495_i32_123 = arith.constant 495 : i32
    %129 = tpu.dynamic_rotate %95 by %c495_i32_123 dim 1 : vector<8x512xf32>, i32 -> vector<8x512xf32>
    %c64_124 = arith.constant 64 : index
    %c0_125 = arith.constant 0 : index
    %130 = vector.load %arg5[%c64_124, %c0_125] : memref<72x512xf32, #tpu.memory_space<vmem>>, vector<8x512xf32>
    %131 = arith.mulf %129, %130 : vector<8x512xf32>
    %c64_126 = arith.constant 64 : index
    %c0_127 = arith.constant 0 : index
    %132 = vector.load %arg7[%c64_126, %c0_127] : memref<72x512xf32, #tpu.memory_space<vmem>>, vector<8x512xf32>
    tpu.vector_store %arg7[%c64_126, %c0_127], %131 {strides = array<i32>} : memref<72x512xf32, #tpu.memory_space<vmem>>, vector<8x512xf32>,
    %c0_128 = arith.constant 0 : index
    %c0_129 = arith.constant 0 : index
    %133 = vector.load %arg7[%c0_128, %c0_129] : memref<72x512xf32, #tpu.memory_space<vmem>>, vector<72x512xf32>
    %cst_130 = arith.constant dense<0.000000e+00> : vector<8x512xf32>
    %134 = tpu.matmul %1, %133, %cst_130 {dimension_numbers = #tpu.dot_dimension_numbers<[1], [0], [0], [1], [0, 0, 1, 1], [], []>} : vector<8x72xf32>, vector<72x512xf32>, vector<8x512xf32> -> vector<8x512xf32>
    %135 = arith.addf %134, %4 : vector<8x512xf32>
    %136 = math.tanh %135 : vector<8x512xf32>
    %137 = arith.index_cast %c3_i32 : i32 to index
    %138 = memref.load %arg1[%137] : memref<8xf32, #tpu.memory_space<smem>>
    %139 = vector.broadcast %138 : f32 to vector<8x512xf32>
    %140 = arith.mulf %139, %136 : vector<8x512xf32>
    %141 = arith.addf %95, %140 : vector<8x512xf32>
    %142 = arith.index_cast %c3_i32 : i32 to index
    %c0_131 = arith.constant 0 : index
    %c0_132 = arith.constant 0 : index
    %143 = vector.load %arg6[%142, %c0_131, %c0_132] : memref<8x8x512xf32, #tpu.memory_space<vmem>>, vector<1x8x512xf32>
    %144 = vector.shape_cast %143 : vector<1x8x512xf32> to vector<8x512xf32>
    %145 = vector.shape_cast %141 : vector<8x512xf32> to vector<1x8x512xf32>
    tpu.vector_store %arg6[%142, %c0_131, %c0_132], %145 {strides = array<i32>} : memref<8x8x512xf32, #tpu.memory_space<vmem>>, vector<1x8x512xf32>,
    %c4_i32 = arith.constant 4 : i32
    %c17_i32_133 = arith.constant 17 : i32
    %146 = tpu.dynamic_rotate %141 by %c17_i32_133 dim 1 : vector<8x512xf32>, i32 -> vector<8x512xf32>
    %c0_134 = arith.constant 0 : index
    %c0_135 = arith.constant 0 : index
    %147 = vector.load %arg5[%c0_134, %c0_135] : memref<72x512xf32, #tpu.memory_space<vmem>>, vector<8x512xf32>
    %148 = arith.mulf %146, %147 : vector<8x512xf32>
    %c0_136 = arith.constant 0 : index
    %c0_137 = arith.constant 0 : index
    %149 = vector.load %arg7[%c0_136, %c0_137] : memref<72x512xf32, #tpu.memory_space<vmem>>, vector<8x512xf32>
    tpu.vector_store %arg7[%c0_136, %c0_137], %148 {strides = array<i32>} : memref<72x512xf32, #tpu.memory_space<vmem>>, vector<8x512xf32>,
    %c16_i32_138 = arith.constant 16 : i32
    %150 = tpu.dynamic_rotate %141 by %c16_i32_138 dim 1 : vector<8x512xf32>, i32 -> vector<8x512xf32>
    %c8_139 = arith.constant 8 : index
    %c0_140 = arith.constant 0 : index
    %151 = vector.load %arg5[%c8_139, %c0_140] : memref<72x512xf32, #tpu.memory_space<vmem>>, vector<8x512xf32>
    %152 = arith.mulf %150, %151 : vector<8x512xf32>
    %c8_141 = arith.constant 8 : index
    %c0_142 = arith.constant 0 : index
    %153 = vector.load %arg7[%c8_141, %c0_142] : memref<72x512xf32, #tpu.memory_space<vmem>>, vector<8x512xf32>
    tpu.vector_store %arg7[%c8_141, %c0_142], %152 {strides = array<i32>} : memref<72x512xf32, #tpu.memory_space<vmem>>, vector<8x512xf32>,
    %c15_i32_143 = arith.constant 15 : i32
    %154 = tpu.dynamic_rotate %141 by %c15_i32_143 dim 1 : vector<8x512xf32>, i32 -> vector<8x512xf32>
    %c16_144 = arith.constant 16 : index
    %c0_145 = arith.constant 0 : index
    %155 = vector.load %arg5[%c16_144, %c0_145] : memref<72x512xf32, #tpu.memory_space<vmem>>, vector<8x512xf32>
    %156 = arith.mulf %154, %155 : vector<8x512xf32>
    %c16_146 = arith.constant 16 : index
    %c0_147 = arith.constant 0 : index
    %157 = vector.load %arg7[%c16_146, %c0_147] : memref<72x512xf32, #tpu.memory_space<vmem>>, vector<8x512xf32>
    tpu.vector_store %arg7[%c16_146, %c0_147], %156 {strides = array<i32>} : memref<72x512xf32, #tpu.memory_space<vmem>>, vector<8x512xf32>,
    %c1_i32_148 = arith.constant 1 : i32
    %158 = tpu.dynamic_rotate %141 by %c1_i32_148 dim 1 : vector<8x512xf32>, i32 -> vector<8x512xf32>
    %c24_149 = arith.constant 24 : index
    %c0_150 = arith.constant 0 : index
    %159 = vector.load %arg5[%c24_149, %c0_150] : memref<72x512xf32, #tpu.memory_space<vmem>>, vector<8x512xf32>
    %160 = arith.mulf %158, %159 : vector<8x512xf32>
    %c24_151 = arith.constant 24 : index
    %c0_152 = arith.constant 0 : index
    %161 = vector.load %arg7[%c24_151, %c0_152] : memref<72x512xf32, #tpu.memory_space<vmem>>, vector<8x512xf32>
    tpu.vector_store %arg7[%c24_151, %c0_152], %160 {strides = array<i32>} : memref<72x512xf32, #tpu.memory_space<vmem>>, vector<8x512xf32>,
    %c32_153 = arith.constant 32 : index
    %c0_154 = arith.constant 0 : index
    %162 = vector.load %arg7[%c32_153, %c0_154] : memref<72x512xf32, #tpu.memory_space<vmem>>, vector<8x512xf32>
    tpu.vector_store %arg7[%c32_153, %c0_154], %141 {strides = array<i32>} : memref<72x512xf32, #tpu.memory_space<vmem>>, vector<8x512xf32>,
    %c511_i32_155 = arith.constant 511 : i32
    %163 = tpu.dynamic_rotate %141 by %c511_i32_155 dim 1 : vector<8x512xf32>, i32 -> vector<8x512xf32>
    %c40_156 = arith.constant 40 : index
    %c0_157 = arith.constant 0 : index
    %164 = vector.load %arg5[%c40_156, %c0_157] : memref<72x512xf32, #tpu.memory_space<vmem>>, vector<8x512xf32>
    %165 = arith.mulf %163, %164 : vector<8x512xf32>
    %c40_158 = arith.constant 40 : index
    %c0_159 = arith.constant 0 : index
    %166 = vector.load %arg7[%c40_158, %c0_159] : memref<72x512xf32, #tpu.memory_space<vmem>>, vector<8x512xf32>
    tpu.vector_store %arg7[%c40_158, %c0_159], %165 {strides = array<i32>} : memref<72x512xf32, #tpu.memory_space<vmem>>, vector<8x512xf32>,
    %c497_i32_160 = arith.constant 497 : i32
    %167 = tpu.dynamic_rotate %141 by %c497_i32_160 dim 1 : vector<8x512xf32>, i32 -> vector<8x512xf32>
    %c48_161 = arith.constant 48 : index
    %c0_162 = arith.constant 0 : index
    %168 = vector.load %arg5[%c48_161, %c0_162] : memref<72x512xf32, #tpu.memory_space<vmem>>, vector<8x512xf32>
    %169 = arith.mulf %167, %168 : vector<8x512xf32>
    %c48_163 = arith.constant 48 : index
    %c0_164 = arith.constant 0 : index
    %170 = vector.load %arg7[%c48_163, %c0_164] : memref<72x512xf32, #tpu.memory_space<vmem>>, vector<8x512xf32>
    tpu.vector_store %arg7[%c48_163, %c0_164], %169 {strides = array<i32>} : memref<72x512xf32, #tpu.memory_space<vmem>>, vector<8x512xf32>,
    %c496_i32_165 = arith.constant 496 : i32
    %171 = tpu.dynamic_rotate %141 by %c496_i32_165 dim 1 : vector<8x512xf32>, i32 -> vector<8x512xf32>
    %c56_166 = arith.constant 56 : index
    %c0_167 = arith.constant 0 : index
    %172 = vector.load %arg5[%c56_166, %c0_167] : memref<72x512xf32, #tpu.memory_space<vmem>>, vector<8x512xf32>
    %173 = arith.mulf %171, %172 : vector<8x512xf32>
    %c56_168 = arith.constant 56 : index
    %c0_169 = arith.constant 0 : index
    %174 = vector.load %arg7[%c56_168, %c0_169] : memref<72x512xf32, #tpu.memory_space<vmem>>, vector<8x512xf32>
    tpu.vector_store %arg7[%c56_168, %c0_169], %173 {strides = array<i32>} : memref<72x512xf32, #tpu.memory_space<vmem>>, vector<8x512xf32>,
    %c495_i32_170 = arith.constant 495 : i32
    %175 = tpu.dynamic_rotate %141 by %c495_i32_170 dim 1 : vector<8x512xf32>, i32 -> vector<8x512xf32>
    %c64_171 = arith.constant 64 : index
    %c0_172 = arith.constant 0 : index
    %176 = vector.load %arg5[%c64_171, %c0_172] : memref<72x512xf32, #tpu.memory_space<vmem>>, vector<8x512xf32>
    %177 = arith.mulf %175, %176 : vector<8x512xf32>
    %c64_173 = arith.constant 64 : index
    %c0_174 = arith.constant 0 : index
    %178 = vector.load %arg7[%c64_173, %c0_174] : memref<72x512xf32, #tpu.memory_space<vmem>>, vector<8x512xf32>
    tpu.vector_store %arg7[%c64_173, %c0_174], %177 {strides = array<i32>} : memref<72x512xf32, #tpu.memory_space<vmem>>, vector<8x512xf32>,
    %c0_175 = arith.constant 0 : index
    %c0_176 = arith.constant 0 : index
    %179 = vector.load %arg7[%c0_175, %c0_176] : memref<72x512xf32, #tpu.memory_space<vmem>>, vector<72x512xf32>
    %cst_177 = arith.constant dense<0.000000e+00> : vector<8x512xf32>
    %180 = tpu.matmul %1, %179, %cst_177 {dimension_numbers = #tpu.dot_dimension_numbers<[1], [0], [0], [1], [0, 0, 1, 1], [], []>} : vector<8x72xf32>, vector<72x512xf32>, vector<8x512xf32> -> vector<8x512xf32>
    %181 = arith.addf %180, %4 : vector<8x512xf32>
    %182 = math.tanh %181 : vector<8x512xf32>
    %183 = arith.index_cast %c4_i32 : i32 to index
    %184 = memref.load %arg1[%183] : memref<8xf32, #tpu.memory_space<smem>>
    %185 = vector.broadcast %184 : f32 to vector<8x512xf32>
    %186 = arith.mulf %185, %182 : vector<8x512xf32>
    %187 = arith.addf %141, %186 : vector<8x512xf32>
    %188 = arith.index_cast %c4_i32 : i32 to index
    %c0_178 = arith.constant 0 : index
    %c0_179 = arith.constant 0 : index
    %189 = vector.load %arg6[%188, %c0_178, %c0_179] : memref<8x8x512xf32, #tpu.memory_space<vmem>>, vector<1x8x512xf32>
    %190 = vector.shape_cast %189 : vector<1x8x512xf32> to vector<8x512xf32>
    %191 = vector.shape_cast %187 : vector<8x512xf32> to vector<1x8x512xf32>
    tpu.vector_store %arg6[%188, %c0_178, %c0_179], %191 {strides = array<i32>} : memref<8x8x512xf32, #tpu.memory_space<vmem>>, vector<1x8x512xf32>,
    %c5_i32 = arith.constant 5 : i32
    %c17_i32_180 = arith.constant 17 : i32
    %192 = tpu.dynamic_rotate %187 by %c17_i32_180 dim 1 : vector<8x512xf32>, i32 -> vector<8x512xf32>
    %c0_181 = arith.constant 0 : index
    %c0_182 = arith.constant 0 : index
    %193 = vector.load %arg5[%c0_181, %c0_182] : memref<72x512xf32, #tpu.memory_space<vmem>>, vector<8x512xf32>
    %194 = arith.mulf %192, %193 : vector<8x512xf32>
    %c0_183 = arith.constant 0 : index
    %c0_184 = arith.constant 0 : index
    %195 = vector.load %arg7[%c0_183, %c0_184] : memref<72x512xf32, #tpu.memory_space<vmem>>, vector<8x512xf32>
    tpu.vector_store %arg7[%c0_183, %c0_184], %194 {strides = array<i32>} : memref<72x512xf32, #tpu.memory_space<vmem>>, vector<8x512xf32>,
    %c16_i32_185 = arith.constant 16 : i32
    %196 = tpu.dynamic_rotate %187 by %c16_i32_185 dim 1 : vector<8x512xf32>, i32 -> vector<8x512xf32>
    %c8_186 = arith.constant 8 : index
    %c0_187 = arith.constant 0 : index
    %197 = vector.load %arg5[%c8_186, %c0_187] : memref<72x512xf32, #tpu.memory_space<vmem>>, vector<8x512xf32>
    %198 = arith.mulf %196, %197 : vector<8x512xf32>
    %c8_188 = arith.constant 8 : index
    %c0_189 = arith.constant 0 : index
    %199 = vector.load %arg7[%c8_188, %c0_189] : memref<72x512xf32, #tpu.memory_space<vmem>>, vector<8x512xf32>
    tpu.vector_store %arg7[%c8_188, %c0_189], %198 {strides = array<i32>} : memref<72x512xf32, #tpu.memory_space<vmem>>, vector<8x512xf32>,
    %c15_i32_190 = arith.constant 15 : i32
    %200 = tpu.dynamic_rotate %187 by %c15_i32_190 dim 1 : vector<8x512xf32>, i32 -> vector<8x512xf32>
    %c16_191 = arith.constant 16 : index
    %c0_192 = arith.constant 0 : index
    %201 = vector.load %arg5[%c16_191, %c0_192] : memref<72x512xf32, #tpu.memory_space<vmem>>, vector<8x512xf32>
    %202 = arith.mulf %200, %201 : vector<8x512xf32>
    %c16_193 = arith.constant 16 : index
    %c0_194 = arith.constant 0 : index
    %203 = vector.load %arg7[%c16_193, %c0_194] : memref<72x512xf32, #tpu.memory_space<vmem>>, vector<8x512xf32>
    tpu.vector_store %arg7[%c16_193, %c0_194], %202 {strides = array<i32>} : memref<72x512xf32, #tpu.memory_space<vmem>>, vector<8x512xf32>,
    %c1_i32_195 = arith.constant 1 : i32
    %204 = tpu.dynamic_rotate %187 by %c1_i32_195 dim 1 : vector<8x512xf32>, i32 -> vector<8x512xf32>
    %c24_196 = arith.constant 24 : index
    %c0_197 = arith.constant 0 : index
    %205 = vector.load %arg5[%c24_196, %c0_197] : memref<72x512xf32, #tpu.memory_space<vmem>>, vector<8x512xf32>
    %206 = arith.mulf %204, %205 : vector<8x512xf32>
    %c24_198 = arith.constant 24 : index
    %c0_199 = arith.constant 0 : index
    %207 = vector.load %arg7[%c24_198, %c0_199] : memref<72x512xf32, #tpu.memory_space<vmem>>, vector<8x512xf32>
    tpu.vector_store %arg7[%c24_198, %c0_199], %206 {strides = array<i32>} : memref<72x512xf32, #tpu.memory_space<vmem>>, vector<8x512xf32>,
    %c32_200 = arith.constant 32 : index
    %c0_201 = arith.constant 0 : index
    %208 = vector.load %arg7[%c32_200, %c0_201] : memref<72x512xf32, #tpu.memory_space<vmem>>, vector<8x512xf32>
    tpu.vector_store %arg7[%c32_200, %c0_201], %187 {strides = array<i32>} : memref<72x512xf32, #tpu.memory_space<vmem>>, vector<8x512xf32>,
    %c511_i32_202 = arith.constant 511 : i32
    %209 = tpu.dynamic_rotate %187 by %c511_i32_202 dim 1 : vector<8x512xf32>, i32 -> vector<8x512xf32>
    %c40_203 = arith.constant 40 : index
    %c0_204 = arith.constant 0 : index
    %210 = vector.load %arg5[%c40_203, %c0_204] : memref<72x512xf32, #tpu.memory_space<vmem>>, vector<8x512xf32>
    %211 = arith.mulf %209, %210 : vector<8x512xf32>
    %c40_205 = arith.constant 40 : index
    %c0_206 = arith.constant 0 : index
    %212 = vector.load %arg7[%c40_205, %c0_206] : memref<72x512xf32, #tpu.memory_space<vmem>>, vector<8x512xf32>
    tpu.vector_store %arg7[%c40_205, %c0_206], %211 {strides = array<i32>} : memref<72x512xf32, #tpu.memory_space<vmem>>, vector<8x512xf32>,
    %c497_i32_207 = arith.constant 497 : i32
    %213 = tpu.dynamic_rotate %187 by %c497_i32_207 dim 1 : vector<8x512xf32>, i32 -> vector<8x512xf32>
    %c48_208 = arith.constant 48 : index
    %c0_209 = arith.constant 0 : index
    %214 = vector.load %arg5[%c48_208, %c0_209] : memref<72x512xf32, #tpu.memory_space<vmem>>, vector<8x512xf32>
    %215 = arith.mulf %213, %214 : vector<8x512xf32>
    %c48_210 = arith.constant 48 : index
    %c0_211 = arith.constant 0 : index
    %216 = vector.load %arg7[%c48_210, %c0_211] : memref<72x512xf32, #tpu.memory_space<vmem>>, vector<8x512xf32>
    tpu.vector_store %arg7[%c48_210, %c0_211], %215 {strides = array<i32>} : memref<72x512xf32, #tpu.memory_space<vmem>>, vector<8x512xf32>,
    %c496_i32_212 = arith.constant 496 : i32
    %217 = tpu.dynamic_rotate %187 by %c496_i32_212 dim 1 : vector<8x512xf32>, i32 -> vector<8x512xf32>
    %c56_213 = arith.constant 56 : index
    %c0_214 = arith.constant 0 : index
    %218 = vector.load %arg5[%c56_213, %c0_214] : memref<72x512xf32, #tpu.memory_space<vmem>>, vector<8x512xf32>
    %219 = arith.mulf %217, %218 : vector<8x512xf32>
    %c56_215 = arith.constant 56 : index
    %c0_216 = arith.constant 0 : index
    %220 = vector.load %arg7[%c56_215, %c0_216] : memref<72x512xf32, #tpu.memory_space<vmem>>, vector<8x512xf32>
    tpu.vector_store %arg7[%c56_215, %c0_216], %219 {strides = array<i32>} : memref<72x512xf32, #tpu.memory_space<vmem>>, vector<8x512xf32>,
    %c495_i32_217 = arith.constant 495 : i32
    %221 = tpu.dynamic_rotate %187 by %c495_i32_217 dim 1 : vector<8x512xf32>, i32 -> vector<8x512xf32>
    %c64_218 = arith.constant 64 : index
    %c0_219 = arith.constant 0 : index
    %222 = vector.load %arg5[%c64_218, %c0_219] : memref<72x512xf32, #tpu.memory_space<vmem>>, vector<8x512xf32>
    %223 = arith.mulf %221, %222 : vector<8x512xf32>
    %c64_220 = arith.constant 64 : index
    %c0_221 = arith.constant 0 : index
    %224 = vector.load %arg7[%c64_220, %c0_221] : memref<72x512xf32, #tpu.memory_space<vmem>>, vector<8x512xf32>
    tpu.vector_store %arg7[%c64_220, %c0_221], %223 {strides = array<i32>} : memref<72x512xf32, #tpu.memory_space<vmem>>, vector<8x512xf32>,
    %c0_222 = arith.constant 0 : index
    %c0_223 = arith.constant 0 : index
    %225 = vector.load %arg7[%c0_222, %c0_223] : memref<72x512xf32, #tpu.memory_space<vmem>>, vector<72x512xf32>
    %cst_224 = arith.constant dense<0.000000e+00> : vector<8x512xf32>
    %226 = tpu.matmul %1, %225, %cst_224 {dimension_numbers = #tpu.dot_dimension_numbers<[1], [0], [0], [1], [0, 0, 1, 1], [], []>} : vector<8x72xf32>, vector<72x512xf32>, vector<8x512xf32> -> vector<8x512xf32>
    %227 = arith.addf %226, %4 : vector<8x512xf32>
    %228 = math.tanh %227 : vector<8x512xf32>
    %229 = arith.index_cast %c5_i32 : i32 to index
    %230 = memref.load %arg1[%229] : memref<8xf32, #tpu.memory_space<smem>>
    %231 = vector.broadcast %230 : f32 to vector<8x512xf32>
    %232 = arith.mulf %231, %228 : vector<8x512xf32>
    %233 = arith.addf %187, %232 : vector<8x512xf32>
    %234 = arith.index_cast %c5_i32 : i32 to index
    %c0_225 = arith.constant 0 : index
    %c0_226 = arith.constant 0 : index
    %235 = vector.load %arg6[%234, %c0_225, %c0_226] : memref<8x8x512xf32, #tpu.memory_space<vmem>>, vector<1x8x512xf32>
    %236 = vector.shape_cast %235 : vector<1x8x512xf32> to vector<8x512xf32>
    %237 = vector.shape_cast %233 : vector<8x512xf32> to vector<1x8x512xf32>
    tpu.vector_store %arg6[%234, %c0_225, %c0_226], %237 {strides = array<i32>} : memref<8x8x512xf32, #tpu.memory_space<vmem>>, vector<1x8x512xf32>,
    %c6_i32 = arith.constant 6 : i32
    %c17_i32_227 = arith.constant 17 : i32
    %238 = tpu.dynamic_rotate %233 by %c17_i32_227 dim 1 : vector<8x512xf32>, i32 -> vector<8x512xf32>
    %c0_228 = arith.constant 0 : index
    %c0_229 = arith.constant 0 : index
    %239 = vector.load %arg5[%c0_228, %c0_229] : memref<72x512xf32, #tpu.memory_space<vmem>>, vector<8x512xf32>
    %240 = arith.mulf %238, %239 : vector<8x512xf32>
    %c0_230 = arith.constant 0 : index
    %c0_231 = arith.constant 0 : index
    %241 = vector.load %arg7[%c0_230, %c0_231] : memref<72x512xf32, #tpu.memory_space<vmem>>, vector<8x512xf32>
    tpu.vector_store %arg7[%c0_230, %c0_231], %240 {strides = array<i32>} : memref<72x512xf32, #tpu.memory_space<vmem>>, vector<8x512xf32>,
    %c16_i32_232 = arith.constant 16 : i32
    %242 = tpu.dynamic_rotate %233 by %c16_i32_232 dim 1 : vector<8x512xf32>, i32 -> vector<8x512xf32>
    %c8_233 = arith.constant 8 : index
    %c0_234 = arith.constant 0 : index
    %243 = vector.load %arg5[%c8_233, %c0_234] : memref<72x512xf32, #tpu.memory_space<vmem>>, vector<8x512xf32>
    %244 = arith.mulf %242, %243 : vector<8x512xf32>
    %c8_235 = arith.constant 8 : index
    %c0_236 = arith.constant 0 : index
    %245 = vector.load %arg7[%c8_235, %c0_236] : memref<72x512xf32, #tpu.memory_space<vmem>>, vector<8x512xf32>
    tpu.vector_store %arg7[%c8_235, %c0_236], %244 {strides = array<i32>} : memref<72x512xf32, #tpu.memory_space<vmem>>, vector<8x512xf32>,
    %c15_i32_237 = arith.constant 15 : i32
    %246 = tpu.dynamic_rotate %233 by %c15_i32_237 dim 1 : vector<8x512xf32>, i32 -> vector<8x512xf32>
    %c16_238 = arith.constant 16 : index
    %c0_239 = arith.constant 0 : index
    %247 = vector.load %arg5[%c16_238, %c0_239] : memref<72x512xf32, #tpu.memory_space<vmem>>, vector<8x512xf32>
    %248 = arith.mulf %246, %247 : vector<8x512xf32>
    %c16_240 = arith.constant 16 : index
    %c0_241 = arith.constant 0 : index
    %249 = vector.load %arg7[%c16_240, %c0_241] : memref<72x512xf32, #tpu.memory_space<vmem>>, vector<8x512xf32>
    tpu.vector_store %arg7[%c16_240, %c0_241], %248 {strides = array<i32>} : memref<72x512xf32, #tpu.memory_space<vmem>>, vector<8x512xf32>,
    %c1_i32_242 = arith.constant 1 : i32
    %250 = tpu.dynamic_rotate %233 by %c1_i32_242 dim 1 : vector<8x512xf32>, i32 -> vector<8x512xf32>
    %c24_243 = arith.constant 24 : index
    %c0_244 = arith.constant 0 : index
    %251 = vector.load %arg5[%c24_243, %c0_244] : memref<72x512xf32, #tpu.memory_space<vmem>>, vector<8x512xf32>
    %252 = arith.mulf %250, %251 : vector<8x512xf32>
    %c24_245 = arith.constant 24 : index
    %c0_246 = arith.constant 0 : index
    %253 = vector.load %arg7[%c24_245, %c0_246] : memref<72x512xf32, #tpu.memory_space<vmem>>, vector<8x512xf32>
    tpu.vector_store %arg7[%c24_245, %c0_246], %252 {strides = array<i32>} : memref<72x512xf32, #tpu.memory_space<vmem>>, vector<8x512xf32>,
    %c32_247 = arith.constant 32 : index
    %c0_248 = arith.constant 0 : index
    %254 = vector.load %arg7[%c32_247, %c0_248] : memref<72x512xf32, #tpu.memory_space<vmem>>, vector<8x512xf32>
    tpu.vector_store %arg7[%c32_247, %c0_248], %233 {strides = array<i32>} : memref<72x512xf32, #tpu.memory_space<vmem>>, vector<8x512xf32>,
    %c511_i32_249 = arith.constant 511 : i32
    %255 = tpu.dynamic_rotate %233 by %c511_i32_249 dim 1 : vector<8x512xf32>, i32 -> vector<8x512xf32>
    %c40_250 = arith.constant 40 : index
    %c0_251 = arith.constant 0 : index
    %256 = vector.load %arg5[%c40_250, %c0_251] : memref<72x512xf32, #tpu.memory_space<vmem>>, vector<8x512xf32>
    %257 = arith.mulf %255, %256 : vector<8x512xf32>
    %c40_252 = arith.constant 40 : index
    %c0_253 = arith.constant 0 : index
    %258 = vector.load %arg7[%c40_252, %c0_253] : memref<72x512xf32, #tpu.memory_space<vmem>>, vector<8x512xf32>
    tpu.vector_store %arg7[%c40_252, %c0_253], %257 {strides = array<i32>} : memref<72x512xf32, #tpu.memory_space<vmem>>, vector<8x512xf32>,
    %c497_i32_254 = arith.constant 497 : i32
    %259 = tpu.dynamic_rotate %233 by %c497_i32_254 dim 1 : vector<8x512xf32>, i32 -> vector<8x512xf32>
    %c48_255 = arith.constant 48 : index
    %c0_256 = arith.constant 0 : index
    %260 = vector.load %arg5[%c48_255, %c0_256] : memref<72x512xf32, #tpu.memory_space<vmem>>, vector<8x512xf32>
    %261 = arith.mulf %259, %260 : vector<8x512xf32>
    %c48_257 = arith.constant 48 : index
    %c0_258 = arith.constant 0 : index
    %262 = vector.load %arg7[%c48_257, %c0_258] : memref<72x512xf32, #tpu.memory_space<vmem>>, vector<8x512xf32>
    tpu.vector_store %arg7[%c48_257, %c0_258], %261 {strides = array<i32>} : memref<72x512xf32, #tpu.memory_space<vmem>>, vector<8x512xf32>,
    %c496_i32_259 = arith.constant 496 : i32
    %263 = tpu.dynamic_rotate %233 by %c496_i32_259 dim 1 : vector<8x512xf32>, i32 -> vector<8x512xf32>
    %c56_260 = arith.constant 56 : index
    %c0_261 = arith.constant 0 : index
    %264 = vector.load %arg5[%c56_260, %c0_261] : memref<72x512xf32, #tpu.memory_space<vmem>>, vector<8x512xf32>
    %265 = arith.mulf %263, %264 : vector<8x512xf32>
    %c56_262 = arith.constant 56 : index
    %c0_263 = arith.constant 0 : index
    %266 = vector.load %arg7[%c56_262, %c0_263] : memref<72x512xf32, #tpu.memory_space<vmem>>, vector<8x512xf32>
    tpu.vector_store %arg7[%c56_262, %c0_263], %265 {strides = array<i32>} : memref<72x512xf32, #tpu.memory_space<vmem>>, vector<8x512xf32>,
    %c495_i32_264 = arith.constant 495 : i32
    %267 = tpu.dynamic_rotate %233 by %c495_i32_264 dim 1 : vector<8x512xf32>, i32 -> vector<8x512xf32>
    %c64_265 = arith.constant 64 : index
    %c0_266 = arith.constant 0 : index
    %268 = vector.load %arg5[%c64_265, %c0_266] : memref<72x512xf32, #tpu.memory_space<vmem>>, vector<8x512xf32>
    %269 = arith.mulf %267, %268 : vector<8x512xf32>
    %c64_267 = arith.constant 64 : index
    %c0_268 = arith.constant 0 : index
    %270 = vector.load %arg7[%c64_267, %c0_268] : memref<72x512xf32, #tpu.memory_space<vmem>>, vector<8x512xf32>
    tpu.vector_store %arg7[%c64_267, %c0_268], %269 {strides = array<i32>} : memref<72x512xf32, #tpu.memory_space<vmem>>, vector<8x512xf32>,
    %c0_269 = arith.constant 0 : index
    %c0_270 = arith.constant 0 : index
    %271 = vector.load %arg7[%c0_269, %c0_270] : memref<72x512xf32, #tpu.memory_space<vmem>>, vector<72x512xf32>
    %cst_271 = arith.constant dense<0.000000e+00> : vector<8x512xf32>
    %272 = tpu.matmul %1, %271, %cst_271 {dimension_numbers = #tpu.dot_dimension_numbers<[1], [0], [0], [1], [0, 0, 1, 1], [], []>} : vector<8x72xf32>, vector<72x512xf32>, vector<8x512xf32> -> vector<8x512xf32>
    %273 = arith.addf %272, %4 : vector<8x512xf32>
    %274 = math.tanh %273 : vector<8x512xf32>
    %275 = arith.index_cast %c6_i32 : i32 to index
    %276 = memref.load %arg1[%275] : memref<8xf32, #tpu.memory_space<smem>>
    %277 = vector.broadcast %276 : f32 to vector<8x512xf32>
    %278 = arith.mulf %277, %274 : vector<8x512xf32>
    %279 = arith.addf %233, %278 : vector<8x512xf32>
    %280 = arith.index_cast %c6_i32 : i32 to index
    %c0_272 = arith.constant 0 : index
    %c0_273 = arith.constant 0 : index
    %281 = vector.load %arg6[%280, %c0_272, %c0_273] : memref<8x8x512xf32, #tpu.memory_space<vmem>>, vector<1x8x512xf32>
    %282 = vector.shape_cast %281 : vector<1x8x512xf32> to vector<8x512xf32>
    %283 = vector.shape_cast %279 : vector<8x512xf32> to vector<1x8x512xf32>
    tpu.vector_store %arg6[%280, %c0_272, %c0_273], %283 {strides = array<i32>} : memref<8x8x512xf32, #tpu.memory_space<vmem>>, vector<1x8x512xf32>,
    %c7_i32 = arith.constant 7 : i32
    %c17_i32_274 = arith.constant 17 : i32
    %284 = tpu.dynamic_rotate %279 by %c17_i32_274 dim 1 : vector<8x512xf32>, i32 -> vector<8x512xf32>
    %c0_275 = arith.constant 0 : index
    %c0_276 = arith.constant 0 : index
    %285 = vector.load %arg5[%c0_275, %c0_276] : memref<72x512xf32, #tpu.memory_space<vmem>>, vector<8x512xf32>
    %286 = arith.mulf %284, %285 : vector<8x512xf32>
    %c0_277 = arith.constant 0 : index
    %c0_278 = arith.constant 0 : index
    %287 = vector.load %arg7[%c0_277, %c0_278] : memref<72x512xf32, #tpu.memory_space<vmem>>, vector<8x512xf32>
    tpu.vector_store %arg7[%c0_277, %c0_278], %286 {strides = array<i32>} : memref<72x512xf32, #tpu.memory_space<vmem>>, vector<8x512xf32>,
    %c16_i32_279 = arith.constant 16 : i32
    %288 = tpu.dynamic_rotate %279 by %c16_i32_279 dim 1 : vector<8x512xf32>, i32 -> vector<8x512xf32>
    %c8_280 = arith.constant 8 : index
    %c0_281 = arith.constant 0 : index
    %289 = vector.load %arg5[%c8_280, %c0_281] : memref<72x512xf32, #tpu.memory_space<vmem>>, vector<8x512xf32>
    %290 = arith.mulf %288, %289 : vector<8x512xf32>
    %c8_282 = arith.constant 8 : index
    %c0_283 = arith.constant 0 : index
    %291 = vector.load %arg7[%c8_282, %c0_283] : memref<72x512xf32, #tpu.memory_space<vmem>>, vector<8x512xf32>
    tpu.vector_store %arg7[%c8_282, %c0_283], %290 {strides = array<i32>} : memref<72x512xf32, #tpu.memory_space<vmem>>, vector<8x512xf32>,
    %c15_i32_284 = arith.constant 15 : i32
    %292 = tpu.dynamic_rotate %279 by %c15_i32_284 dim 1 : vector<8x512xf32>, i32 -> vector<8x512xf32>
    %c16_285 = arith.constant 16 : index
    %c0_286 = arith.constant 0 : index
    %293 = vector.load %arg5[%c16_285, %c0_286] : memref<72x512xf32, #tpu.memory_space<vmem>>, vector<8x512xf32>
    %294 = arith.mulf %292, %293 : vector<8x512xf32>
    %c16_287 = arith.constant 16 : index
    %c0_288 = arith.constant 0 : index
    %295 = vector.load %arg7[%c16_287, %c0_288] : memref<72x512xf32, #tpu.memory_space<vmem>>, vector<8x512xf32>
    tpu.vector_store %arg7[%c16_287, %c0_288], %294 {strides = array<i32>} : memref<72x512xf32, #tpu.memory_space<vmem>>, vector<8x512xf32>,
    %c1_i32_289 = arith.constant 1 : i32
    %296 = tpu.dynamic_rotate %279 by %c1_i32_289 dim 1 : vector<8x512xf32>, i32 -> vector<8x512xf32>
    %c24_290 = arith.constant 24 : index
    %c0_291 = arith.constant 0 : index
    %297 = vector.load %arg5[%c24_290, %c0_291] : memref<72x512xf32, #tpu.memory_space<vmem>>, vector<8x512xf32>
    %298 = arith.mulf %296, %297 : vector<8x512xf32>
    %c24_292 = arith.constant 24 : index
    %c0_293 = arith.constant 0 : index
    %299 = vector.load %arg7[%c24_292, %c0_293] : memref<72x512xf32, #tpu.memory_space<vmem>>, vector<8x512xf32>
    tpu.vector_store %arg7[%c24_292, %c0_293], %298 {strides = array<i32>} : memref<72x512xf32, #tpu.memory_space<vmem>>, vector<8x512xf32>,
    %c32_294 = arith.constant 32 : index
    %c0_295 = arith.constant 0 : index
    %300 = vector.load %arg7[%c32_294, %c0_295] : memref<72x512xf32, #tpu.memory_space<vmem>>, vector<8x512xf32>
    tpu.vector_store %arg7[%c32_294, %c0_295], %279 {strides = array<i32>} : memref<72x512xf32, #tpu.memory_space<vmem>>, vector<8x512xf32>,
    %c511_i32_296 = arith.constant 511 : i32
    %301 = tpu.dynamic_rotate %279 by %c511_i32_296 dim 1 : vector<8x512xf32>, i32 -> vector<8x512xf32>
    %c40_297 = arith.constant 40 : index
    %c0_298 = arith.constant 0 : index
    %302 = vector.load %arg5[%c40_297, %c0_298] : memref<72x512xf32, #tpu.memory_space<vmem>>, vector<8x512xf32>
    %303 = arith.mulf %301, %302 : vector<8x512xf32>
    %c40_299 = arith.constant 40 : index
    %c0_300 = arith.constant 0 : index
    %304 = vector.load %arg7[%c40_299, %c0_300] : memref<72x512xf32, #tpu.memory_space<vmem>>, vector<8x512xf32>
    tpu.vector_store %arg7[%c40_299, %c0_300], %303 {strides = array<i32>} : memref<72x512xf32, #tpu.memory_space<vmem>>, vector<8x512xf32>,
    %c497_i32_301 = arith.constant 497 : i32
    %305 = tpu.dynamic_rotate %279 by %c497_i32_301 dim 1 : vector<8x512xf32>, i32 -> vector<8x512xf32>
    %c48_302 = arith.constant 48 : index
    %c0_303 = arith.constant 0 : index
    %306 = vector.load %arg5[%c48_302, %c0_303] : memref<72x512xf32, #tpu.memory_space<vmem>>, vector<8x512xf32>
    %307 = arith.mulf %305, %306 : vector<8x512xf32>
    %c48_304 = arith.constant 48 : index
    %c0_305 = arith.constant 0 : index
    %308 = vector.load %arg7[%c48_304, %c0_305] : memref<72x512xf32, #tpu.memory_space<vmem>>, vector<8x512xf32>
    tpu.vector_store %arg7[%c48_304, %c0_305], %307 {strides = array<i32>} : memref<72x512xf32, #tpu.memory_space<vmem>>, vector<8x512xf32>,
    %c496_i32_306 = arith.constant 496 : i32
    %309 = tpu.dynamic_rotate %279 by %c496_i32_306 dim 1 : vector<8x512xf32>, i32 -> vector<8x512xf32>
    %c56_307 = arith.constant 56 : index
    %c0_308 = arith.constant 0 : index
    %310 = vector.load %arg5[%c56_307, %c0_308] : memref<72x512xf32, #tpu.memory_space<vmem>>, vector<8x512xf32>
    %311 = arith.mulf %309, %310 : vector<8x512xf32>
    %c56_309 = arith.constant 56 : index
    %c0_310 = arith.constant 0 : index
    %312 = vector.load %arg7[%c56_309, %c0_310] : memref<72x512xf32, #tpu.memory_space<vmem>>, vector<8x512xf32>
    tpu.vector_store %arg7[%c56_309, %c0_310], %311 {strides = array<i32>} : memref<72x512xf32, #tpu.memory_space<vmem>>, vector<8x512xf32>,
    %c495_i32_311 = arith.constant 495 : i32
    %313 = tpu.dynamic_rotate %279 by %c495_i32_311 dim 1 : vector<8x512xf32>, i32 -> vector<8x512xf32>
    %c64_312 = arith.constant 64 : index
    %c0_313 = arith.constant 0 : index
    %314 = vector.load %arg5[%c64_312, %c0_313] : memref<72x512xf32, #tpu.memory_space<vmem>>, vector<8x512xf32>
    %315 = arith.mulf %313, %314 : vector<8x512xf32>
    %c64_314 = arith.constant 64 : index
    %c0_315 = arith.constant 0 : index
    %316 = vector.load %arg7[%c64_314, %c0_315] : memref<72x512xf32, #tpu.memory_space<vmem>>, vector<8x512xf32>
    tpu.vector_store %arg7[%c64_314, %c0_315], %315 {strides = array<i32>} : memref<72x512xf32, #tpu.memory_space<vmem>>, vector<8x512xf32>,
    %c0_316 = arith.constant 0 : index
    %c0_317 = arith.constant 0 : index
    %317 = vector.load %arg7[%c0_316, %c0_317] : memref<72x512xf32, #tpu.memory_space<vmem>>, vector<72x512xf32>
    %cst_318 = arith.constant dense<0.000000e+00> : vector<8x512xf32>
    %318 = tpu.matmul %1, %317, %cst_318 {dimension_numbers = #tpu.dot_dimension_numbers<[1], [0], [0], [1], [0, 0, 1, 1], [], []>} : vector<8x72xf32>, vector<72x512xf32>, vector<8x512xf32> -> vector<8x512xf32>
    %319 = arith.addf %318, %4 : vector<8x512xf32>
    %320 = math.tanh %319 : vector<8x512xf32>
    %321 = arith.index_cast %c7_i32 : i32 to index
    %322 = memref.load %arg1[%321] : memref<8xf32, #tpu.memory_space<smem>>
    %323 = vector.broadcast %322 : f32 to vector<8x512xf32>
    %324 = arith.mulf %323, %320 : vector<8x512xf32>
    %325 = arith.addf %279, %324 : vector<8x512xf32>
    %326 = arith.index_cast %c7_i32 : i32 to index
    %c0_319 = arith.constant 0 : index
    %c0_320 = arith.constant 0 : index
    %327 = vector.load %arg6[%326, %c0_319, %c0_320] : memref<8x8x512xf32, #tpu.memory_space<vmem>>, vector<1x8x512xf32>
    %328 = vector.shape_cast %327 : vector<1x8x512xf32> to vector<8x512xf32>
    %329 = vector.shape_cast %325 : vector<8x512xf32> to vector<1x8x512xf32>
    tpu.vector_store %arg6[%326, %c0_319, %c0_320], %329 {strides = array<i32>} : memref<8x8x512xf32, #tpu.memory_space<vmem>>, vector<1x8x512xf32>,
    %c7_i32_321 = arith.constant 7 : i32
    return
  }
  func.func @transform_0(%arg0: i32) -> i32 {
    %c0_i32 = arith.constant 0 : i32
    %c0_i32_0 = arith.constant 0 : i32
    return %c0_i32 : i32
  }
  func.func @transform_1(%arg0: i32) -> (i32, i32) {
    %c0_i32 = arith.constant 0 : i32
    %c0_i32_0 = arith.constant 0 : i32
    %c0_i32_1 = arith.constant 0 : i32
    return %c0_i32, %c0_i32_0 : i32, i32
  }
  func.func @transform_2(%arg0: i32) -> (i32, i32) {
    %c0_i32 = arith.constant 0 : i32
    %c0_i32_0 = arith.constant 0 : i32
    %c0_i32_1 = arith.constant 0 : i32
    return %c0_i32, %c0_i32_0 : i32, i32
  }
  func.func @transform_3(%arg0: i32) -> (i32, i32) {
    %c0_i32 = arith.constant 0 : i32
    %c0_i32_0 = arith.constant 0 : i32
    %c0_i32_1 = arith.constant 0 : i32
    return %c0_i32, %c0_i32_0 : i32, i32
  }
  func.func @transform_4(%arg0: i32) -> (i32, i32) {
    %c0_i32 = arith.constant 0 : i32
    %c0_i32_0 = arith.constant 0 : i32
    %c0_i32_1 = arith.constant 0 : i32
    return %c0_i32, %c0_i32_0 : i32, i32
  }
  func.func @transform_5(%arg0: i32) -> (i32, i32, i32) {
    %c0_i32 = arith.constant 0 : i32
    %c0_i32_0 = arith.constant 0 : i32
    %c0_i32_1 = arith.constant 0 : i32
    %c0_i32_2 = arith.constant 0 : i32
    return %c0_i32, %c0_i32_0, %c0_i32_1 : i32, i32, i32
  }
}

</mosaic_0001>

<bundles_post_ra>
// kernel: tpu_custom_call.1
= control target key start
LH: loop header
LB: loop body
LE: loop exit
PB: predicated region body
PF: predicated region fallthrough
CT: control target
= control target key end

     0   :  { %10 = vsyncpa [#allocation6], 0  ;;  %s4292_s0 = inlined_call_operand.vmem [shape: f32[8], index: 0, kind: input, shape index: {}]   ;;  %s4293_s1 = inlined_call_operand.hbm [shape: f32[8,512], index: 1, kind: input, shape index: {}]   ;;  %s4294_s2 = inlined_call_operand.vmem [shape: f32[8,72], index: 2, kind: input, shape index: {}]   ;;  %s4295_s3 = inlined_call_operand.vmem [shape: f32[8,1], index: 3, kind: input, shape index: {}]   ;;  %s4296_s4 = inlined_call_operand.hbm [shape: f32[72,512], index: 4, kind: input, shape index: {}]   ;;  %s4297_s5 = inlined_call_operand.hbm [shape: f32[8,8,512], index: 5, kind: output, shape index: {}]  }
   0x1   :  { %11 = vsyncpa [#allocation4], 0 }
   0x2   :  { %12 = vsyncpa [#allocation9], 0 }
   0x3   :  { %13 = vsyncpa [#allocation5], 0  ;;  %s19_s20 = sshll.u32 %s4292_s0, 4  ;;  %s28_s23 = sshll.u32 %s4293_s1, 4  ;;  %s20_s20 = int_to_ptr.vmem [resolvable:$true] %s19_s20  ;;  %s29_s23 = int_to_ptr.hbm [resolvable:$true] %s28_s23 }
   0x4   :  { %s2633_s24 = smov [#allocation3]   ;;  %s2634_s25 = smov [#allocation7]  }
   0x5   :  { %22 = dma.vmem_to_smem %s20_s20, 16, %s2633_s24, [#allocation6]  }
   0x6   :  { %s30_s26 = sshll.u32 %s2634_s25, 4  ;;  %s42_s29 = sshll.u32 %s4296_s4, 4  ;;  %s31_s26 = int_to_ptr.vmem [resolvable:$true] %s30_s26  ;;  %s43_s29 = int_to_ptr.hbm [resolvable:$true] %s42_s29 }
   0x7   :  { %33 = dma.hbm_to_vmem [thread:$0]  %s29_s23, 512, %s31_s26, [#allocation4]  }
   0x8   :  { %s2635_s30 = smov [#allocation8]   ;;  %s2636_s0 = smov 512  }
   0x9   :  { %s44_s6 = sshll.u32 %s2635_s30, 4  ;;  %s2637_s7 = smov 32   ;;  %s45_s6 = int_to_ptr.vmem [resolvable:$true] %s44_s6 }
   0xa   :  { %50 = dma.hbm_to_vmem [thread:$0]  %s43_s29, 4608, %s45_s6, [#allocation9], %s2636_s0, %s2636_s0, %s2637_s7  }
   0xb   :  { %2625 = dma.done.wait [#allocation6], 16  }
   0xc   :  { %2626 = vsyncadd [#allocation6], 4294967280 }
   0xd   :  { %2627 = dma.done.wait [#allocation4], 512  }
   0xe   :  { %2628 = vsyncadd [#allocation4], 4294966784 }
   0xf   :  { %2629 = dma.done.wait [#allocation9], 4608  }
  0x10   :  { %2630 = vsyncadd [#allocation9], 4294962688 }
  0x11   :  { %63 = sfence }
  0x12   :  { %v2690_v0 = vld [vmem:[#allocation7 + $0x18] sm:$0xff]  ;;  %v2692_v1 = vld [vmem:[#allocation7 + $0x10] sm:$0xff]  ;;  %v2694_v2 = vld [vmem:[#allocation7] sm:$0xff]  ;;  %s2638_s1 = smov 111   ;;  %s2639_s4 = smov 112   ;;  %v87_v6 = vlaneseq  ;;  %vm321_vm8 = vcmask 588800  }
  0x13   :  { %266 = vrot.lane.b32.xlu1 %v2690_v0, %s2638_s1  ;;  %78 = vst [vmem:[#allocation10 + $0x18] sm:$0xff] %v2690_v0  ;;  %239 = vrot.lane.b32.xlu2 %v2692_v1, %s2639_s4  ;;  %v2705_v3 = vld [vmem:[#allocation7 + $0x8] sm:$0xff]  ;;  %s2640_s8 = smov 113   ;;  %s2641_s9 = smov 127   ;;  %v2771_v10 = vld [vmem:[#allocation8 + $0x118] sm:$0xff]  ;;  %v2779_v16 = vld [vmem:[#allocation8 + $0x110] sm:$0xff] }
  0x14   :  { %77 = vst [vmem:[#allocation10 + $0x10] sm:$0xff] %v2692_v1  ;;  %260 = vrot.lane.b32.xlu0 %v2694_v2, %s2638_s1  ;;  %s2642_s10 = smov 1   ;;  %s2643_s11 = smov 15   ;;  %v2768_v7 = vand.u32 127, %v87_v6  ;;  %v2777_v14 = vld [vmem:[#allocation8 + $0xf8] sm:$0xff]  ;;  %v2788_v22 = vld [vmem:[#allocation8 + $0xf0] sm:$0xff] }
  0x15   :  { %75 = vst [vmem:[#allocation10] sm:$0xff] %v2694_v2  ;;  %s2644_s12 = smov 16   ;;  %s2645_s13 = smov 17   ;;  %v2794_v26 = vld [vmem:[#allocation8 + $0xd0] sm:$0xff]  ;;  %v2796_v28 = vld [vmem:[#allocation8 + $0xd8] sm:$0xff]  ;;  %v2825_v45 = vld [vmem:[#allocation8 + $0x100] sm:$0xff] }
  0x16   :  { %76 = vst [vmem:[#allocation10 + $0x8] sm:$0xff] %v2705_v3  ;;  %vm268_vm0 = vcmp.lt.s32.totalorder %v2768_v7, 111  ;;  %vm243_vm1 = vcmp.lt.s32.totalorder %v2768_v7, 112  ;;  %vm218_vm2 = vcmp.lt.s32.totalorder %v2768_v7, 113  ;;  %vm193_vm3 = vcmp.lt.s32.totalorder %v2768_v7, 127  ;;  %v2807_v35 = vld [vmem:[#allocation8 + $0xb0] sm:$0xff] }
  0x17   :  { %v2811_v37 = vld [vmem:[#allocation8 + $0xb8] sm:$0xff]  ;;  %v2827_v46 = vld [vmem:[#allocation8 + $0x108] sm:$0xff]  ;;  %v2835_v51 = vld [vmem:[#allocation8 + $0xe0] sm:$0xff]  ;;  %vm164_vm4 = vcmp.lt.s32.totalorder %v2768_v7, 1  ;;  %vm139_vm5 = vcmp.lt.s32.totalorder %v2768_v7, 15  ;;  %vm114_vm6 = vcmp.lt.s32.totalorder %v2768_v7, 16 }
  0x18   :  { %v2840_v53 = vld [vmem:[#allocation8 + $0xe8] sm:$0xff]  ;;  %v2846_v57 = vld [vmem:[#allocation8 + $0xc0] sm:$0xff]  ;;  %v2861_v6 = vld [vmem:[#allocation8 + $0x70] sm:$0xff]  ;;  %vm89_vm7 = vcmp.lt.s32.totalorder %v2768_v7, 17  ;;  %s2435_s17 = sld [smem:[#allocation3 + $0x1]]  ;;  %s2647_s27 = smov [#allocation10]  }
  0x19   :  { %v2850_v59 = vld [vmem:[#allocation8 + $0xc8] sm:$0xff]  ;;  %s2440_s18 = sld [smem:[#allocation3 + $0x2]]  ;;  %s2414_s28 = sshll.u32 %s2647_s27, 4  ;;  %s2415_s28 = int_to_ptr.vmem [resolvable:$true] %s2414_s28 }
  0x1a   :  { %s2445_s19 = sld [smem:[#allocation3 + $0x3]]  ;;  %s2416_s6 = sshll.u32 %s4297_s5, 4  ;;  %s2417_s6 = int_to_ptr.hbm [resolvable:$true] %s2416_s6 }
  0x1b   :  { %241 = vrot.lane.b32.xlu2 %v2690_v0, %s2639_s4  ;;  %235 = vrot.lane.b32.xlu1 %v2694_v2, %s2639_s4  ;;  %s2450_s22 = sld [smem:[#allocation3 + $0x4]] }
  0x1c   :  { %264 = vrot.lane.b32.xlu0 %v2692_v1, %s2638_s1  ;;  %s2455_s23 = sld [smem:[#allocation3 + $0x5]] }
  0x1d   :  { %s2460_s24 = sld [smem:[#allocation3 + $0x6]] }
  0x23   :  { %216 = vrot.lane.b32.xlu2 %v2690_v0, %s2640_s8  ;;  %214 = vrot.lane.b32.xlu1 %v2692_v1, %s2640_s8 }
  0x24   :  { %210 = vrot.lane.b32.xlu0 %v2694_v2, %s2640_s8 }
  0x2b   :  { %191 = vrot.lane.b32.xlu2 %v2690_v0, %s2641_s9  ;;  %189 = vrot.lane.b32.xlu1 %v2692_v1, %s2641_s9 }
  0x2c   :  { %185 = vrot.lane.b32.xlu0 %v2694_v2, %s2641_s9 }
  0x33   :  { %158 = vrot.lane.b32.xlu2 %v2705_v3, %s2642_s10  ;;  %237 = vrot.lane.b32.xlu1 %v2705_v3, %s2639_s4 }
  0x34   :  { %262 = vrot.lane.b32.xlu0 %v2705_v3, %s2638_s1 }
  0x3b   :  { %212 = vrot.lane.b32.xlu2 %v2705_v3, %s2640_s8  ;;  %162 = vrot.lane.b32.xlu1 %v2690_v0, %s2642_s10 }
  0x3c   :  { %160 = vrot.lane.b32.xlu0 %v2692_v1, %s2642_s10 }
  0x43   :  { %137 = vrot.lane.b32.xlu2 %v2690_v0, %s2643_s11  ;;  %135 = vrot.lane.b32.xlu1 %v2692_v1, %s2643_s11 }
  0x44   :  { %133 = vrot.lane.b32.xlu0 %v2705_v3, %s2643_s11 }
  0x4b   :  { %110 = vrot.lane.b32.xlu2 %v2692_v1, %s2644_s12  ;;  %108 = vrot.lane.b32.xlu1 %v2705_v3, %s2644_s12 }
  0x4c   :  { %187 = vrot.lane.b32.xlu0 %v2705_v3, %s2641_s9 }
  0x53   :  { %83 = vrot.lane.b32.xlu2 %v2692_v1, %s2645_s13  ;;  %81 = vrot.lane.b32.xlu1 %v2705_v3, %s2645_s13 }
  0x54   :  { %112 = vrot.lane.b32.xlu0 %v2690_v0, %s2644_s12 }
  0x5b   :  { %131 = vrot.lane.b32.xlu2 %v2694_v2, %s2643_s11  ;;  %156 = vrot.lane.b32.xlu1 %v2694_v2, %s2642_s10 }
  0x5c   :  { %85 = vrot.lane.b32.xlu0 %v2690_v0, %s2645_s13 }
  0x63   :  { %79 = vrot.lane.b32.xlu1 %v2694_v2, %s2645_s13 }
  0x64   :  { %106 = vrot.lane.b32.xlu0 %v2694_v2, %s2644_s12 }
  0x6d   :  { %v2766_v4 = vpop.permute.xlu2 %239 }
  0x75   :  { %v242_v5 = vpop.permute.xlu2 %241 }
  0x76   :  { %v244_v21 = vsel %vm243_vm1, %v2766_v4, %v242_v5 }
  0x77   :  { %v254_v25 = vmul.f32 %v2788_v22, %v244_v21 }
  0x7d   :  { %v217_v8 = vpop.permute.xlu2 %216 }
  0x85   :  { %v267_v9 = vpop.permute.xlu1 %266  ;;  %v192_v19 = vpop.permute.xlu2 %191 }
  0x86   :  { %v261_v11 = vpop.permute.xlu0 %260 }
  0x87   :  { %v272_v12 = vsel %vm268_vm0, %v267_v9, %v261_v11 }
  0x88   :  { %v280_v13 = vmul.f32 %v2771_v10, %v272_v12 }
  0x8a   :  { %392 = vmatpush.msra.mxu3 %v280_v13 }
  0x8d   :  { %v236_v15 = vpop.permute.xlu1 %235  ;;  %v2804_v34 = vpop.permute.xlu2 %158 }
  0x8e   :  { %v265_v17 = vpop.permute.xlu0 %264  ;;  %v247_v18 = vsel %vm243_vm1, %v242_v5, %v236_v15 }
  0x8f   :  { %v269_v20 = vsel %vm268_vm0, %v265_v17, %v267_v9  ;;  %v255_v23 = vmul.f32 %v2777_v14, %v247_v18 }
  0x90   :  { %v279_v24 = vmul.f32 %v2779_v16, %v269_v20 }
  0x91   :  { %393 = vmatpush.msra.mxu3 %v255_v23 }
  0x92   :  { %372 = vmatpush.msra.mxu2 %v279_v24 }
  0x94   :  { %373 = vmatpush.msra.mxu2 %v254_v25 }
  0x95   :  { %v215_v27 = vpop.permute.xlu1 %214  ;;  %v213_v43 = vpop.permute.xlu2 %212 }
  0x96   :  { %v211_v29 = vpop.permute.xlu0 %210  ;;  %v219_v30 = vsel %vm218_vm2, %v215_v27, %v217_v8  ;;  %v220_v58 = vsel %vm218_vm2, %v213_v43, %v215_v27 }
  0x97   :  { %v222_v31 = vsel %vm218_vm2, %v217_v8, %v211_v29  ;;  %v229_v32 = vmul.f32 %v2794_v26, %v219_v30  ;;  %v221_v56 = vsel %vm218_vm2, %v211_v29, %v213_v43  ;;  %v228_v63 = vmul.f32 %v2850_v59, %v220_v58  ;;  %v2863_v8 = vld [vmem:[#allocation8 + $0x78] sm:$0xff]  ;;  %v2886_v29 = vld [vmem:[#allocation8 + $0x30] sm:$0xff]  ;;  %v2924_v58 = vld [vmem:[%s4294_s2] sm:$0xff] }
  0x98   :  { %v230_v33 = vmul.f32 %v2796_v28, %v222_v31  ;;  %v227_v62 = vmul.f32 %v2846_v57, %v221_v56  ;;  %v2890_v31 = vld [vmem:[#allocation8 + $0xa0] sm:$0xff] }
  0x99   :  { %374 = vmatpush.msra.mxu2 %v229_v32  ;;  %v2892_v32 = vld [vmem:[#allocation8 + $0xa8] sm:$0xff] }
  0x9a   :  { %394 = vmatpush.msra.mxu3 %v230_v33  ;;  %v69_v33 = vld [vmem:[%s4295_s3] sm:$0xff] }
  0x9d   :  { %v2809_v36 = vpop.permute.xlu1 %189 }
  0x9e   :  { %v2813_v38 = vpop.permute.xlu0 %185  ;;  %v194_v39 = vsel %vm193_vm3, %v2809_v36, %v192_v19 }
  0x9f   :  { %v197_v40 = vsel %vm193_vm3, %v192_v19, %v2813_v38  ;;  %v204_v41 = vmul.f32 %v2807_v35, %v194_v39  ;;  %v2876_v19 = vld [vmem:[#allocation8 + $0x50] sm:$0xff] }
  0xa0   :  { %v205_v42 = vmul.f32 %v2811_v37, %v197_v40 }
  0xa1   :  { %375 = vmatpush.msra.mxu2 %v204_v41  ;;  %v2646_v41 = vmov 0  }
  0xa2   :  { %395 = vmatpush.msra.mxu3 %v205_v42  ;;  %2481 = vset.pattern.permute.xlu2 %v2646_v41 }
  0xa3   :  { %376 = vmatpush.msra.mxu2 %v2692_v1  ;;  %2482 = vset.pattern.permute.xlu0 %v2646_v41 }
  0xa4   :  { %396 = vmatpush.msra.mxu3 %v2690_v0  ;;  %72 = vperm.xlu2 %2481, %v69_v33  }
  0xa5   :  { %v238_v44 = vpop.permute.xlu1 %237 }
  0xa6   :  { %v263_v47 = vpop.permute.xlu0 %262  ;;  %v246_v50 = vsel %vm243_vm1, %v236_v15, %v238_v44  ;;  %v245_v52 = vsel %vm243_vm1, %v238_v44, %v2766_v4  ;;  %v2857_v4 = vpop.permute.xlu2 %137 }
  0xa7   :  { %v271_v48 = vsel %vm268_vm0, %v261_v11, %v263_v47  ;;  %v270_v49 = vsel %vm268_vm0, %v263_v47, %v265_v17  ;;  %v252_v60 = vmul.f32 %v2835_v51, %v246_v50  ;;  %v253_v61 = vmul.f32 %v2840_v53, %v245_v52  ;;  %v2874_v17 = vld [vmem:[#allocation8 + $0x58] sm:$0xff]  ;;  %v2910_v50 = vld [vmem:[#allocation8 + $0x10] sm:$0xff] }
  0xa8   :  { %v277_v54 = vmul.f32 %v2825_v45, %v271_v48  ;;  %v278_v55 = vmul.f32 %v2827_v46, %v270_v49 }
  0xaa   :  { %332 = vmatpush.msra.mxu0 %v277_v54  ;;  %352 = vmatpush.msra.mxu1 %v278_v55 }
  0xac   :  { %333 = vmatpush.msra.mxu0 %v252_v60  ;;  %353 = vmatpush.msra.mxu1 %v253_v61 }
  0xad   :  { %v2859_v5 = vpop.permute.xlu1 %162 }
  0xae   :  { %334 = vmatpush.msra.mxu0 %v227_v62  ;;  %354 = vmatpush.msra.mxu1 %v228_v63  ;;  %v161_v9 = vpop.permute.xlu0 %160  ;;  %v111_v23 = vpop.permute.xlu2 %110  ;;  %v2929_v62 = vld [vmem:[#allocation8 + $0x60] sm:$0xff]  ;;  %v2931_v63 = vld [vmem:[#allocation8 + $0x68] sm:$0xff] }
  0xaf   :  { %v166_v11 = vsel %vm164_vm4, %v2804_v34, %v161_v9  ;;  %v165_v12 = vsel %vm164_vm4, %v161_v9, %v2859_v5 }
  0xb0   :  { %v175_v13 = vmul.f32 %v2861_v6, %v166_v11  ;;  %v176_v15 = vmul.f32 %v2863_v8, %v165_v12  ;;  %v2933_v11 = vld [vmem:[#allocation8 + $0x18] sm:$0xff] }
  0xb2   :  { %377 = vmatpush.msra.mxu2 %v175_v13  ;;  %397 = vmatpush.msra.mxu3 %v176_v15 }
  0xb5   :  { %v136_v18 = vpop.permute.xlu1 %135 }
  0xb6   :  { %v134_v20 = vpop.permute.xlu0 %133  ;;  %v140_v21 = vsel %vm139_vm5, %v136_v18, %v2857_v4  ;;  %v84_v49 = vpop.permute.xlu2 %83 }
  0xb7   :  { %v141_v24 = vsel %vm139_vm5, %v134_v20, %v136_v18  ;;  %v151_v25 = vmul.f32 %v2874_v17, %v140_v21  ;;  %v2944_v21 = vld [vmem:[#allocation8 + $0x40] sm:$0xff] }
  0xb8   :  { %v150_v27 = vmul.f32 %v2876_v19, %v141_v24  ;;  %v2948_v24 = vld [vmem:[#allocation8 + $0x48] sm:$0xff] }
  0xb9   :  { %398 = vmatpush.msra.mxu3 %v151_v25 }
  0xba   :  { %378 = vmatpush.msra.mxu2 %v150_v27 }
  0xbd   :  { %v2888_v30 = vpop.permute.xlu1 %108 }
  0xbe   :  { %v188_v39 = vpop.permute.xlu0 %187  ;;  %v116_v40 = vsel %vm114_vm6, %v2888_v30, %v111_v23  ;;  %v132_v61 = vpop.permute.xlu2 %131 }
  0xbf   :  { %v196_v42 = vsel %vm193_vm3, %v2813_v38, %v188_v39  ;;  %v195_v43 = vsel %vm193_vm3, %v188_v39, %v2809_v36  ;;  %v125_v44 = vmul.f32 %v2886_v29, %v116_v40  ;;  %v2914_v38 = vld [vmem:[#allocation8 + $0x38] sm:$0xff]  ;;  %v143_v18 = vsel %vm139_vm5, %v2857_v4, %v132_v61  ;;  %v2959_v39 = vld [vmem:[#allocation8 + $0x20] sm:$0xff]  ;;  %v2961_v40 = vld [vmem:[#allocation8 + $0x28] sm:$0xff] }
  0xc0   :  { %v202_v47 = vmul.f32 %v2890_v31, %v196_v42  ;;  %v203_v48 = vmul.f32 %v2892_v32, %v195_v43  ;;  %v148_v4 = vmul.f32 %v2944_v21, %v143_v18 }
  0xc1   :  { %379 = vmatpush.msra.mxu2 %v125_v44 }
  0xc2   :  { %335 = vmatpush.msra.mxu0 %v202_v47  ;;  %355 = vmatpush.msra.mxu1 %v203_v48  ;;  %v2970_v47 = vld [vmem:[#allocation8] sm:$0xff] }
  0xc4   :  { %336 = vmatpush.msra.mxu0 %v2694_v2  ;;  %356 = vmatpush.msra.mxu1 %v2705_v3 }
  0xc5   :  { %v82_v36 = vpop.permute.xlu1 %81 }
  0xc6   :  { %v113_v52 = vpop.permute.xlu0 %112  ;;  %v91_v54 = vsel %vm89_vm7, %v82_v36, %v84_v49 }
  0xc7   :  { %v115_v55 = vsel %vm114_vm6, %v111_v23, %v113_v52  ;;  %v100_v56 = vmul.f32 %v2910_v50, %v91_v54  ;;  %v142_v23 = vsel %vm139_vm5, %v132_v61, %v134_v20  ;;  %v410_v61 = vstv %s2435_s17 }
  0xc8   :  { %v126_v60 = vmul.f32 %v2914_v38, %v115_v55  ;;  %v149_v33 = vmul.f32 %v2948_v24, %v142_v23 }
  0xc9   :  { %380 = vmatpush.msra.mxu2 %v100_v56 }
  0xca   :  { %399 = vmatpush.msra.mxu3 %v126_v60  ;;  %2433 = vmatmul.msk.f32.vlgmr.msra.gmra.mxu2 %vm321_vm8, %v2924_v58 }
  0xcd   :  { %v157_v9 = vpop.permute.xlu1 %156 }
  0xce   :  { %v86_v12 = vpop.permute.xlu0 %85  ;;  %v168_v13 = vsel %vm164_vm4, %v2859_v5, %v157_v9  ;;  %v167_v15 = vsel %vm164_vm4, %v157_v9, %v2804_v34 }
  0xcf   :  { %v173_v25 = vmul.f32 %v2929_v62, %v168_v13  ;;  %v174_v27 = vmul.f32 %v2931_v63, %v167_v15  ;;  %v90_v5 = vsel %vm89_vm7, %v84_v49, %v86_v12  ;;  %v2974_v49 = vld [vmem:[#allocation8 + $0x8] sm:$0xff] }
  0xd0   :  { %v101_v34 = vmul.f32 %v2933_v11, %v90_v5 }
  0xd1   :  { %337 = vmatpush.msra.mxu0 %v173_v25  ;;  %357 = vmatpush.msra.mxu1 %v174_v27 }
  0xd2   :  { %400 = vmatpush.msra.mxu3 %v101_v34 }
  0xd3   :  { %338 = vmatpush.msra.mxu0 %v148_v4  ;;  %358 = vmatpush.msra.mxu1 %v149_v33 }
  0xd4   :  { %2434 = vmatmul.msk.f32.vlgmr.msra.gmra.mxu3 %vm321_vm8, %v2924_v58 }
  0xd5   :  { %v80_v20 = vpop.permute.xlu1 %79 }
  0xd6   :  { %v107_v41 = vpop.permute.xlu0 %106  ;;  %v93_v44 = vsel %vm89_vm7, %v86_v12, %v80_v20  ;;  %v92_v48 = vsel %vm89_vm7, %v80_v20, %v82_v36 }
  0xd7   :  { %v118_v42 = vsel %vm114_vm6, %v113_v52, %v107_v41  ;;  %v117_v43 = vsel %vm114_vm6, %v107_v41, %v2888_v30  ;;  %v98_v52 = vmul.f32 %v2970_v47, %v93_v44  ;;  %v99_v30 = vmul.f32 %v2974_v49, %v92_v48 }
  0xd8   :  { %v123_v54 = vmul.f32 %v2959_v39, %v118_v42  ;;  %v124_v55 = vmul.f32 %v2961_v40, %v117_v43 }
  0xda   :  { %339 = vmatpush.msra.mxu0 %v123_v54  ;;  %359 = vmatpush.msra.mxu1 %v124_v55 }
  0xdc   :  { %340 = vmatpush.msra.mxu0 %v98_v52  ;;  %360 = vmatpush.msra.mxu1 %v99_v30 }
  0xdd   :  { %2431 = vmatmul.msk.f32.vlgmr.msra.gmra.mxu0 %vm321_vm8, %v2924_v58  ;;  %2432 = vmatmul.msk.f32.vlgmr.msra.gmra.mxu1 %vm321_vm8, %v2924_v58 }
  0xfe   :  { %v2984_v36 = vpop.permute.xlu2 %72 }
 0x14d   :  { %v382_v56 = vpop.f32.mrf.mxu2 }
 0x14e   :  { %v383_v60 = vadd.f32 %v382_v56, %v2984_v36 }
 0x150   :  { %2483 = vtanh.f32 %v383_v60 }
 0x156   :  { %v2484_v9 = vpop.eup %2483 }
 0x157   :  { %v413_v12 = vmul.f32 %v2484_v9, %v410_v61  ;;  %v402_v13 = vpop.f32.mrf.mxu3 }
 0x158   :  { %v403_v15 = vadd.f32 %v402_v13, %v2984_v36 }
 0x159   :  { %v2989_v18 = vadd.f32 %v413_v12, %v2692_v1 }
 0x15a   :  { %v342_v23 = vpop.f32.mrf.mxu0  ;;  %v362_v25 = vpop.f32.mrf.mxu1  ;;  %2485 = vtanh.f32 %v403_v15 }
 0x15b   :  { %v343_v27 = vadd.f32 %v342_v23, %v2984_v36  ;;  %v363_v5 = vadd.f32 %v362_v25, %v2984_v36  ;;  %422 = vst [vmem:[#allocation10 + $0x30] sm:$0xff] %v2989_v18 }
 0x15d   :  { %2487 = vtanh.f32 %v343_v27 }
 0x15e   :  { %2489 = vtanh.f32 %v363_v5 }
 0x160   :  { %v2486_v34 = vpop.eup %2485 }
 0x161   :  { %v414_v4 = vmul.f32 %v2486_v34, %v410_v61 }
 0x163   :  { %v2488_v33 = vpop.eup %2487  ;;  %v2995_v20 = vadd.f32 %v414_v4, %v2690_v0 }
 0x164   :  { %v2490_v41 = vpop.eup %2489  ;;  %v411_v1 = vmul.f32 %v2488_v33, %v410_v61 }
 0x165   :  { %v412_v42 = vmul.f32 %v2490_v41, %v410_v61  ;;  %423 = vst [vmem:[#allocation10 + $0x38] sm:$0xff] %v2995_v20 }
 0x166   :  { %v2999_v43 = vadd.f32 %v411_v1, %v2694_v2 }
 0x167   :  { %v3002_v44 = vadd.f32 %v412_v42, %v2705_v3 }
 0x168   :  { %420 = vst [vmem:[#allocation10 + $0x20] sm:$0xff] %v2999_v43  ;;  %596 = vrot.lane.b32.xlu0 %v2999_v43, %s2638_s1 }
 0x169   :  { %421 = vst [vmem:[#allocation10 + $0x28] sm:$0xff] %v3002_v44  ;;  %498 = vrot.lane.b32.xlu2 %v3002_v44, %s2642_s10  ;;  %574 = vrot.lane.b32.xlu1 %v3002_v44, %s2639_s4 }
 0x170   :  { %572 = vrot.lane.b32.xlu0 %v2999_v43, %s2639_s4 }
 0x171   :  { %550 = vrot.lane.b32.xlu2 %v3002_v44, %s2640_s8  ;;  %450 = vrot.lane.b32.xlu1 %v3002_v44, %s2644_s12 }
 0x178   :  { %548 = vrot.lane.b32.xlu0 %v2999_v43, %s2640_s8 }
 0x179   :  { %602 = vrot.lane.b32.xlu2 %v2995_v20, %s2638_s1  ;;  %426 = vrot.lane.b32.xlu1 %v3002_v44, %s2645_s13 }
 0x180   :  { %524 = vrot.lane.b32.xlu0 %v2999_v43, %s2641_s9 }
 0x181   :  { %578 = vrot.lane.b32.xlu2 %v2995_v20, %s2639_s4  ;;  %600 = vrot.lane.b32.xlu1 %v2989_v18, %s2638_s1 }
 0x188   :  { %598 = vrot.lane.b32.xlu0 %v3002_v44, %s2638_s1 }
 0x189   :  { %554 = vrot.lane.b32.xlu2 %v2995_v20, %s2640_s8  ;;  %576 = vrot.lane.b32.xlu1 %v2989_v18, %s2639_s4 }
 0x190   :  { %474 = vrot.lane.b32.xlu0 %v3002_v44, %s2643_s11 }
 0x191   :  { %530 = vrot.lane.b32.xlu2 %v2995_v20, %s2641_s9  ;;  %552 = vrot.lane.b32.xlu1 %v2989_v18, %s2640_s8 }
 0x198   :  { %526 = vrot.lane.b32.xlu0 %v3002_v44, %s2641_s9 }
 0x199   :  { %478 = vrot.lane.b32.xlu2 %v2995_v20, %s2643_s11  ;;  %528 = vrot.lane.b32.xlu1 %v2989_v18, %s2641_s9 }
 0x1a0   :  { %500 = vrot.lane.b32.xlu0 %v2989_v18, %s2642_s10 }
 0x1a1   :  { %452 = vrot.lane.b32.xlu2 %v2989_v18, %s2644_s12  ;;  %502 = vrot.lane.b32.xlu1 %v2995_v20, %s2642_s10 }
 0x1a8   :  { %454 = vrot.lane.b32.xlu0 %v2995_v20, %s2644_s12 }
 0x1a9   :  { %428 = vrot.lane.b32.xlu2 %v2989_v18, %s2645_s13  ;;  %476 = vrot.lane.b32.xlu1 %v2989_v18, %s2643_s11 }
 0x1b0   :  { %430 = vrot.lane.b32.xlu0 %v2995_v20, %s2645_s13 }
 0x1b1   :  { %472 = vrot.lane.b32.xlu2 %v2999_v43, %s2643_s11  ;;  %496 = vrot.lane.b32.xlu1 %v2999_v43, %s2642_s10 }
 0x1b8   :  { %448 = vrot.lane.b32.xlu0 %v2999_v43, %s2644_s12 }
 0x1b9   :  { %424 = vrot.lane.b32.xlu1 %v2999_v43, %s2645_s13 }
 0x1c3   :  { %v3070_v0 = vpop.permute.xlu2 %498 }
 0x1cb   :  { %v551_v2 = vpop.permute.xlu2 %550 }
 0x1d3   :  { %v603_v3 = vpop.permute.xlu2 %602 }
 0x1da   :  { %v597_v48 = vpop.permute.xlu0 %596 }
 0x1db   :  { %v575_v54 = vpop.permute.xlu1 %574  ;;  %v607_v55 = vsel %vm268_vm0, %v603_v3, %v597_v48  ;;  %v579_v30 = vpop.permute.xlu2 %578 }
 0x1dc   :  { %v615_v52 = vmul.f32 %v607_v55, %v2771_v10 }
 0x1de   :  { %723 = vmatpush.msrb.mxu3 %v615_v52 }
 0x1e2   :  { %v573_v56 = vpop.permute.xlu0 %572 }
 0x1e3   :  { %v3075_v60 = vpop.permute.xlu1 %450  ;;  %v583_v61 = vsel %vm243_vm1, %v579_v30, %v573_v56  ;;  %v555_v12 = vpop.permute.xlu2 %554 }
 0x1e4   :  { %v591_v9 = vmul.f32 %v583_v61, %v2777_v14 }
 0x1e6   :  { %724 = vmatpush.msrb.mxu3 %v591_v9  ;;  %v582_v9 = vsel %vm243_vm1, %v573_v56, %v575_v54 }
 0x1ea   :  { %v549_v13 = vpop.permute.xlu0 %548 }
 0x1eb   :  { %v3080_v15 = vpop.permute.xlu1 %426  ;;  %v559_v23 = vsel %vm218_vm2, %v555_v12, %v549_v13  ;;  %v531_v27 = vpop.permute.xlu2 %530 }
 0x1ec   :  { %v567_v25 = vmul.f32 %v559_v23, %v2796_v28 }
 0x1ee   :  { %725 = vmatpush.msrb.mxu3 %v567_v25 }
 0x1f2   :  { %v525_v5 = vpop.permute.xlu0 %524 }
 0x1f3   :  { %v601_v34 = vpop.permute.xlu1 %600  ;;  %v535_v4 = vsel %vm193_vm3, %v531_v27, %v525_v5 }
 0x1f4   :  { %v604_v33 = vsel %vm268_vm0, %v601_v34, %v603_v3  ;;  %v543_v41 = vmul.f32 %v535_v4, %v2811_v37 }
 0x1f5   :  { %v614_v1 = vmul.f32 %v604_v33, %v2779_v16 }
 0x1f6   :  { %726 = vmatpush.msrb.mxu3 %v543_v41 }
 0x1f7   :  { %703 = vmatpush.msrb.mxu2 %v614_v1 }
 0x1f8   :  { %727 = vmatpush.msrb.mxu3 %v2995_v20 }
 0x1fa   :  { %v599_v42 = vpop.permute.xlu0 %598 }
 0x1fb   :  { %v577_v55 = vpop.permute.xlu1 %576  ;;  %v606_v52 = vsel %vm268_vm0, %v597_v48, %v599_v42  ;;  %v605_v61 = vsel %vm268_vm0, %v599_v42, %v601_v34  ;;  %v558_v48 = vsel %vm218_vm2, %v549_v13, %v551_v2  ;;  %v588_v34 = vmul.f32 %v582_v9, %v2835_v51 }
 0x1fc   :  { %v612_v3 = vmul.f32 %v606_v52, %v2825_v45  ;;  %v613_v23 = vmul.f32 %v605_v61, %v2827_v46  ;;  %v580_v25 = vsel %vm243_vm1, %v577_v55, %v579_v30  ;;  %v581_v4 = vsel %vm243_vm1, %v575_v54, %v577_v55  ;;  %v479_v30 = vpop.permute.xlu2 %478 }
 0x1fd   :  { %v590_v33 = vmul.f32 %v580_v25, %v2788_v22  ;;  %v589_v56 = vmul.f32 %v581_v4, %v2840_v53  ;;  %v564_v41 = vmul.f32 %v558_v48, %v2846_v57 }
 0x1fe   :  { %663 = vmatpush.msrb.mxu0 %v612_v3  ;;  %683 = vmatpush.msrb.mxu1 %v613_v23 }
 0x1ff   :  { %704 = vmatpush.msrb.mxu2 %v590_v33 }
 0x200   :  { %664 = vmatpush.msrb.mxu0 %v588_v34  ;;  %684 = vmatpush.msrb.mxu1 %v589_v56 }
 0x202   :  { %665 = vmatpush.msrb.mxu0 %v564_v41  ;;  %v475_v1 = vpop.permute.xlu0 %474 }
 0x203   :  { %v553_v54 = vpop.permute.xlu1 %552 }
 0x204   :  { %v557_v42 = vsel %vm218_vm2, %v551_v2, %v553_v54  ;;  %v556_v13 = vsel %vm218_vm2, %v553_v54, %v555_v12  ;;  %v453_v23 = vpop.permute.xlu2 %452 }
 0x205   :  { %v565_v55 = vmul.f32 %v557_v42, %v2850_v59  ;;  %v566_v52 = vmul.f32 %v556_v13, %v2794_v26 }
 0x207   :  { %685 = vmatpush.msrb.mxu1 %v565_v55  ;;  %705 = vmatpush.msrb.mxu2 %v566_v52 }
 0x20a   :  { %v527_v61 = vpop.permute.xlu0 %526 }
 0x20b   :  { %v529_v9 = vpop.permute.xlu1 %528  ;;  %v534_v3 = vsel %vm193_vm3, %v525_v5, %v527_v61 }
 0x20c   :  { %v540_v25 = vmul.f32 %v534_v3, %v2890_v31  ;;  %v533_v2 = vsel %vm193_vm3, %v527_v61, %v529_v9  ;;  %v532_v12 = vsel %vm193_vm3, %v529_v9, %v531_v27  ;;  %v429_v54 = vpop.permute.xlu2 %428  ;;  %v457_v61 = vsel %vm114_vm6, %v3075_v60, %v453_v23 }
 0x20d   :  { %v541_v4 = vmul.f32 %v533_v2, %v2892_v32  ;;  %v542_v33 = vmul.f32 %v532_v12, %v2807_v35  ;;  %v433_v2 = vsel %vm89_vm7, %v3080_v15, %v429_v54  ;;  %v466_v12 = vmul.f32 %v457_v61, %v2886_v29 }
 0x20e   :  { %666 = vmatpush.msrb.mxu0 %v540_v25 }
 0x20f   :  { %686 = vmatpush.msrb.mxu1 %v541_v4  ;;  %706 = vmatpush.msrb.mxu2 %v542_v33 }
 0x210   :  { %667 = vmatpush.msrb.mxu0 %v2999_v43 }
 0x211   :  { %687 = vmatpush.msrb.mxu1 %v3002_v44  ;;  %707 = vmatpush.msrb.mxu2 %v2989_v18 }
 0x212   :  { %v501_v5 = vpop.permute.xlu0 %500 }
 0x213   :  { %v503_v48 = vpop.permute.xlu1 %502  ;;  %v505_v34 = vsel %vm164_vm4, %v3070_v0, %v501_v5 }
 0x214   :  { %v514_v27 = vmul.f32 %v505_v34, %v2861_v6  ;;  %v504_v56 = vsel %vm164_vm4, %v501_v5, %v503_v48  ;;  %v473_v33 = vpop.permute.xlu2 %472  ;;  %v442_v5 = vmul.f32 %v433_v2, %v2910_v50 }
 0x215   :  { %v515_v41 = vmul.f32 %v504_v56, %v2863_v8  ;;  %v483_v56 = vsel %vm139_vm5, %v479_v30, %v473_v33 }
 0x216   :  { %708 = vmatpush.msrb.mxu2 %v514_v27 }
 0x217   :  { %728 = vmatpush.msrb.mxu3 %v515_v41 }
 0x21a   :  { %v455_v42 = vpop.permute.xlu0 %454 }
 0x21b   :  { %v477_v13 = vpop.permute.xlu1 %476  ;;  %v456_v9 = vsel %vm114_vm6, %v453_v23, %v455_v42 }
 0x21c   :  { %v481_v55 = vsel %vm139_vm5, %v475_v1, %v477_v13  ;;  %v480_v52 = vsel %vm139_vm5, %v477_v13, %v479_v30  ;;  %v467_v4 = vmul.f32 %v456_v9, %v2914_v38  ;;  %v488_v30 = vmul.f32 %v483_v56, %v2944_v21 }
 0x21d   :  { %v490_v3 = vmul.f32 %v481_v55, %v2876_v19  ;;  %v491_v25 = vmul.f32 %v480_v52, %v2874_v17  ;;  %v482_v52 = vsel %vm139_vm5, %v473_v33, %v475_v1 }
 0x21f   :  { %709 = vmatpush.msrb.mxu2 %v490_v3  ;;  %729 = vmatpush.msrb.mxu3 %v491_v25 }
 0x221   :  { %710 = vmatpush.msrb.mxu2 %v466_v12  ;;  %730 = vmatpush.msrb.mxu3 %v467_v4 }
 0x222   :  { %v431_v23 = vpop.permute.xlu0 %430 }
 0x223   :  { %v497_v34 = vpop.permute.xlu1 %496  ;;  %711 = vmatpush.msrb.mxu2 %v442_v5  ;;  %v432_v27 = vsel %vm89_vm7, %v429_v54, %v431_v23 }
 0x224   :  { %2438 = vmatmul.msk.f32.vlgmr.msrb.gmra.mxu2 %vm321_vm8, %v2924_v58  ;;  %v507_v41 = vsel %vm164_vm4, %v503_v48, %v497_v34  ;;  %v506_v13 = vsel %vm164_vm4, %v497_v34, %v3070_v0  ;;  %v443_v55 = vmul.f32 %v432_v27, %v2933_v11  ;;  %v489_v48 = vmul.f32 %v482_v52, %v2948_v24 }
 0x225   :  { %v512_v54 = vmul.f32 %v507_v41, %v2929_v62  ;;  %v513_v61 = vmul.f32 %v506_v13, %v2931_v63  ;;  %v741_v34 = vstv %s2440_s18 }
 0x226   :  { %731 = vmatpush.msrb.mxu3 %v443_v55 }
 0x227   :  { %668 = vmatpush.msrb.mxu0 %v512_v54  ;;  %688 = vmatpush.msrb.mxu1 %v513_v61 }
 0x228   :  { %2439 = vmatmul.msk.f32.vlgmr.msrb.gmra.mxu3 %vm321_vm8, %v2924_v58 }
 0x229   :  { %669 = vmatpush.msrb.mxu0 %v488_v30  ;;  %689 = vmatpush.msrb.mxu1 %v489_v48 }
 0x22a   :  { %v449_v0 = vpop.permute.xlu0 %448 }
 0x22b   :  { %v425_v9 = vpop.permute.xlu1 %424  ;;  %v459_v1 = vsel %vm114_vm6, %v455_v42, %v449_v0  ;;  %v458_v3 = vsel %vm114_vm6, %v449_v0, %v3075_v60 }
 0x22c   :  { %v464_v25 = vmul.f32 %v459_v1, %v2959_v39  ;;  %v465_v2 = vmul.f32 %v458_v3, %v2961_v40  ;;  %v435_v12 = vsel %vm89_vm7, %v431_v23, %v425_v9  ;;  %v434_v4 = vsel %vm89_vm7, %v425_v9, %v3080_v15 }
 0x22d   :  { %v440_v33 = vmul.f32 %v435_v12, %v2970_v47  ;;  %v441_v42 = vmul.f32 %v434_v4, %v2974_v49 }
 0x22e   :  { %670 = vmatpush.msrb.mxu0 %v464_v25  ;;  %690 = vmatpush.msrb.mxu1 %v465_v2 }
 0x230   :  { %671 = vmatpush.msrb.mxu0 %v440_v33  ;;  %691 = vmatpush.msrb.mxu1 %v441_v42 }
 0x231   :  { %2436 = vmatmul.msk.f32.vlgmr.msrb.gmra.mxu0 %vm321_vm8, %v2924_v58  ;;  %2437 = vmatmul.msk.f32.vlgmr.msrb.gmra.mxu1 %vm321_vm8, %v2924_v58 }
 0x2a7   :  { %v713_v60 = vpop.f32.mrf.mxu2 }
 0x2a8   :  { %v714_v5 = vadd.f32 %v713_v60, %v2984_v36 }
 0x2aa   :  { %2491 = vtanh.f32 %v714_v5 }
 0x2ab   :  { %v733_v15 = vpop.f32.mrf.mxu3 }
 0x2ac   :  { %v734_v23 = vadd.f32 %v733_v15, %v2984_v36 }
 0x2ae   :  { %2493 = vtanh.f32 %v734_v23  ;;  %v673_v27 = vpop.f32.mrf.mxu0  ;;  %v693_v56 = vpop.f32.mrf.mxu1 }
 0x2af   :  { %v674_v41 = vadd.f32 %v673_v27, %v2984_v36  ;;  %v694_v13 = vadd.f32 %v693_v56, %v2984_v36 }
 0x2b0   :  { %v2492_v55 = vpop.eup %2491 }
 0x2b1   :  { %v744_v52 = vmul.f32 %v2492_v55, %v741_v34  ;;  %2495 = vtanh.f32 %v674_v41 }
 0x2b2   :  { %2497 = vtanh.f32 %v694_v13 }
 0x2b3   :  { %v3195_v54 = vadd.f32 %v744_v52, %v2989_v18 }
 0x2b4   :  { %v2494_v61 = vpop.eup %2493 }
 0x2b5   :  { %753 = vst [vmem:[#allocation10 + $0x50] sm:$0xff] %v3195_v54  ;;  %v745_v30 = vmul.f32 %v2494_v61, %v741_v34 }
 0x2b7   :  { %v2496_v48 = vpop.eup %2495  ;;  %v3199_v0 = vadd.f32 %v745_v30, %v2995_v20 }
 0x2b8   :  { %v2498_v9 = vpop.eup %2497  ;;  %v742_v1 = vmul.f32 %v2496_v48, %v741_v34 }
 0x2b9   :  { %754 = vst [vmem:[#allocation10 + $0x58] sm:$0xff] %v3199_v0  ;;  %v743_v3 = vmul.f32 %v2498_v9, %v741_v34 }
 0x2ba   :  { %v3203_v25 = vadd.f32 %v742_v1, %v2999_v43 }
 0x2bb   :  { %v3206_v2 = vadd.f32 %v743_v3, %v3002_v44 }
 0x2bc   :  { %751 = vst [vmem:[#allocation10 + $0x40] sm:$0xff] %v3203_v25  ;;  %927 = vrot.lane.b32.xlu2 %v3203_v25, %s2638_s1 }
 0x2bd   :  { %752 = vst [vmem:[#allocation10 + $0x48] sm:$0xff] %v3206_v2  ;;  %829 = vrot.lane.b32.xlu1 %v3206_v2, %s2642_s10  ;;  %905 = vrot.lane.b32.xlu0 %v3206_v2, %s2639_s4 }
 0x2c4   :  { %903 = vrot.lane.b32.xlu2 %v3203_v25, %s2639_s4 }
 0x2c5   :  { %881 = vrot.lane.b32.xlu1 %v3206_v2, %s2640_s8  ;;  %781 = vrot.lane.b32.xlu0 %v3206_v2, %s2644_s12 }
 0x2cc   :  { %879 = vrot.lane.b32.xlu2 %v3203_v25, %s2640_s8 }
 0x2cd   :  { %933 = vrot.lane.b32.xlu1 %v3199_v0, %s2638_s1  ;;  %757 = vrot.lane.b32.xlu0 %v3206_v2, %s2645_s13 }
 0x2d4   :  { %855 = vrot.lane.b32.xlu2 %v3203_v25, %s2641_s9 }
 0x2d5   :  { %909 = vrot.lane.b32.xlu1 %v3199_v0, %s2639_s4  ;;  %931 = vrot.lane.b32.xlu0 %v3195_v54, %s2638_s1 }
 0x2dc   :  { %929 = vrot.lane.b32.xlu2 %v3206_v2, %s2638_s1 }
 0x2dd   :  { %885 = vrot.lane.b32.xlu1 %v3199_v0, %s2640_s8  ;;  %907 = vrot.lane.b32.xlu0 %v3195_v54, %s2639_s4 }
 0x2e4   :  { %805 = vrot.lane.b32.xlu2 %v3206_v2, %s2643_s11 }
 0x2e5   :  { %861 = vrot.lane.b32.xlu1 %v3199_v0, %s2641_s9  ;;  %883 = vrot.lane.b32.xlu0 %v3195_v54, %s2640_s8 }
 0x2ec   :  { %857 = vrot.lane.b32.xlu2 %v3206_v2, %s2641_s9 }
 0x2ed   :  { %809 = vrot.lane.b32.xlu1 %v3199_v0, %s2643_s11  ;;  %859 = vrot.lane.b32.xlu0 %v3195_v54, %s2641_s9 }
 0x2f4   :  { %831 = vrot.lane.b32.xlu2 %v3195_v54, %s2642_s10 }
 0x2f5   :  { %783 = vrot.lane.b32.xlu1 %v3195_v54, %s2644_s12  ;;  %833 = vrot.lane.b32.xlu0 %v3199_v0, %s2642_s10 }
 0x2fc   :  { %785 = vrot.lane.b32.xlu2 %v3199_v0, %s2644_s12 }
 0x2fd   :  { %759 = vrot.lane.b32.xlu1 %v3195_v54, %s2645_s13  ;;  %807 = vrot.lane.b32.xlu0 %v3195_v54, %s2643_s11 }
 0x304   :  { %761 = vrot.lane.b32.xlu2 %v3199_v0, %s2645_s13 }
 0x305   :  { %803 = vrot.lane.b32.xlu1 %v3203_v25, %s2643_s11  ;;  %827 = vrot.lane.b32.xlu0 %v3203_v25, %s2642_s10 }
 0x30c   :  { %779 = vrot.lane.b32.xlu2 %v3203_v25, %s2644_s12 }
 0x30d   :  { %755 = vrot.lane.b32.xlu0 %v3203_v25, %s2645_s13 }
 0x316   :  { %v928_v18 = vpop.permute.xlu2 %927 }
 0x31e   :  { %v904_v20 = vpop.permute.xlu2 %903 }
 0x326   :  { %v880_v43 = vpop.permute.xlu2 %879 }
 0x32e   :  { %v856_v44 = vpop.permute.xlu2 %855 }
 0x32f   :  { %v3274_v12 = vpop.permute.xlu1 %829  ;;  %v906_v4 = vpop.permute.xlu0 %905 }
 0x330   :  { %v913_v42 = vsel %vm243_vm1, %v904_v20, %v906_v4 }
 0x331   :  { %v919_v27 = vmul.f32 %v913_v42, %v2835_v51 }
 0x336   :  { %v930_v33 = vpop.permute.xlu2 %929 }
 0x337   :  { %v882_v60 = vpop.permute.xlu1 %881  ;;  %v3278_v5 = vpop.permute.xlu0 %781  ;;  %v937_v15 = vsel %vm268_vm0, %v928_v18, %v930_v33 }
 0x338   :  { %v943_v23 = vmul.f32 %v937_v15, %v2825_v45  ;;  %v889_v34 = vsel %vm218_vm2, %v880_v43, %v882_v60 }
 0x339   :  { %v895_v56 = vmul.f32 %v889_v34, %v2846_v57 }
 0x33a   :  { %994 = vmatpush.msra.mxu0 %v943_v23 }
 0x33c   :  { %995 = vmatpush.msra.mxu0 %v919_v27 }
 0x33e   :  { %996 = vmatpush.msra.mxu0 %v895_v56  ;;  %v3287_v41 = vpop.permute.xlu2 %805 }
 0x33f   :  { %v934_v13 = vpop.permute.xlu1 %933  ;;  %v3289_v55 = vpop.permute.xlu0 %757 }
 0x340   :  { %v938_v52 = vsel %vm268_vm0, %v934_v13, %v928_v18 }
 0x341   :  { %v946_v45 = vmul.f32 %v938_v52, %v2771_v10 }
 0x343   :  { %1054 = vmatpush.msra.mxu3 %v946_v45 }
 0x346   :  { %v858_v61 = vpop.permute.xlu2 %857 }
 0x347   :  { %v910_v30 = vpop.permute.xlu1 %909  ;;  %v932_v48 = vpop.permute.xlu0 %931  ;;  %v865_v51 = vsel %vm193_vm3, %v856_v44, %v858_v61 }
 0x348   :  { %v914_v57 = vsel %vm243_vm1, %v910_v30, %v904_v20  ;;  %v935_v9 = vsel %vm268_vm0, %v932_v48, %v934_v13  ;;  %v936_v1 = vsel %vm268_vm0, %v930_v33, %v932_v48  ;;  %v871_v3 = vmul.f32 %v865_v51, %v2890_v31 }
 0x349   :  { %v944_v10 = vmul.f32 %v936_v1, %v2827_v46  ;;  %v945_v18 = vmul.f32 %v935_v9, %v2779_v16  ;;  %v922_v42 = vmul.f32 %v914_v57, %v2777_v14 }
 0x34a   :  { %997 = vmatpush.msra.mxu0 %v871_v3 }
 0x34b   :  { %1014 = vmatpush.msra.mxu1 %v944_v10  ;;  %1034 = vmatpush.msra.mxu2 %v945_v18 }
 0x34c   :  { %1055 = vmatpush.msra.mxu3 %v922_v42  ;;  %998 = vmatpush.msra.mxu0 %v3203_v25 }
 0x34e   :  { %v832_v56 = vpop.permute.xlu2 %831 }
 0x34f   :  { %v886_v20 = vpop.permute.xlu1 %885  ;;  %v908_v15 = vpop.permute.xlu0 %907 }
 0x350   :  { %v890_v23 = vsel %vm218_vm2, %v886_v20, %v880_v43  ;;  %v911_v31 = vsel %vm243_vm1, %v908_v15, %v910_v30  ;;  %v912_v46 = vsel %vm243_vm1, %v906_v4, %v908_v15 }
 0x351   :  { %v898_v16 = vmul.f32 %v890_v23, %v2796_v28  ;;  %v920_v14 = vmul.f32 %v912_v46, %v2840_v53  ;;  %v921_v33 = vmul.f32 %v911_v31, %v2788_v22 }
 0x353   :  { %1015 = vmatpush.msra.mxu1 %v920_v14  ;;  %1035 = vmatpush.msra.mxu2 %v921_v33 }
 0x354   :  { %1056 = vmatpush.msra.mxu3 %v898_v16 }
 0x357   :  { %v862_v34 = vpop.permute.xlu1 %861  ;;  %v884_v27 = vpop.permute.xlu0 %883 }
 0x358   :  { %v866_v43 = vsel %vm193_vm3, %v862_v34, %v856_v44  ;;  %v887_v13 = vsel %vm218_vm2, %v884_v27, %v886_v20  ;;  %v888_v4 = vsel %vm218_vm2, %v882_v60, %v884_v27 }
 0x359   :  { %v874_v28 = vmul.f32 %v866_v43, %v2811_v37  ;;  %v896_v53 = vmul.f32 %v888_v4, %v2850_v59  ;;  %v897_v22 = vmul.f32 %v887_v13, %v2794_v26  ;;  %v836_v26 = vsel %vm164_vm4, %v3274_v12, %v832_v56  ;;  %v786_v59 = vpop.permute.xlu2 %785 }
 0x35a   :  { %v845_v48 = vmul.f32 %v836_v26, %v2861_v6 }
 0x35b   :  { %1016 = vmatpush.msra.mxu1 %v896_v53  ;;  %1036 = vmatpush.msra.mxu2 %v897_v22 }
 0x35c   :  { %1057 = vmatpush.msra.mxu3 %v874_v28 }
 0x35e   :  { %1058 = vmatpush.msra.mxu3 %v3199_v0 }
 0x35f   :  { %v810_v52 = vpop.permute.xlu1 %809  ;;  %v860_v45 = vpop.permute.xlu0 %859 }
 0x360   :  { %v863_v44 = vsel %vm193_vm3, %v860_v45, %v862_v34  ;;  %v864_v30 = vsel %vm193_vm3, %v858_v61, %v860_v45 }
 0x361   :  { %v872_v60 = vmul.f32 %v864_v30, %v2892_v32  ;;  %v873_v37 = vmul.f32 %v863_v44, %v2807_v35  ;;  %v762_v61 = vpop.permute.xlu2 %761 }
 0x363   :  { %1017 = vmatpush.msra.mxu1 %v872_v60  ;;  %1037 = vmatpush.msra.mxu2 %v873_v37 }
 0x365   :  { %1018 = vmatpush.msra.mxu1 %v3206_v2  ;;  %1038 = vmatpush.msra.mxu2 %v3195_v54 }
 0x367   :  { %v784_v51 = vpop.permute.xlu1 %783  ;;  %v834_v57 = vpop.permute.xlu0 %833  ;;  %1039 = vmatpush.msra.mxu2 %v845_v48 }
 0x368   :  { %v835_v32 = vsel %vm164_vm4, %v832_v56, %v834_v57  ;;  %v787_v3 = vsel %vm114_vm6, %v784_v51, %v786_v59  ;;  %v788_v6 = vsel %vm114_vm6, %v3278_v5, %v784_v51 }
 0x369   :  { %v846_v35 = vmul.f32 %v835_v32, %v2863_v8  ;;  %v797_v23 = vmul.f32 %v788_v6, %v2886_v29  ;;  %v798_v31 = vmul.f32 %v787_v3, %v2914_v38  ;;  %v3488_v6 = vld [vmem:[#allocation8 + $0x110] sm:$0xff] }
 0x36b   :  { %1059 = vmatpush.msra.mxu3 %v846_v35 }
 0x36f   :  { %v760_v9 = vpop.permute.xlu1 %759  ;;  %v808_v1 = vpop.permute.xlu0 %807 }
 0x370   :  { %v811_v10 = vsel %vm139_vm5, %v808_v1, %v810_v52  ;;  %v812_v18 = vsel %vm139_vm5, %v3287_v41, %v808_v1  ;;  %v763_v20 = vsel %vm89_vm7, %v760_v9, %v762_v61  ;;  %v764_v15 = vsel %vm89_vm7, %v3289_v55, %v760_v9 }
 0x371   :  { %v821_v8 = vmul.f32 %v812_v18, %v2876_v19  ;;  %v822_v42 = vmul.f32 %v811_v10, %v2874_v17  ;;  %v773_v46 = vmul.f32 %v764_v15, %v2910_v50  ;;  %v774_v16 = vmul.f32 %v763_v20, %v2933_v11  ;;  %v780_v17 = vpop.permute.xlu2 %779  ;;  %v3490_v10 = vld [vmem:[#allocation8 + $0x118] sm:$0xff] }
 0x373   :  { %1040 = vmatpush.msra.mxu2 %v821_v8  ;;  %1060 = vmatpush.msra.mxu3 %v822_v42 }
 0x375   :  { %1041 = vmatpush.msra.mxu2 %v797_v23  ;;  %1061 = vmatpush.msra.mxu3 %v798_v31 }
 0x377   :  { %v804_v19 = vpop.permute.xlu1 %803  ;;  %v828_v14 = vpop.permute.xlu0 %827  ;;  %1042 = vmatpush.msra.mxu2 %v773_v46  ;;  %1062 = vmatpush.msra.mxu3 %v774_v16  ;;  %v3500_v46 = vld [vmem:[#allocation8 + $0xf0] sm:$0xff]  ;;  %v3502_v16 = vld [vmem:[#allocation8 + $0xf8] sm:$0xff] }
 0x378   :  { %v813_v33 = vsel %vm139_vm5, %v804_v19, %v3287_v41  ;;  %v814_v29 = vsel %vm139_vm5, %v810_v52, %v804_v19  ;;  %v837_v50 = vsel %vm164_vm4, %v828_v14, %v3274_v12  ;;  %v838_v38 = vsel %vm164_vm4, %v834_v57, %v828_v14  ;;  %2443 = vmatmul.msk.f32.vlgmr.msra.gmra.mxu2 %vm321_vm8, %v2924_v58 }
 0x379   :  { %v843_v11 = vmul.f32 %v838_v38, %v2929_v62  ;;  %v844_v34 = vmul.f32 %v837_v50, %v2931_v63  ;;  %2444 = vmatmul.msk.f32.vlgmr.msra.gmra.mxu3 %vm321_vm8, %v2924_v58  ;;  %v789_v41 = vsel %vm114_vm6, %v780_v17, %v3278_v5  ;;  %v790_v12 = vsel %vm114_vm6, %v786_v59, %v780_v17  ;;  %v3510_v38 = vld [vmem:[#allocation8 + $0x100] sm:$0xff] }
 0x37a   :  { %v819_v27 = vmul.f32 %v814_v29, %v2944_v21  ;;  %v820_v56 = vmul.f32 %v813_v33, %v2948_v24  ;;  %v795_v62 = vmul.f32 %v790_v12, %v2959_v39  ;;  %v796_v63 = vmul.f32 %v789_v41, %v2961_v40  ;;  %v3516_v41 = vld [vmem:[#allocation8 + $0xd8] sm:$0xff] }
 0x37b   :  { %999 = vmatpush.msra.mxu0 %v843_v11  ;;  %1019 = vmatpush.msra.mxu1 %v844_v34  ;;  %v3512_v11 = vld [vmem:[#allocation8 + $0x108] sm:$0xff]  ;;  %v3514_v34 = vld [vmem:[#allocation8 + $0xd0] sm:$0xff] }
 0x37d   :  { %1000 = vmatpush.msra.mxu0 %v819_v27  ;;  %1020 = vmatpush.msra.mxu1 %v820_v56  ;;  %v3518_v27 = vld [vmem:[#allocation8 + $0xe0] sm:$0xff] }
 0x37f   :  { %v756_v43 = vpop.permute.xlu0 %755  ;;  %1001 = vmatpush.msra.mxu0 %v795_v62  ;;  %1021 = vmatpush.msra.mxu1 %v796_v63  ;;  %v3522_v62 = vld [vmem:[#allocation8 + $0xe8] sm:$0xff] }
 0x380   :  { %v765_v5 = vsel %vm89_vm7, %v756_v43, %v3289_v55  ;;  %v766_v21 = vsel %vm89_vm7, %v762_v61, %v756_v43 }
 0x381   :  { %v771_v24 = vmul.f32 %v766_v21, %v2970_v47  ;;  %v772_v13 = vmul.f32 %v765_v5, %v2974_v49  ;;  %v1072_v49 = vstv %s2445_s19 }
 0x383   :  { %1002 = vmatpush.msra.mxu0 %v771_v24  ;;  %1022 = vmatpush.msra.mxu1 %v772_v13 }
 0x384   :  { %2441 = vmatmul.msk.f32.vlgmr.msra.gmra.mxu0 %vm321_vm8, %v2924_v58  ;;  %2442 = vmatmul.msk.f32.vlgmr.msra.gmra.mxu1 %vm321_vm8, %v2924_v58 }
 0x3fb   :  { %v1044_v39 = vpop.f32.mrf.mxu2 }
 0x3fc   :  { %v1045_v40 = vadd.f32 %v1044_v39, %v2984_v36  ;;  %v1064_v55 = vpop.f32.mrf.mxu3 }
 0x3fd   :  { %v1065_v4 = vadd.f32 %v1064_v55, %v2984_v36 }
 0x3fe   :  { %2499 = vtanh.f32 %v1045_v40 }
 0x3ff   :  { %2501 = vtanh.f32 %v1065_v4  ;;  %v3538_v4 = vld [vmem:[#allocation8 + $0xc0] sm:$0xff] }
 0x401   :  { %v1004_v47 = vpop.f32.mrf.mxu0  ;;  %v1024_v28 = vpop.f32.mrf.mxu1 }
 0x402   :  { %v1005_v53 = vadd.f32 %v1004_v47, %v2984_v36  ;;  %v1025_v22 = vadd.f32 %v1024_v28, %v2984_v36  ;;  %v3542_v28 = vld [vmem:[#allocation8 + $0xc8] sm:$0xff] }
 0x404   :  { %v2500_v52 = vpop.eup %2499  ;;  %2503 = vtanh.f32 %v1005_v53 }
 0x405   :  { %v2502_v45 = vpop.eup %2501  ;;  %v1075_v58 = vmul.f32 %v2500_v52, %v1072_v49  ;;  %2505 = vtanh.f32 %v1025_v22 }
 0x406   :  { %v1076_v44 = vmul.f32 %v2502_v45, %v1072_v49 }
 0x407   :  { %v3403_v30 = vadd.f32 %v1075_v58, %v3195_v54 }
 0x408   :  { %v3406_v60 = vadd.f32 %v1076_v44, %v3199_v0 }
 0x409   :  { %1084 = vst [vmem:[#allocation10 + $0x70] sm:$0xff] %v3403_v30 }
 0x40a   :  { %v2504_v37 = vpop.eup %2503  ;;  %1085 = vst [vmem:[#allocation10 + $0x78] sm:$0xff] %v3406_v60 }
 0x40b   :  { %v2506_v26 = vpop.eup %2505  ;;  %v1073_v59 = vmul.f32 %v2504_v37, %v1072_v49  ;;  %v3552_v37 = vld [vmem:[#allocation8 + $0xb0] sm:$0xff] }
 0x40c   :  { %v1074_v48 = vmul.f32 %v2506_v26, %v1072_v49  ;;  %v3554_v26 = vld [vmem:[#allocation8 + $0xb8] sm:$0xff] }
 0x40d   :  { %v3411_v51 = vadd.f32 %v1073_v59, %v3203_v25 }
 0x40e   :  { %v3414_v57 = vadd.f32 %v1074_v48, %v3206_v2 }
 0x40f   :  { %1082 = vst [vmem:[#allocation10 + $0x60] sm:$0xff] %v3411_v51  ;;  %1258 = vrot.lane.b32.xlu1 %v3411_v51, %s2638_s1 }
 0x410   :  { %1083 = vst [vmem:[#allocation10 + $0x68] sm:$0xff] %v3414_v57  ;;  %1160 = vrot.lane.b32.xlu0 %v3414_v57, %s2642_s10  ;;  %1236 = vrot.lane.b32.xlu2 %v3414_v57, %s2639_s4 }
 0x417   :  { %1234 = vrot.lane.b32.xlu1 %v3411_v51, %s2639_s4 }
 0x418   :  { %1212 = vrot.lane.b32.xlu0 %v3414_v57, %s2640_s8  ;;  %1112 = vrot.lane.b32.xlu2 %v3414_v57, %s2644_s12 }
 0x41f   :  { %1210 = vrot.lane.b32.xlu1 %v3411_v51, %s2640_s8 }
 0x420   :  { %1264 = vrot.lane.b32.xlu0 %v3406_v60, %s2638_s1  ;;  %1088 = vrot.lane.b32.xlu2 %v3414_v57, %s2645_s13 }
 0x427   :  { %1186 = vrot.lane.b32.xlu1 %v3411_v51, %s2641_s9 }
 0x428   :  { %1240 = vrot.lane.b32.xlu0 %v3406_v60, %s2639_s4  ;;  %1262 = vrot.lane.b32.xlu2 %v3403_v30, %s2638_s1 }
 0x42f   :  { %1260 = vrot.lane.b32.xlu1 %v3414_v57, %s2638_s1 }
 0x430   :  { %1216 = vrot.lane.b32.xlu0 %v3406_v60, %s2640_s8  ;;  %1238 = vrot.lane.b32.xlu2 %v3403_v30, %s2639_s4 }
 0x437   :  { %1136 = vrot.lane.b32.xlu1 %v3414_v57, %s2643_s11 }
 0x438   :  { %1192 = vrot.lane.b32.xlu0 %v3406_v60, %s2641_s9  ;;  %1214 = vrot.lane.b32.xlu2 %v3403_v30, %s2640_s8 }
 0x43f   :  { %1188 = vrot.lane.b32.xlu1 %v3414_v57, %s2641_s9 }
 0x440   :  { %1140 = vrot.lane.b32.xlu0 %v3406_v60, %s2643_s11  ;;  %1190 = vrot.lane.b32.xlu2 %v3403_v30, %s2641_s9 }
 0x447   :  { %1162 = vrot.lane.b32.xlu1 %v3403_v30, %s2642_s10 }
 0x448   :  { %1114 = vrot.lane.b32.xlu0 %v3403_v30, %s2644_s12  ;;  %1164 = vrot.lane.b32.xlu2 %v3406_v60, %s2642_s10 }
 0x44f   :  { %1116 = vrot.lane.b32.xlu1 %v3406_v60, %s2644_s12 }
 0x450   :  { %1090 = vrot.lane.b32.xlu0 %v3403_v30, %s2645_s13  ;;  %1138 = vrot.lane.b32.xlu2 %v3403_v30, %s2643_s11 }
 0x457   :  { %1092 = vrot.lane.b32.xlu1 %v3406_v60, %s2645_s13 }
 0x458   :  { %1134 = vrot.lane.b32.xlu0 %v3411_v51, %s2643_s11  ;;  %1158 = vrot.lane.b32.xlu2 %v3411_v51, %s2642_s10 }
 0x45f   :  { %1110 = vrot.lane.b32.xlu1 %v3411_v51, %s2644_s12 }
 0x460   :  { %1086 = vrot.lane.b32.xlu2 %v3411_v51, %s2645_s13 }
 0x46a   :  { %v1237_v54 = vpop.permute.xlu2 %1236 }
 0x472   :  { %v3482_v0 = vpop.permute.xlu2 %1112 }
 0x47a   :  { %v3484_v25 = vpop.permute.xlu2 %1088 }
 0x481   :  { %v1259_v2 = vpop.permute.xlu1 %1258 }
 0x482   :  { %v3486_v32 = vpop.permute.xlu0 %1160  ;;  %v1263_v35 = vpop.permute.xlu2 %1262 }
 0x489   :  { %v1235_v61 = vpop.permute.xlu1 %1234 }
 0x48a   :  { %v1213_v9 = vpop.permute.xlu0 %1212  ;;  %v1239_v1 = vpop.permute.xlu2 %1238  ;;  %v1244_v56 = vsel %vm243_vm1, %v1235_v61, %v1237_v54 }
 0x48b   :  { %v1243_v63 = vsel %vm243_vm1, %v1237_v54, %v1239_v1  ;;  %v1250_v52 = vmul.f32 %v3518_v27, %v1244_v56  ;;  %v3594_v56 = vld [vmem:[#allocation8 + $0x78] sm:$0xff] }
 0x48c   :  { %v1251_v45 = vmul.f32 %v3522_v62, %v1243_v63 }
 0x491   :  { %v1211_v3 = vpop.permute.xlu1 %1210 }
 0x492   :  { %v1265_v18 = vpop.permute.xlu0 %1264  ;;  %v1215_v8 = vpop.permute.xlu2 %1214  ;;  %v1220_v47 = vsel %vm218_vm2, %v1211_v3, %v1213_v9 }
 0x493   :  { %v1266_v42 = vsel %vm268_vm0, %v1263_v35, %v1265_v18  ;;  %v1269_v20 = vsel %vm268_vm0, %v1265_v18, %v1259_v2  ;;  %v1219_v49 = vsel %vm218_vm2, %v1213_v9, %v1215_v8  ;;  %v1226_v58 = vmul.f32 %v3538_v4, %v1220_v47 }
 0x494   :  { %v1276_v15 = vmul.f32 %v3488_v6, %v1266_v42  ;;  %v1277_v23 = vmul.f32 %v3490_v10, %v1269_v20  ;;  %v1227_v44 = vmul.f32 %v3542_v28, %v1219_v49 }
 0x496   :  { %1365 = vmatpush.msrb.mxu2 %v1276_v15  ;;  %1385 = vmatpush.msrb.mxu3 %v1277_v23 }
 0x499   :  { %v3498_v31 = vpop.permute.xlu1 %1186 }
 0x49a   :  { %v1241_v17 = vpop.permute.xlu0 %1240  ;;  %v1191_v19 = vpop.permute.xlu2 %1190 }
 0x49b   :  { %v1242_v14 = vsel %vm243_vm1, %v1239_v1, %v1241_v17  ;;  %v1245_v33 = vsel %vm243_vm1, %v1241_v17, %v1235_v61  ;;  %v3567_v1 = vld [vmem:[#allocation8 + $0xa0] sm:$0xff] }
 0x49c   :  { %v1252_v29 = vmul.f32 %v3500_v46, %v1242_v14  ;;  %v1253_v50 = vmul.f32 %v3502_v16, %v1245_v33  ;;  %v3577_v17 = vld [vmem:[#allocation8 + $0x60] sm:$0xff] }
 0x49e   :  { %1366 = vmatpush.msrb.mxu2 %v1252_v29  ;;  %1386 = vmatpush.msrb.mxu3 %v1253_v50  ;;  %v3583_v29 = vld [vmem:[#allocation8 + $0x68] sm:$0xff] }
 0x4a1   :  { %v1261_v12 = vpop.permute.xlu1 %1260 }
 0x4a2   :  { %v1217_v43 = vpop.permute.xlu0 %1216  ;;  %v3526_v5 = vpop.permute.xlu2 %1164  ;;  %v1267_v21 = vsel %vm268_vm0, %v1261_v12, %v1263_v35  ;;  %v1268_v24 = vsel %vm268_vm0, %v1259_v2, %v1261_v12  ;;  %v3592_v12 = vld [vmem:[#allocation8 + $0x70] sm:$0xff] }
 0x4a3   :  { %v1218_v13 = vsel %vm218_vm2, %v1215_v8, %v1217_v43  ;;  %v1221_v39 = vsel %vm218_vm2, %v1217_v43, %v1211_v3  ;;  %v1274_v40 = vmul.f32 %v3510_v38, %v1268_v24  ;;  %v1275_v55 = vmul.f32 %v3512_v11, %v1267_v21  ;;  %v3569_v3 = vld [vmem:[#allocation8 + $0xa8] sm:$0xff]  ;;  %v3596_v43 = vld [vmem:[#allocation8 + $0x50] sm:$0xff]  ;;  %v3601_v24 = vld [vmem:[#allocation8 + $0x58] sm:$0xff] }
 0x4a4   :  { %v1228_v53 = vmul.f32 %v3514_v34, %v1218_v13  ;;  %v1229_v22 = vmul.f32 %v3516_v41, %v1221_v39 }
 0x4a5   :  { %1325 = vmatpush.msrb.mxu0 %v1274_v40  ;;  %1345 = vmatpush.msrb.mxu1 %v1275_v55 }
 0x4a6   :  { %1367 = vmatpush.msrb.mxu2 %v1228_v53  ;;  %1387 = vmatpush.msrb.mxu3 %v1229_v22  ;;  %v3613_v53 = vld [vmem:[#allocation8 + $0x30] sm:$0xff] }
 0x4a7   :  { %1326 = vmatpush.msrb.mxu0 %v1250_v52  ;;  %1346 = vmatpush.msrb.mxu1 %v1251_v45 }
 0x4a9   :  { %1327 = vmatpush.msrb.mxu0 %v1226_v58  ;;  %1347 = vmatpush.msrb.mxu1 %v1227_v44  ;;  %v3556_v59 = vpop.permute.xlu1 %1136  ;;  %v3623_v58 = vld [vmem:[#allocation8 + $0x10] sm:$0xff] }
 0x4aa   :  { %v1193_v48 = vpop.permute.xlu0 %1192  ;;  %v1139_v54 = vpop.permute.xlu2 %1138 }
 0x4ab   :  { %v1194_v2 = vsel %vm193_vm3, %v1191_v19, %v1193_v48  ;;  %v1197_v35 = vsel %vm193_vm3, %v1193_v48, %v3498_v31  ;;  %v1143_v21 = vsel %vm139_vm5, %v3556_v59, %v1139_v54 }
 0x4ac   :  { %v1204_v61 = vmul.f32 %v3552_v37, %v1194_v2  ;;  %v1205_v9 = vmul.f32 %v3554_v26, %v1197_v35  ;;  %v1152_v52 = vmul.f32 %v3596_v43, %v1143_v21 }
 0x4ae   :  { %1368 = vmatpush.msrb.mxu2 %v1204_v61  ;;  %1388 = vmatpush.msrb.mxu3 %v1205_v9  ;;  %v3635_v9 = vld [vmem:[%s4294_s2] sm:$0xff] }
 0x4b0   :  { %1369 = vmatpush.msrb.mxu2 %v3403_v30  ;;  %1389 = vmatpush.msrb.mxu3 %v3406_v60 }
 0x4b1   :  { %v1189_v18 = vpop.permute.xlu1 %1188 }
 0x4b2   :  { %v1141_v8 = vpop.permute.xlu0 %1140  ;;  %v1159_v42 = vpop.permute.xlu2 %1158  ;;  %v1195_v20 = vsel %vm193_vm3, %v1189_v18, %v1191_v19  ;;  %v1196_v15 = vsel %vm193_vm3, %v3498_v31, %v1189_v18  ;;  %v3639_v18 = vld [vmem:[#allocation8 + $0x18] sm:$0xff] }
 0x4b3   :  { %v1202_v23 = vmul.f32 %v3567_v1, %v1196_v15  ;;  %v1169_v14 = vsel %vm164_vm4, %v3526_v5, %v1159_v42  ;;  %v1203_v33 = vmul.f32 %v3569_v3, %v1195_v20  ;;  %v1168_v19 = vsel %vm164_vm4, %v1159_v42, %v3486_v32  ;;  %v3641_v42 = vld [vmem:[#allocation8 + $0x40] sm:$0xff]  ;;  %v3643_v20 = vld [vmem:[#allocation8 + $0x48] sm:$0xff] }
 0x4b4   :  { %v1174_v31 = vmul.f32 %v3577_v17, %v1169_v14  ;;  %v1175_v50 = vmul.f32 %v3583_v29, %v1168_v19  ;;  %v1142_v13 = vsel %vm139_vm5, %v1139_v54, %v1141_v8 }
 0x4b5   :  { %1328 = vmatpush.msrb.mxu0 %v1202_v23  ;;  %1348 = vmatpush.msrb.mxu1 %v1203_v33  ;;  %v1153_v45 = vmul.f32 %v3601_v24, %v1142_v13  ;;  %v3657_v13 = vld [vmem:[#allocation8 + $0x20] sm:$0xff] }
 0x4b7   :  { %1329 = vmatpush.msrb.mxu0 %v3411_v51  ;;  %1349 = vmatpush.msrb.mxu1 %v3414_v57 }
 0x4b9   :  { %1330 = vmatpush.msrb.mxu0 %v1174_v31  ;;  %v1163_v63 = vpop.permute.xlu1 %1162  ;;  %1350 = vmatpush.msrb.mxu1 %v1175_v50 }
 0x4ba   :  { %v1115_v39 = vpop.permute.xlu0 %1114  ;;  %v1166_v40 = vsel %vm164_vm4, %v1163_v63, %v3526_v5  ;;  %v1167_v55 = vsel %vm164_vm4, %v3486_v32, %v1163_v63  ;;  %v3621_v32 = vld [vmem:[#allocation8 + $0x38] sm:$0xff]  ;;  %v1087_v21 = vpop.permute.xlu2 %1086 }
 0x4bb   :  { %v1176_v47 = vmul.f32 %v3592_v12, %v1167_v55  ;;  %v1177_v49 = vmul.f32 %v3594_v56, %v1166_v40  ;;  %v1119_v22 = vsel %vm114_vm6, %v3482_v0, %v1115_v39  ;;  %v3661_v40 = vld [vmem:[#allocation8 + $0x8] sm:$0xff]  ;;  %v3666_v55 = vld [vmem:[#allocation8] sm:$0xff] }
 0x4bc   :  { %v1128_v5 = vmul.f32 %v3613_v53, %v1119_v22 }
 0x4bd   :  { %1370 = vmatpush.msrb.mxu2 %v1176_v47  ;;  %1390 = vmatpush.msrb.mxu3 %v1177_v49 }
 0x4bf   :  { %1371 = vmatpush.msrb.mxu2 %v1152_v52  ;;  %1391 = vmatpush.msrb.mxu3 %v1153_v45 }
 0x4c1   :  { %1372 = vmatpush.msrb.mxu2 %v1128_v5  ;;  %v1117_v44 = vpop.permute.xlu1 %1116 }
 0x4c2   :  { %v1091_v48 = vpop.permute.xlu0 %1090  ;;  %v1118_v54 = vsel %vm114_vm6, %v1115_v39, %v1117_v44  ;;  %v3659_v39 = vld [vmem:[#allocation8 + $0x28] sm:$0xff] }
 0x4c3   :  { %v1095_v2 = vsel %vm89_vm7, %v3484_v25, %v1091_v48  ;;  %v1129_v35 = vmul.f32 %v3621_v32, %v1118_v54 }
 0x4c4   :  { %v1104_v61 = vmul.f32 %v3623_v58, %v1095_v2 }
 0x4c5   :  { %1392 = vmatpush.msrb.mxu3 %v1129_v35 }
 0x4c6   :  { %1373 = vmatpush.msrb.mxu2 %v1104_v61 }
 0x4c7   :  { %2448 = vmatmul.msk.f32.vlgmr.msrb.gmra.mxu2 %vm321_vm8, %v3635_v9 }
 0x4c9   :  { %v1093_v15 = vpop.permute.xlu1 %1092 }
 0x4ca   :  { %v1135_v23 = vpop.permute.xlu0 %1134  ;;  %v1094_v14 = vsel %vm89_vm7, %v1091_v48, %v1093_v15  ;;  %v1097_v47 = vsel %vm89_vm7, %v1093_v15, %v1087_v21  ;;  %v1403_v48 = vstv %s2450_s22 }
 0x4cb   :  { %v1144_v33 = vsel %vm139_vm5, %v1135_v23, %v3556_v59  ;;  %v1145_v19 = vsel %vm139_vm5, %v1141_v8, %v1135_v23  ;;  %v1105_v31 = vmul.f32 %v3639_v18, %v1094_v14  ;;  %v1096_v8 = vsel %vm89_vm7, %v1087_v21, %v3484_v25 }
 0x4cc   :  { %v1150_v50 = vmul.f32 %v3641_v42, %v1145_v19  ;;  %v1151_v63 = vmul.f32 %v3643_v20, %v1144_v33  ;;  %v1103_v5 = vmul.f32 %v3661_v40, %v1096_v8  ;;  %v1102_v25 = vmul.f32 %v3666_v55, %v1097_v47 }
 0x4cd   :  { %1393 = vmatpush.msrb.mxu3 %v1105_v31 }
 0x4ce   :  { %1331 = vmatpush.msrb.mxu0 %v1150_v50  ;;  %1351 = vmatpush.msrb.mxu1 %v1151_v63 }
 0x4cf   :  { %2449 = vmatmul.msk.f32.vlgmr.msrb.gmra.mxu3 %vm321_vm8, %v3635_v9 }
 0x4d1   :  { %v1111_v59 = vpop.permute.xlu1 %1110 }
 0x4d2   :  { %v1120_v49 = vsel %vm114_vm6, %v1111_v59, %v3482_v0  ;;  %v1121_v22 = vsel %vm114_vm6, %v1117_v44, %v1111_v59 }
 0x4d3   :  { %v1126_v52 = vmul.f32 %v3657_v13, %v1121_v22  ;;  %v1127_v45 = vmul.f32 %v3659_v39, %v1120_v49 }
 0x4d5   :  { %1332 = vmatpush.msrb.mxu0 %v1126_v52  ;;  %1352 = vmatpush.msrb.mxu1 %v1127_v45 }
 0x4d7   :  { %1333 = vmatpush.msrb.mxu0 %v1102_v25  ;;  %1353 = vmatpush.msrb.mxu1 %v1103_v5 }
 0x4d8   :  { %2446 = vmatmul.msk.f32.vlgmr.msrb.gmra.mxu0 %vm321_vm8, %v3635_v9  ;;  %2447 = vmatmul.msk.f32.vlgmr.msrb.gmra.mxu1 %vm321_vm8, %v3635_v9 }
 0x54a   :  { %v1375_v0 = vpop.f32.mrf.mxu2 }
 0x54b   :  { %v1376_v44 = vadd.f32 %v1375_v0, %v2984_v36 }
 0x54d   :  { %2507 = vtanh.f32 %v1376_v44 }
 0x552   :  { %v1395_v54 = vpop.f32.mrf.mxu3 }
 0x553   :  { %v2508_v2 = vpop.eup %2507  ;;  %v1396_v35 = vadd.f32 %v1395_v54, %v2984_v36 }
 0x554   :  { %v1406_v61 = vmul.f32 %v2508_v2, %v1403_v48 }
 0x555   :  { %2509 = vtanh.f32 %v1396_v35  ;;  %v1335_v15 = vpop.f32.mrf.mxu0  ;;  %v1355_v23 = vpop.f32.mrf.mxu1 }
 0x556   :  { %v3686_v14 = vadd.f32 %v1406_v61, %v3403_v30  ;;  %v1336_v33 = vadd.f32 %v1335_v15, %v2984_v36  ;;  %v1356_v19 = vadd.f32 %v1355_v23, %v2984_v36 }
 0x558   :  { %1415 = vst [vmem:[#allocation10 + $0x90] sm:$0xff] %v3686_v14  ;;  %2511 = vtanh.f32 %v1336_v33 }
 0x559   :  { %2513 = vtanh.f32 %v1356_v19 }
 0x55b   :  { %v2510_v31 = vpop.eup %2509 }
 0x55c   :  { %v1407_v50 = vmul.f32 %v2510_v31, %v1403_v48 }
 0x55e   :  { %v2512_v63 = vpop.eup %2511  ;;  %v3692_v21 = vadd.f32 %v1407_v50, %v3406_v60 }
 0x55f   :  { %v2514_v59 = vpop.eup %2513  ;;  %v1404_v8 = vmul.f32 %v2512_v63, %v1403_v48 }
 0x560   :  { %1416 = vst [vmem:[#allocation10 + $0x98] sm:$0xff] %v3692_v21  ;;  %v1405_v30 = vmul.f32 %v2514_v59, %v1403_v48 }
 0x561   :  { %v3696_v47 = vadd.f32 %v1404_v8, %v3411_v51 }
 0x562   :  { %v3699_v49 = vadd.f32 %v1405_v30, %v3414_v57 }
 0x563   :  { %1413 = vst [vmem:[#allocation10 + $0x80] sm:$0xff] %v3696_v47  ;;  %1589 = vrot.lane.b32.xlu0 %v3696_v47, %s2638_s1 }
 0x564   :  { %1414 = vst [vmem:[#allocation10 + $0x88] sm:$0xff] %v3699_v49  ;;  %1491 = vrot.lane.b32.xlu2 %v3699_v49, %s2642_s10  ;;  %1567 = vrot.lane.b32.xlu1 %v3699_v49, %s2639_s4 }
 0x56b   :  { %1565 = vrot.lane.b32.xlu0 %v3696_v47, %s2639_s4 }
 0x56c   :  { %1543 = vrot.lane.b32.xlu2 %v3699_v49, %s2640_s8  ;;  %1443 = vrot.lane.b32.xlu1 %v3699_v49, %s2644_s12 }
 0x573   :  { %1541 = vrot.lane.b32.xlu0 %v3696_v47, %s2640_s8 }
 0x574   :  { %1595 = vrot.lane.b32.xlu2 %v3692_v21, %s2638_s1  ;;  %1419 = vrot.lane.b32.xlu1 %v3699_v49, %s2645_s13 }
 0x57b   :  { %1517 = vrot.lane.b32.xlu0 %v3696_v47, %s2641_s9 }
 0x57c   :  { %1571 = vrot.lane.b32.xlu2 %v3692_v21, %s2639_s4  ;;  %1593 = vrot.lane.b32.xlu1 %v3686_v14, %s2638_s1 }
 0x583   :  { %1591 = vrot.lane.b32.xlu0 %v3699_v49, %s2638_s1 }
 0x584   :  { %1547 = vrot.lane.b32.xlu2 %v3692_v21, %s2640_s8  ;;  %1569 = vrot.lane.b32.xlu1 %v3686_v14, %s2639_s4 }
 0x58b   :  { %1467 = vrot.lane.b32.xlu0 %v3699_v49, %s2643_s11 }
 0x58c   :  { %1523 = vrot.lane.b32.xlu2 %v3692_v21, %s2641_s9  ;;  %1545 = vrot.lane.b32.xlu1 %v3686_v14, %s2640_s8 }
 0x593   :  { %1519 = vrot.lane.b32.xlu0 %v3699_v49, %s2641_s9 }
 0x594   :  { %1471 = vrot.lane.b32.xlu2 %v3692_v21, %s2643_s11  ;;  %1521 = vrot.lane.b32.xlu1 %v3686_v14, %s2641_s9 }
 0x59b   :  { %1493 = vrot.lane.b32.xlu0 %v3686_v14, %s2642_s10 }
 0x59c   :  { %1445 = vrot.lane.b32.xlu2 %v3686_v14, %s2644_s12  ;;  %1495 = vrot.lane.b32.xlu1 %v3692_v21, %s2642_s10 }
 0x5a3   :  { %1447 = vrot.lane.b32.xlu0 %v3692_v21, %s2644_s12 }
 0x5a4   :  { %1421 = vrot.lane.b32.xlu2 %v3686_v14, %s2645_s13  ;;  %1469 = vrot.lane.b32.xlu1 %v3686_v14, %s2643_s11 }
 0x5ab   :  { %1423 = vrot.lane.b32.xlu0 %v3692_v21, %s2645_s13 }
 0x5ac   :  { %1465 = vrot.lane.b32.xlu2 %v3696_v47, %s2643_s11  ;;  %1489 = vrot.lane.b32.xlu1 %v3696_v47, %s2642_s10 }
 0x5b3   :  { %1441 = vrot.lane.b32.xlu0 %v3696_v47, %s2644_s12 }
 0x5b4   :  { %1417 = vrot.lane.b32.xlu1 %v3696_v47, %s2645_s13 }
 0x5be   :  { %v3767_v60 = vpop.permute.xlu2 %1491 }
 0x5c6   :  { %v1544_v51 = vpop.permute.xlu2 %1543 }
 0x5ce   :  { %v1596_v57 = vpop.permute.xlu2 %1595 }
 0x5d5   :  { %v1590_v22 = vpop.permute.xlu0 %1589 }
 0x5d6   :  { %v1600_v52 = vsel %vm268_vm0, %v1596_v57, %v1590_v22  ;;  %v1568_v45 = vpop.permute.xlu1 %1567  ;;  %v1572_v25 = vpop.permute.xlu2 %1571 }
 0x5d7   :  { %v1608_v5 = vmul.f32 %v1600_v52, %v3490_v10 }
 0x5d9   :  { %1716 = vmatpush.msra.mxu3 %v1608_v5 }
 0x5dd   :  { %v1566_v0 = vpop.permute.xlu0 %1565 }
 0x5de   :  { %v1576_v44 = vsel %vm243_vm1, %v1572_v25, %v1566_v0  ;;  %v3774_v48 = vpop.permute.xlu1 %1443  ;;  %v1548_v2 = vpop.permute.xlu2 %1547  ;;  %v1575_v52 = vsel %vm243_vm1, %v1566_v0, %v1568_v45 }
 0x5df   :  { %v1584_v54 = vmul.f32 %v1576_v44, %v3502_v16 }
 0x5e1   :  { %1717 = vmatpush.msra.mxu3 %v1584_v54 }
 0x5e5   :  { %v1542_v35 = vpop.permute.xlu0 %1541 }
 0x5e6   :  { %v1552_v61 = vsel %vm218_vm2, %v1548_v2, %v1542_v35  ;;  %v3779_v15 = vpop.permute.xlu1 %1419  ;;  %v1524_v33 = vpop.permute.xlu2 %1523 }
 0x5e7   :  { %v1560_v23 = vmul.f32 %v1552_v61, %v3516_v41 }
 0x5e9   :  { %1718 = vmatpush.msra.mxu3 %v1560_v23 }
 0x5ed   :  { %v1518_v19 = vpop.permute.xlu0 %1517 }
 0x5ee   :  { %v1528_v31 = vsel %vm193_vm3, %v1524_v33, %v1518_v19  ;;  %v1594_v50 = vpop.permute.xlu1 %1593 }
 0x5ef   :  { %v1536_v63 = vmul.f32 %v1528_v31, %v3554_v26  ;;  %v1597_v59 = vsel %vm268_vm0, %v1594_v50, %v1596_v57  ;;  %v1551_v31 = vsel %vm218_vm2, %v1542_v35, %v1544_v51 }
 0x5f0   :  { %v1607_v8 = vmul.f32 %v1597_v59, %v3488_v6 }
 0x5f1   :  { %1719 = vmatpush.msra.mxu3 %v1536_v63 }
 0x5f2   :  { %1696 = vmatpush.msra.mxu2 %v1607_v8 }
 0x5f3   :  { %1720 = vmatpush.msra.mxu3 %v3692_v21 }
 0x5f5   :  { %v1592_v30 = vpop.permute.xlu0 %1591 }
 0x5f6   :  { %v1570_v5 = vpop.permute.xlu1 %1569  ;;  %v1598_v44 = vsel %vm268_vm0, %v1592_v30, %v1594_v50  ;;  %v1599_v54 = vsel %vm268_vm0, %v1590_v22, %v1592_v30  ;;  %v1581_v50 = vmul.f32 %v1575_v52, %v3518_v27 }
 0x5f7   :  { %v1573_v57 = vsel %vm243_vm1, %v1570_v5, %v1572_v25  ;;  %v1574_v61 = vsel %vm243_vm1, %v1568_v45, %v1570_v5  ;;  %v1605_v23 = vmul.f32 %v1599_v54, %v3510_v38  ;;  %v1606_v63 = vmul.f32 %v1598_v44, %v3512_v11  ;;  %v1472_v45 = vpop.permute.xlu2 %1471 }
 0x5f8   :  { %v1583_v0 = vmul.f32 %v1573_v57, %v3500_v46  ;;  %v1582_v22 = vmul.f32 %v1574_v61, %v3522_v62  ;;  %v1557_v25 = vmul.f32 %v1551_v31, %v3538_v4 }
 0x5f9   :  { %1656 = vmatpush.msra.mxu0 %v1605_v23  ;;  %1676 = vmatpush.msra.mxu1 %v1606_v63 }
 0x5fa   :  { %1697 = vmatpush.msra.mxu2 %v1583_v0 }
 0x5fb   :  { %1657 = vmatpush.msra.mxu0 %v1581_v50  ;;  %1677 = vmatpush.msra.mxu1 %v1582_v22 }
 0x5fd   :  { %1658 = vmatpush.msra.mxu0 %v1557_v25  ;;  %v1468_v59 = vpop.permute.xlu0 %1467 }
 0x5fe   :  { %v1546_v8 = vpop.permute.xlu1 %1545 }
 0x5ff   :  { %v1549_v35 = vsel %vm218_vm2, %v1546_v8, %v1548_v2  ;;  %v1550_v30 = vsel %vm218_vm2, %v1544_v51, %v1546_v8  ;;  %v1446_v61 = vpop.permute.xlu2 %1445 }
 0x600   :  { %v1558_v52 = vmul.f32 %v1550_v30, %v3542_v28  ;;  %v1559_v5 = vmul.f32 %v1549_v35, %v3514_v34 }
 0x602   :  { %1678 = vmatpush.msra.mxu1 %v1558_v52  ;;  %1698 = vmatpush.msra.mxu2 %v1559_v5  ;;  %v1450_v52 = vsel %vm114_vm6, %v3774_v48, %v1446_v61 }
 0x605   :  { %v1520_v44 = vpop.permute.xlu0 %1519 }
 0x606   :  { %v1522_v54 = vpop.permute.xlu1 %1521  ;;  %v1527_v57 = vsel %vm193_vm3, %v1518_v19, %v1520_v44 }
 0x607   :  { %v1525_v23 = vsel %vm193_vm3, %v1522_v54, %v1524_v33  ;;  %v1526_v2 = vsel %vm193_vm3, %v1520_v44, %v1522_v54  ;;  %v1533_v31 = vmul.f32 %v1527_v57, %v3567_v1  ;;  %v1422_v8 = vpop.permute.xlu2 %1421 }
 0x608   :  { %v1535_v51 = vmul.f32 %v1525_v23, %v3552_v37  ;;  %v1534_v0 = vmul.f32 %v1526_v2, %v3569_v3  ;;  %v1426_v2 = vsel %vm89_vm7, %v3779_v15, %v1422_v8 }
 0x609   :  { %1659 = vmatpush.msra.mxu0 %v1533_v31 }
 0x60a   :  { %1699 = vmatpush.msra.mxu2 %v1535_v51  ;;  %1679 = vmatpush.msra.mxu1 %v1534_v0  ;;  %v1459_v51 = vmul.f32 %v1450_v52, %v3613_v53 }
 0x60b   :  { %1660 = vmatpush.msra.mxu0 %v3696_v47 }
 0x60c   :  { %1700 = vmatpush.msra.mxu2 %v3686_v14  ;;  %1680 = vmatpush.msra.mxu1 %v3699_v49 }
 0x60d   :  { %v1494_v19 = vpop.permute.xlu0 %1493 }
 0x60e   :  { %v1496_v33 = vpop.permute.xlu1 %1495  ;;  %v1498_v63 = vsel %vm164_vm4, %v3767_v60, %v1494_v19 }
 0x60f   :  { %v1497_v50 = vsel %vm164_vm4, %v1494_v19, %v1496_v33  ;;  %v1507_v22 = vmul.f32 %v1498_v63, %v3592_v12  ;;  %v1466_v0 = vpop.permute.xlu2 %1465  ;;  %v1435_v19 = vmul.f32 %v1426_v2, %v3623_v58 }
 0x610   :  { %v1508_v25 = vmul.f32 %v1497_v50, %v3594_v56  ;;  %v1475_v63 = vsel %vm139_vm5, %v1466_v0, %v1468_v59 }
 0x611   :  { %1701 = vmatpush.msra.mxu2 %v1507_v22 }
 0x612   :  { %1721 = vmatpush.msra.mxu3 %v1508_v25  ;;  %v1476_v25 = vsel %vm139_vm5, %v1472_v45, %v1466_v0 }
 0x615   :  { %v1448_v35 = vpop.permute.xlu0 %1447 }
 0x616   :  { %v1470_v30 = vpop.permute.xlu1 %1469  ;;  %v1449_v54 = vsel %vm114_vm6, %v1446_v61, %v1448_v35 }
 0x617   :  { %v1473_v5 = vsel %vm139_vm5, %v1470_v30, %v1472_v45  ;;  %v1474_v44 = vsel %vm139_vm5, %v1468_v59, %v1470_v30  ;;  %v1460_v31 = vmul.f32 %v1449_v54, %v3621_v32  ;;  %v1482_v45 = vmul.f32 %v1475_v63, %v3643_v20 }
 0x618   :  { %v1483_v57 = vmul.f32 %v1474_v44, %v3596_v43  ;;  %v1484_v23 = vmul.f32 %v1473_v5, %v3601_v24  ;;  %v1734_v63 = vstv %s2455_s23 }
 0x61a   :  { %1702 = vmatpush.msra.mxu2 %v1483_v57  ;;  %1722 = vmatpush.msra.mxu3 %v1484_v23 }
 0x61c   :  { %1703 = vmatpush.msra.mxu2 %v1459_v51  ;;  %1723 = vmatpush.msra.mxu3 %v1460_v31 }
 0x61d   :  { %v1424_v61 = vpop.permute.xlu0 %1423 }
 0x61e   :  { %v1490_v50 = vpop.permute.xlu1 %1489  ;;  %1704 = vmatpush.msra.mxu2 %v1435_v19  ;;  %v1425_v22 = vsel %vm89_vm7, %v1422_v8, %v1424_v61  ;;  %v1481_v8 = vmul.f32 %v1476_v25, %v3641_v42 }
 0x61f   :  { %v1499_v30 = vsel %vm164_vm4, %v1490_v50, %v3767_v60  ;;  %v1500_v52 = vsel %vm164_vm4, %v1496_v33, %v1490_v50  ;;  %v1436_v5 = vmul.f32 %v1425_v22, %v3639_v18  ;;  %2453 = vmatmul.msk.f32.vlgmr.msra.gmra.mxu2 %vm321_vm8, %v3635_v9 }
 0x620   :  { %v1505_v59 = vmul.f32 %v1500_v52, %v3577_v17  ;;  %v1506_v44 = vmul.f32 %v1499_v30, %v3583_v29 }
 0x621   :  { %1724 = vmatpush.msra.mxu3 %v1436_v5 }
 0x622   :  { %1661 = vmatpush.msra.mxu0 %v1505_v59  ;;  %1681 = vmatpush.msra.mxu1 %v1506_v44 }
 0x623   :  { %2454 = vmatmul.msk.f32.vlgmr.msra.gmra.mxu3 %vm321_vm8, %v3635_v9 }
 0x624   :  { %1662 = vmatpush.msra.mxu0 %v1481_v8  ;;  %1682 = vmatpush.msra.mxu1 %v1482_v45 }
 0x625   :  { %v1442_v60 = vpop.permute.xlu0 %1441 }
 0x626   :  { %v1418_v33 = vpop.permute.xlu1 %1417  ;;  %v1451_v54 = vsel %vm114_vm6, %v1442_v60, %v3774_v48  ;;  %v1452_v57 = vsel %vm114_vm6, %v1448_v35, %v1442_v60 }
 0x627   :  { %v1427_v23 = vsel %vm89_vm7, %v1418_v33, %v3779_v15  ;;  %v1428_v2 = vsel %vm89_vm7, %v1424_v61, %v1418_v33  ;;  %v1457_v51 = vmul.f32 %v1452_v57, %v3657_v13  ;;  %v1458_v31 = vmul.f32 %v1451_v54, %v3659_v39 }
 0x628   :  { %v1433_v0 = vmul.f32 %v1428_v2, %v3666_v55  ;;  %v1434_v19 = vmul.f32 %v1427_v23, %v3661_v40 }
 0x629   :  { %1663 = vmatpush.msra.mxu0 %v1457_v51  ;;  %1683 = vmatpush.msra.mxu1 %v1458_v31 }
 0x62b   :  { %1664 = vmatpush.msra.mxu0 %v1433_v0  ;;  %1684 = vmatpush.msra.mxu1 %v1434_v19 }
 0x62c   :  { %2451 = vmatmul.msk.f32.vlgmr.msra.gmra.mxu0 %vm321_vm8, %v3635_v9  ;;  %2452 = vmatmul.msk.f32.vlgmr.msra.gmra.mxu1 %vm321_vm8, %v3635_v9 }
 0x6a2   :  { %v1706_v48 = vpop.f32.mrf.mxu2 }
 0x6a3   :  { %v1707_v15 = vadd.f32 %v1706_v48, %v2984_v36 }
 0x6a5   :  { %2515 = vtanh.f32 %v1707_v15 }
 0x6a6   :  { %v1726_v35 = vpop.f32.mrf.mxu3 }
 0x6a7   :  { %v1727_v61 = vadd.f32 %v1726_v35, %v2984_v36 }
 0x6a9   :  { %2517 = vtanh.f32 %v1727_v61  ;;  %v1666_v50 = vpop.f32.mrf.mxu0  ;;  %v1686_v22 = vpop.f32.mrf.mxu1 }
 0x6aa   :  { %v1667_v25 = vadd.f32 %v1666_v50, %v2984_v36  ;;  %v1687_v30 = vadd.f32 %v1686_v22, %v2984_v36 }
 0x6ab   :  { %v2516_v52 = vpop.eup %2515 }
 0x6ac   :  { %v1737_v5 = vmul.f32 %v2516_v52, %v1734_v63  ;;  %2519 = vtanh.f32 %v1667_v25 }
 0x6ad   :  { %2521 = vtanh.f32 %v1687_v30 }
 0x6ae   :  { %v3892_v59 = vadd.f32 %v1737_v5, %v3686_v14 }
 0x6af   :  { %v2518_v44 = vpop.eup %2517 }
 0x6b0   :  { %1746 = vst [vmem:[#allocation10 + $0xb0] sm:$0xff] %v3892_v59  ;;  %v1738_v8 = vmul.f32 %v2518_v44, %v1734_v63 }
 0x6b2   :  { %v2520_v45 = vpop.eup %2519  ;;  %v3896_v60 = vadd.f32 %v1738_v8, %v3692_v21 }
 0x6b3   :  { %v2522_v33 = vpop.eup %2521  ;;  %v1735_v54 = vmul.f32 %v2520_v45, %v1734_v63 }
 0x6b4   :  { %1747 = vst [vmem:[#allocation10 + $0xb8] sm:$0xff] %v3896_v60  ;;  %v1736_v57 = vmul.f32 %v2522_v33, %v1734_v63 }
 0x6b5   :  { %v3900_v23 = vadd.f32 %v1735_v54, %v3696_v47 }
 0x6b6   :  { %v3903_v2 = vadd.f32 %v1736_v57, %v3699_v49 }
 0x6b7   :  { %1744 = vst [vmem:[#allocation10 + $0xa0] sm:$0xff] %v3900_v23  ;;  %1920 = vrot.lane.b32.xlu2 %v3900_v23, %s2638_s1 }
 0x6b8   :  { %1745 = vst [vmem:[#allocation10 + $0xa8] sm:$0xff] %v3903_v2  ;;  %1822 = vrot.lane.b32.xlu1 %v3903_v2, %s2642_s10  ;;  %1898 = vrot.lane.b32.xlu0 %v3903_v2, %s2639_s4 }
 0x6bf   :  { %1896 = vrot.lane.b32.xlu2 %v3900_v23, %s2639_s4 }
 0x6c0   :  { %1874 = vrot.lane.b32.xlu1 %v3903_v2, %s2640_s8  ;;  %1774 = vrot.lane.b32.xlu0 %v3903_v2, %s2644_s12 }
 0x6c7   :  { %1872 = vrot.lane.b32.xlu2 %v3900_v23, %s2640_s8 }
 0x6c8   :  { %1926 = vrot.lane.b32.xlu1 %v3896_v60, %s2638_s1  ;;  %1750 = vrot.lane.b32.xlu0 %v3903_v2, %s2645_s13 }
 0x6cf   :  { %1848 = vrot.lane.b32.xlu2 %v3900_v23, %s2641_s9 }
 0x6d0   :  { %1902 = vrot.lane.b32.xlu1 %v3896_v60, %s2639_s4  ;;  %1924 = vrot.lane.b32.xlu0 %v3892_v59, %s2638_s1 }
 0x6d7   :  { %1922 = vrot.lane.b32.xlu2 %v3903_v2, %s2638_s1 }
 0x6d8   :  { %1878 = vrot.lane.b32.xlu1 %v3896_v60, %s2640_s8  ;;  %1900 = vrot.lane.b32.xlu0 %v3892_v59, %s2639_s4 }
 0x6df   :  { %1798 = vrot.lane.b32.xlu2 %v3903_v2, %s2643_s11 }
 0x6e0   :  { %1854 = vrot.lane.b32.xlu1 %v3896_v60, %s2641_s9  ;;  %1876 = vrot.lane.b32.xlu0 %v3892_v59, %s2640_s8 }
 0x6e7   :  { %1850 = vrot.lane.b32.xlu2 %v3903_v2, %s2641_s9 }
 0x6e8   :  { %1802 = vrot.lane.b32.xlu1 %v3896_v60, %s2643_s11  ;;  %1852 = vrot.lane.b32.xlu0 %v3892_v59, %s2641_s9 }
 0x6ef   :  { %1824 = vrot.lane.b32.xlu2 %v3892_v59, %s2642_s10 }
 0x6f0   :  { %1776 = vrot.lane.b32.xlu1 %v3892_v59, %s2644_s12  ;;  %1826 = vrot.lane.b32.xlu0 %v3896_v60, %s2642_s10 }
 0x6f7   :  { %1778 = vrot.lane.b32.xlu2 %v3896_v60, %s2644_s12 }
 0x6f8   :  { %1752 = vrot.lane.b32.xlu1 %v3892_v59, %s2645_s13  ;;  %1800 = vrot.lane.b32.xlu0 %v3892_v59, %s2643_s11 }
 0x6ff   :  { %1754 = vrot.lane.b32.xlu2 %v3896_v60, %s2645_s13 }
 0x700   :  { %1796 = vrot.lane.b32.xlu1 %v3900_v23, %s2643_s11  ;;  %1820 = vrot.lane.b32.xlu0 %v3900_v23, %s2642_s10 }
 0x707   :  { %1772 = vrot.lane.b32.xlu2 %v3900_v23, %s2644_s12 }
 0x708   :  { %1748 = vrot.lane.b32.xlu0 %v3900_v23, %s2645_s13 }
 0x711   :  { %v1921_v14 = vpop.permute.xlu2 %1920 }
 0x719   :  { %v1897_v21 = vpop.permute.xlu2 %1896 }
 0x721   :  { %v1873_v47 = vpop.permute.xlu2 %1872 }
 0x729   :  { %v1849_v49 = vpop.permute.xlu2 %1848 }
 0x72a   :  { %v3971_v51 = vpop.permute.xlu1 %1822  ;;  %v1899_v31 = vpop.permute.xlu0 %1898 }
 0x72b   :  { %v1906_v19 = vsel %vm243_vm1, %v1897_v21, %v1899_v31 }
 0x72c   :  { %v1912_v50 = vmul.f32 %v1906_v19, %v3518_v27 }
 0x731   :  { %v1923_v0 = vpop.permute.xlu2 %1922 }
 0x732   :  { %v1875_v48 = vpop.permute.xlu1 %1874  ;;  %v3975_v15 = vpop.permute.xlu0 %1774  ;;  %v1930_v35 = vsel %vm268_vm0, %v1921_v14, %v1923_v0 }
 0x733   :  { %v1936_v61 = vmul.f32 %v1930_v35, %v3510_v38  ;;  %v1882_v63 = vsel %vm218_vm2, %v1873_v47, %v1875_v48 }
 0x734   :  { %v1888_v22 = vmul.f32 %v1882_v63, %v3538_v4 }
 0x735   :  { %1987 = vmatpush.msrb.mxu0 %v1936_v61 }
 0x737   :  { %1988 = vmatpush.msrb.mxu0 %v1912_v50 }
 0x739   :  { %1989 = vmatpush.msrb.mxu0 %v1888_v22  ;;  %v3984_v25 = vpop.permute.xlu2 %1798 }
 0x73a   :  { %v1927_v30 = vpop.permute.xlu1 %1926  ;;  %v3986_v52 = vpop.permute.xlu0 %1750 }
 0x73b   :  { %v1931_v5 = vsel %vm268_vm0, %v1927_v30, %v1921_v14 }
 0x73c   :  { %v1939_v38 = vmul.f32 %v1931_v5, %v3490_v10 }
 0x73e   :  { %2047 = vmatpush.msrb.mxu3 %v1939_v38 }
 0x741   :  { %v1851_v44 = vpop.permute.xlu2 %1850 }
 0x742   :  { %v1903_v8 = vpop.permute.xlu1 %1902  ;;  %v1925_v45 = vpop.permute.xlu0 %1924  ;;  %v1858_v27 = vsel %vm193_vm3, %v1849_v49, %v1851_v44 }
 0x743   :  { %v1907_v4 = vsel %vm243_vm1, %v1903_v8, %v1897_v21  ;;  %v1928_v33 = vsel %vm268_vm0, %v1925_v45, %v1927_v30  ;;  %v1929_v54 = vsel %vm268_vm0, %v1923_v0, %v1925_v45  ;;  %v1864_v57 = vmul.f32 %v1858_v27, %v3567_v1 }
 0x744   :  { %v1915_v10 = vmul.f32 %v1907_v4, %v3502_v16  ;;  %v1937_v14 = vmul.f32 %v1929_v54, %v3512_v11  ;;  %v1938_v19 = vmul.f32 %v1928_v33, %v3488_v6 }
 0x745   :  { %1990 = vmatpush.msrb.mxu0 %v1864_v57 }
 0x746   :  { %2007 = vmatpush.msrb.mxu1 %v1937_v14  ;;  %2027 = vmatpush.msrb.mxu2 %v1938_v19 }
 0x747   :  { %2048 = vmatpush.msrb.mxu3 %v1915_v10  ;;  %1991 = vmatpush.msrb.mxu0 %v3900_v23 }
 0x749   :  { %v1825_v22 = vpop.permute.xlu2 %1824 }
 0x74a   :  { %v1879_v21 = vpop.permute.xlu1 %1878  ;;  %v1901_v35 = vpop.permute.xlu0 %1900 }
 0x74b   :  { %v1883_v61 = vsel %vm218_vm2, %v1879_v21, %v1873_v47  ;;  %v1904_v1 = vsel %vm243_vm1, %v1901_v35, %v1903_v8  ;;  %v1905_v16 = vsel %vm243_vm1, %v1899_v31, %v1901_v35 }
 0x74c   :  { %v1891_v11 = vmul.f32 %v1883_v61, %v3516_v41  ;;  %v1913_v6 = vmul.f32 %v1905_v16, %v3522_v62  ;;  %v1914_v0 = vmul.f32 %v1904_v1, %v3500_v46 }
 0x74e   :  { %2008 = vmatpush.msrb.mxu1 %v1913_v6  ;;  %2028 = vmatpush.msrb.mxu2 %v1914_v0 }
 0x74f   :  { %2049 = vmatpush.msrb.mxu3 %v1891_v11 }
 0x752   :  { %v1855_v63 = vpop.permute.xlu1 %1854  ;;  %v1877_v50 = vpop.permute.xlu0 %1876 }
 0x753   :  { %v1859_v47 = vsel %vm193_vm3, %v1855_v63, %v1849_v49  ;;  %v1880_v30 = vsel %vm218_vm2, %v1877_v50, %v1879_v21  ;;  %v1881_v31 = vsel %vm218_vm2, %v1875_v48, %v1877_v50 }
 0x754   :  { %v1867_v41 = vmul.f32 %v1859_v47, %v3554_v26  ;;  %v1889_v62 = vmul.f32 %v1881_v31, %v3542_v28  ;;  %v1890_v46 = vmul.f32 %v1880_v30, %v3514_v34  ;;  %v1829_v34 = vsel %vm164_vm4, %v3971_v51, %v1825_v22  ;;  %v1779_v28 = vpop.permute.xlu2 %1778 }
 0x755   :  { %v1838_v45 = vmul.f32 %v1829_v34, %v3592_v12 }
 0x756   :  { %2009 = vmatpush.msrb.mxu1 %v1889_v62  ;;  %2029 = vmatpush.msrb.mxu2 %v1890_v46 }
 0x757   :  { %2050 = vmatpush.msrb.mxu3 %v1867_v41 }
 0x759   :  { %2051 = vmatpush.msrb.mxu3 %v3896_v60 }
 0x75a   :  { %v1803_v5 = vpop.permute.xlu1 %1802  ;;  %v1853_v38 = vpop.permute.xlu0 %1852 }
 0x75b   :  { %v1856_v49 = vsel %vm193_vm3, %v1853_v38, %v1855_v63  ;;  %v1857_v8 = vsel %vm193_vm3, %v1851_v44, %v1853_v38 }
 0x75c   :  { %v1865_v48 = vmul.f32 %v1857_v8, %v3569_v3  ;;  %v1866_v26 = vmul.f32 %v1856_v49, %v3552_v37  ;;  %v1755_v44 = vpop.permute.xlu2 %1754 }
 0x75e   :  { %2010 = vmatpush.msrb.mxu1 %v1865_v48  ;;  %2030 = vmatpush.msrb.mxu2 %v1866_v26 }
 0x760   :  { %2011 = vmatpush.msrb.mxu1 %v3903_v2  ;;  %2031 = vmatpush.msrb.mxu2 %v3892_v59 }
 0x762   :  { %v1777_v27 = vpop.permute.xlu1 %1776  ;;  %v1827_v4 = vpop.permute.xlu0 %1826  ;;  %2032 = vmatpush.msrb.mxu2 %v1838_v45 }
 0x763   :  { %v1828_v3 = vsel %vm164_vm4, %v1825_v22, %v1827_v4  ;;  %v1780_v57 = vsel %vm114_vm6, %v1777_v27, %v1779_v28  ;;  %v1781_v12 = vsel %vm114_vm6, %v3975_v15, %v1777_v27 }
 0x764   :  { %v1839_v37 = vmul.f32 %v1828_v3, %v3594_v56  ;;  %v1790_v61 = vmul.f32 %v1781_v12, %v3613_v53  ;;  %v1791_v1 = vmul.f32 %v1780_v57, %v3621_v32  ;;  %v2265_v12 = vld [vmem:[#allocation8 + $0x110] sm:$0xff] }
 0x766   :  { %2052 = vmatpush.msrb.mxu3 %v1839_v37 }
 0x76a   :  { %v1753_v33 = vpop.permute.xlu1 %1752  ;;  %v1801_v54 = vpop.permute.xlu0 %1800 }
 0x76b   :  { %v1804_v10 = vsel %vm139_vm5, %v1801_v54, %v1803_v5  ;;  %v1805_v14 = vsel %vm139_vm5, %v3984_v25, %v1801_v54  ;;  %v1756_v21 = vsel %vm89_vm7, %v1753_v33, %v1755_v44  ;;  %v1757_v35 = vsel %vm89_vm7, %v3986_v52, %v1753_v33 }
 0x76c   :  { %v1814_v56 = vmul.f32 %v1805_v14, %v3596_v43  ;;  %v1815_v19 = vmul.f32 %v1804_v10, %v3601_v24  ;;  %v1766_v16 = vmul.f32 %v1757_v35, %v3623_v58  ;;  %v1767_v11 = vmul.f32 %v1756_v21, %v3639_v18  ;;  %v1773_v43 = vpop.permute.xlu2 %1772  ;;  %v2266_v10 = vld [vmem:[#allocation8 + $0x118] sm:$0xff] }
 0x76e   :  { %2033 = vmatpush.msrb.mxu2 %v1814_v56  ;;  %2053 = vmatpush.msrb.mxu3 %v1815_v19 }
 0x770   :  { %2034 = vmatpush.msrb.mxu2 %v1790_v61  ;;  %2054 = vmatpush.msrb.mxu3 %v1791_v1 }
 0x772   :  { %v1797_v24 = vpop.permute.xlu1 %1796  ;;  %v1821_v6 = vpop.permute.xlu0 %1820  ;;  %2035 = vmatpush.msrb.mxu2 %v1766_v16  ;;  %2055 = vmatpush.msrb.mxu3 %v1767_v11  ;;  %v2241_v16 = vld [vmem:[#allocation8 + $0xf0] sm:$0xff]  ;;  %v2242_v11 = vld [vmem:[#allocation8 + $0xf8] sm:$0xff] }
 0x773   :  { %v1806_v0 = vsel %vm139_vm5, %v1797_v24, %v3984_v25  ;;  %v1807_v53 = vsel %vm139_vm5, %v1803_v5, %v1797_v24  ;;  %v1830_v32 = vsel %vm164_vm4, %v1821_v6, %v3971_v51  ;;  %v1831_v58 = vsel %vm164_vm4, %v1827_v4, %v1821_v6  ;;  %2458 = vmatmul.msk.f32.vlgmr.msrb.gmra.mxu2 %vm321_vm8, %v3635_v9 }
 0x774   :  { %v1836_v18 = vmul.f32 %v1831_v58, %v3577_v17  ;;  %v1837_v63 = vmul.f32 %v1830_v32, %v3583_v29  ;;  %2459 = vmatmul.msk.f32.vlgmr.msrb.gmra.mxu3 %vm321_vm8, %v3635_v9  ;;  %v1782_v25 = vsel %vm114_vm6, %v1773_v43, %v3975_v15  ;;  %v1783_v51 = vsel %vm114_vm6, %v1779_v28, %v1773_v43  ;;  %v2263_v58 = vld [vmem:[#allocation8 + $0x100] sm:$0xff] }
 0x775   :  { %v1812_v50 = vmul.f32 %v1807_v53, %v3641_v42  ;;  %v1813_v22 = vmul.f32 %v1806_v0, %v3643_v20  ;;  %v1788_v17 = vmul.f32 %v1783_v51, %v3657_v13  ;;  %v1789_v29 = vmul.f32 %v1782_v25, %v3659_v39  ;;  %v2218_v25 = vld [vmem:[#allocation8 + $0xd8] sm:$0xff] }
 0x776   :  { %1992 = vmatpush.msrb.mxu0 %v1836_v18  ;;  %2012 = vmatpush.msrb.mxu1 %v1837_v63  ;;  %v2264_v18 = vld [vmem:[#allocation8 + $0x108] sm:$0xff]  ;;  %v2217_v63 = vld [vmem:[#allocation8 + $0xd0] sm:$0xff] }
 0x778   :  { %1993 = vmatpush.msrb.mxu0 %v1812_v50  ;;  %2013 = vmatpush.msrb.mxu1 %v1813_v22  ;;  %v2239_v50 = vld [vmem:[#allocation8 + $0xe0] sm:$0xff] }
 0x77a   :  { %v1749_v47 = vpop.permute.xlu0 %1748  ;;  %1994 = vmatpush.msrb.mxu0 %v1788_v17  ;;  %2014 = vmatpush.msrb.mxu1 %v1789_v29  ;;  %v2240_v17 = vld [vmem:[#allocation8 + $0xe8] sm:$0xff] }
 0x77b   :  { %v1758_v15 = vsel %vm89_vm7, %v1749_v47, %v3986_v52  ;;  %v1759_v42 = vsel %vm89_vm7, %v1755_v44, %v1749_v47 }
 0x77c   :  { %v1764_v20 = vmul.f32 %v1759_v42, %v3666_v55  ;;  %v1765_v30 = vmul.f32 %v1758_v15, %v3661_v40  ;;  %v2065_v40 = vstv %s2460_s24 }
 0x77e   :  { %1995 = vmatpush.msrb.mxu0 %v1764_v20  ;;  %2015 = vmatpush.msrb.mxu1 %v1765_v30 }
 0x77f   :  { %2456 = vmatmul.msk.f32.vlgmr.msrb.gmra.mxu0 %vm321_vm8, %v3635_v9  ;;  %2457 = vmatmul.msk.f32.vlgmr.msrb.gmra.mxu1 %vm321_vm8, %v3635_v9 }
 0x7f6   :  { %v2037_v13 = vpop.f32.mrf.mxu2 }
 0x7f7   :  { %v2038_v39 = vadd.f32 %v2037_v13, %v2984_v36  ;;  %v2057_v52 = vpop.f32.mrf.mxu3 }
 0x7f8   :  { %v2058_v31 = vadd.f32 %v2057_v52, %v2984_v36 }
 0x7f9   :  { %2523 = vtanh.f32 %v2038_v39 }
 0x7fa   :  { %2525 = vtanh.f32 %v2058_v31  ;;  %v2215_v31 = vld [vmem:[#allocation8 + $0xc0] sm:$0xff] }
 0x7fc   :  { %v1997_v55 = vpop.f32.mrf.mxu0  ;;  %v2017_v41 = vpop.f32.mrf.mxu1 }
 0x7fd   :  { %v1998_v62 = vadd.f32 %v1997_v55, %v2984_v36  ;;  %v2018_v46 = vadd.f32 %v2017_v41, %v2984_v36  ;;  %v2216_v41 = vld [vmem:[#allocation8 + $0xc8] sm:$0xff] }
 0x7ff   :  { %v2524_v5 = vpop.eup %2523  ;;  %2527 = vtanh.f32 %v1998_v62 }
 0x800   :  { %v2526_v38 = vpop.eup %2525  ;;  %v2068_v9 = vmul.f32 %v2524_v5, %v2065_v40  ;;  %2529 = vtanh.f32 %v2018_v46 }
 0x801   :  { %v2069_v49 = vmul.f32 %v2526_v38, %v2065_v40 }
 0x802   :  { %v4100_v8 = vadd.f32 %v2068_v9, %v3892_v59 }
 0x803   :  { %v4103_v48 = vadd.f32 %v2069_v49, %v3896_v60 }
 0x804   :  { %2077 = vst [vmem:[#allocation10 + $0xd0] sm:$0xff] %v4100_v8 }
 0x805   :  { %v2528_v26 = vpop.eup %2527  ;;  %2078 = vst [vmem:[#allocation10 + $0xd8] sm:$0xff] %v4103_v48 }
 0x806   :  { %v2530_v34 = vpop.eup %2529  ;;  %v2066_v28 = vmul.f32 %v2528_v26, %v2065_v40  ;;  %v2193_v26 = vld [vmem:[#allocation8 + $0xb0] sm:$0xff] }
 0x807   :  { %v2067_v45 = vmul.f32 %v2530_v34, %v2065_v40  ;;  %v2194_v34 = vld [vmem:[#allocation8 + $0xb8] sm:$0xff] }
 0x808   :  { %v4108_v27 = vadd.f32 %v2066_v28, %v3900_v23 }
 0x809   :  { %v4111_v4 = vadd.f32 %v2067_v45, %v3903_v2 }
 0x80a   :  { %2075 = vst [vmem:[#allocation10 + $0xc0] sm:$0xff] %v4108_v27  ;;  %2251 = vrot.lane.b32.xlu1 %v4108_v27, %s2638_s1 }
 0x80b   :  { %2076 = vst [vmem:[#allocation10 + $0xc8] sm:$0xff] %v4111_v4  ;;  %2153 = vrot.lane.b32.xlu0 %v4111_v4, %s2642_s10  ;;  %2229 = vrot.lane.b32.xlu2 %v4111_v4, %s2639_s4 }
 0x812   :  { %2227 = vrot.lane.b32.xlu1 %v4108_v27, %s2639_s4 }
 0x813   :  { %2205 = vrot.lane.b32.xlu0 %v4111_v4, %s2640_s8  ;;  %2105 = vrot.lane.b32.xlu2 %v4111_v4, %s2644_s12 }
 0x81a   :  { %2203 = vrot.lane.b32.xlu1 %v4108_v27, %s2640_s8 }
 0x81b   :  { %2257 = vrot.lane.b32.xlu0 %v4103_v48, %s2638_s1  ;;  %2081 = vrot.lane.b32.xlu2 %v4111_v4, %s2645_s13 }
 0x822   :  { %2179 = vrot.lane.b32.xlu1 %v4108_v27, %s2641_s9 }
 0x823   :  { %2233 = vrot.lane.b32.xlu0 %v4103_v48, %s2639_s4  ;;  %2255 = vrot.lane.b32.xlu2 %v4100_v8, %s2638_s1 }
 0x82a   :  { %2253 = vrot.lane.b32.xlu1 %v4111_v4, %s2638_s1 }
 0x82b   :  { %2209 = vrot.lane.b32.xlu0 %v4103_v48, %s2640_s8  ;;  %2231 = vrot.lane.b32.xlu2 %v4100_v8, %s2639_s4 }
 0x832   :  { %2129 = vrot.lane.b32.xlu1 %v4111_v4, %s2643_s11 }
 0x833   :  { %2185 = vrot.lane.b32.xlu0 %v4103_v48, %s2641_s9  ;;  %2207 = vrot.lane.b32.xlu2 %v4100_v8, %s2640_s8 }
 0x83a   :  { %2181 = vrot.lane.b32.xlu1 %v4111_v4, %s2641_s9 }
 0x83b   :  { %2133 = vrot.lane.b32.xlu0 %v4103_v48, %s2643_s11  ;;  %2183 = vrot.lane.b32.xlu2 %v4100_v8, %s2641_s9 }
 0x842   :  { %2155 = vrot.lane.b32.xlu1 %v4100_v8, %s2642_s10 }
 0x843   :  { %2107 = vrot.lane.b32.xlu0 %v4100_v8, %s2644_s12  ;;  %2157 = vrot.lane.b32.xlu2 %v4103_v48, %s2642_s10 }
 0x84a   :  { %2109 = vrot.lane.b32.xlu1 %v4103_v48, %s2644_s12 }
 0x84b   :  { %2083 = vrot.lane.b32.xlu0 %v4100_v8, %s2645_s13  ;;  %2131 = vrot.lane.b32.xlu2 %v4100_v8, %s2643_s11 }
 0x852   :  { %2085 = vrot.lane.b32.xlu1 %v4103_v48, %s2645_s13 }
 0x853   :  { %2127 = vrot.lane.b32.xlu0 %v4108_v27, %s2643_s11  ;;  %2151 = vrot.lane.b32.xlu2 %v4108_v27, %s2642_s10 }
 0x85a   :  { %2103 = vrot.lane.b32.xlu1 %v4108_v27, %s2644_s12 }
 0x85b   :  { %2079 = vrot.lane.b32.xlu2 %v4108_v27, %s2645_s13 }
 0x865   :  { %v2230_v59 = vpop.permute.xlu2 %2229 }
 0x86d   :  { %v4179_v60 = vpop.permute.xlu2 %2105 }
 0x875   :  { %v4181_v23 = vpop.permute.xlu2 %2081 }
 0x87c   :  { %v2252_v2 = vpop.permute.xlu1 %2251 }
 0x87d   :  { %v4183_v3 = vpop.permute.xlu0 %2153  ;;  %v2256_v37 = vpop.permute.xlu2 %2255 }
 0x884   :  { %v2228_v44 = vpop.permute.xlu1 %2227 }
 0x885   :  { %v2206_v33 = vpop.permute.xlu0 %2205  ;;  %v2232_v54 = vpop.permute.xlu2 %2231  ;;  %v2237_v22 = vsel %vm243_vm1, %v2228_v44, %v2230_v59 }
 0x886   :  { %v2236_v29 = vsel %vm243_vm1, %v2230_v59, %v2232_v54  ;;  %v2243_v5 = vmul.f32 %v2239_v50, %v2237_v22 }
 0x887   :  { %v2244_v38 = vmul.f32 %v2240_v17, %v2236_v29  ;;  %v2117_v29 = vld [vmem:[#allocation8 + $0x30] sm:$0xff] }
 0x88c   :  { %v2204_v57 = vpop.permute.xlu1 %2203 }
 0x88d   :  { %v2258_v14 = vpop.permute.xlu0 %2257  ;;  %v2208_v56 = vpop.permute.xlu2 %2207  ;;  %v2213_v55 = vsel %vm218_vm2, %v2204_v57, %v2206_v33 }
 0x88e   :  { %v2259_v19 = vsel %vm268_vm0, %v2256_v37, %v2258_v14  ;;  %v2262_v21 = vsel %vm268_vm0, %v2258_v14, %v2252_v2  ;;  %v2212_v40 = vsel %vm218_vm2, %v2206_v33, %v2208_v56  ;;  %v2219_v9 = vmul.f32 %v2215_v31, %v2213_v55 }
 0x88f   :  { %v2269_v35 = vmul.f32 %v2265_v12, %v2259_v19  ;;  %v2270_v61 = vmul.f32 %v2266_v10, %v2262_v21  ;;  %v2220_v49 = vmul.f32 %v2216_v41, %v2212_v40  ;;  %v2540_v40 = vld [vmem:[%s4294_s2] sm:$0xff]  ;;  %s2465_s2 = sld [smem:[#allocation3 + $0x7]] }
 0x891   :  { %2358 = vmatpush.msra.mxu2 %v2269_v35  ;;  %2378 = vmatpush.msra.mxu3 %v2270_v61  ;;  %v2163_v35 = vld [vmem:[#allocation8 + $0x60] sm:$0xff] }
 0x894   :  { %v4189_v1 = vpop.permute.xlu1 %2179 }
 0x895   :  { %v2234_v43 = vpop.permute.xlu0 %2233  ;;  %v2184_v24 = vpop.permute.xlu2 %2183 }
 0x896   :  { %v2235_v6 = vsel %vm243_vm1, %v2232_v54, %v2234_v43  ;;  %v2238_v0 = vsel %vm243_vm1, %v2234_v43, %v2228_v44  ;;  %v2191_v54 = vld [vmem:[#allocation8 + $0xa0] sm:$0xff] }
 0x897   :  { %v2245_v53 = vmul.f32 %v2241_v16, %v2235_v6  ;;  %v2246_v32 = vmul.f32 %v2242_v11, %v2238_v0  ;;  %v2164_v11 = vld [vmem:[#allocation8 + $0x68] sm:$0xff]  ;;  %v2166_v0 = vld [vmem:[#allocation8 + $0x78] sm:$0xff] }
 0x899   :  { %2359 = vmatpush.msra.mxu2 %v2245_v53  ;;  %2379 = vmatpush.msra.mxu3 %v2246_v32  ;;  %v2141_v32 = vld [vmem:[#allocation8 + $0x50] sm:$0xff] }
 0x89c   :  { %v2254_v51 = vpop.permute.xlu1 %2253 }
 0x89d   :  { %v2210_v47 = vpop.permute.xlu0 %2209  ;;  %v4199_v15 = vpop.permute.xlu2 %2157  ;;  %v2260_v42 = vsel %vm268_vm0, %v2254_v51, %v2256_v37  ;;  %v2261_v20 = vsel %vm268_vm0, %v2252_v2, %v2254_v51 }
 0x89e   :  { %v2211_v30 = vsel %vm218_vm2, %v2208_v56, %v2210_v47  ;;  %v2214_v13 = vsel %vm218_vm2, %v2210_v47, %v2204_v57  ;;  %v2267_v39 = vmul.f32 %v2263_v58, %v2261_v20  ;;  %v2268_v52 = vmul.f32 %v2264_v18, %v2260_v42  ;;  %v2192_v57 = vld [vmem:[#allocation8 + $0xa8] sm:$0xff]  ;;  %v2142_v18 = vld [vmem:[#allocation8 + $0x58] sm:$0xff] }
 0x89f   :  { %v2221_v62 = vmul.f32 %v2217_v63, %v2211_v30  ;;  %v2222_v46 = vmul.f32 %v2218_v25, %v2214_v13  ;;  %v2118_v13 = vld [vmem:[#allocation8 + $0x38] sm:$0xff] }
 0x8a0   :  { %2318 = vmatpush.msra.mxu0 %v2267_v39  ;;  %2338 = vmatpush.msra.mxu1 %v2268_v52 }
 0x8a1   :  { %2360 = vmatpush.msra.mxu2 %v2221_v62  ;;  %2380 = vmatpush.msra.mxu3 %v2222_v46  ;;  %v2094_v62 = vld [vmem:[#allocation8 + $0x18] sm:$0xff]  ;;  %v2139_v46 = vld [vmem:[#allocation8 + $0x40] sm:$0xff] }
 0x8a2   :  { %2319 = vmatpush.msra.mxu0 %v2243_v5  ;;  %2339 = vmatpush.msra.mxu1 %v2244_v38  ;;  %v2140_v5 = vld [vmem:[#allocation8 + $0x48] sm:$0xff] }
 0x8a4   :  { %2320 = vmatpush.msra.mxu0 %v2219_v9  ;;  %2340 = vmatpush.msra.mxu1 %v2220_v49  ;;  %v4213_v28 = vpop.permute.xlu1 %2129 }
 0x8a5   :  { %v2186_v45 = vpop.permute.xlu0 %2185  ;;  %v2132_v59 = vpop.permute.xlu2 %2131 }
 0x8a6   :  { %v2187_v2 = vsel %vm193_vm3, %v2184_v24, %v2186_v45  ;;  %v2190_v37 = vsel %vm193_vm3, %v2186_v45, %v4189_v1  ;;  %v2136_v58 = vsel %vm139_vm5, %v4213_v28, %v2132_v59 }
 0x8a7   :  { %v2197_v44 = vmul.f32 %v2193_v26, %v2187_v2  ;;  %v2198_v33 = vmul.f32 %v2194_v34, %v2190_v37  ;;  %v2145_v42 = vmul.f32 %v2141_v32, %v2136_v58 }
 0x8a9   :  { %2361 = vmatpush.msra.mxu2 %v2197_v44  ;;  %2381 = vmatpush.msra.mxu3 %v2198_v33  ;;  %v2115_v44 = vld [vmem:[#allocation8 + $0x20] sm:$0xff]  ;;  %v2116_v33 = vld [vmem:[#allocation8 + $0x28] sm:$0xff] }
 0x8ab   :  { %2362 = vmatpush.msra.mxu2 %v4100_v8  ;;  %2382 = vmatpush.msra.mxu3 %v4103_v48 }
 0x8ac   :  { %v2182_v12 = vpop.permute.xlu1 %2181 }
 0x8ad   :  { %v2134_v10 = vpop.permute.xlu0 %2133  ;;  %v2152_v14 = vpop.permute.xlu2 %2151  ;;  %v2188_v56 = vsel %vm193_vm3, %v2182_v12, %v2184_v24  ;;  %v2189_v19 = vsel %vm193_vm3, %v4189_v1, %v2182_v12  ;;  %v2165_v1 = vld [vmem:[#allocation8 + $0x70] sm:$0xff]  ;;  %v2091_v12 = vld [vmem:[#allocation8] sm:$0xff] }
 0x8ae   :  { %v2195_v21 = vmul.f32 %v2191_v54, %v2189_v19  ;;  %v2162_v61 = vsel %vm164_vm4, %v4199_v15, %v2152_v14  ;;  %v2196_v16 = vmul.f32 %v2192_v57, %v2188_v56  ;;  %v2161_v43 = vsel %vm164_vm4, %v2152_v14, %v4183_v3  ;;  %v2092_v57 = vld [vmem:[#allocation8 + $0x8] sm:$0xff] }
 0x8af   :  { %v2167_v6 = vmul.f32 %v2163_v35, %v2162_v61  ;;  %v2168_v24 = vmul.f32 %v2164_v11, %v2161_v43  ;;  %v2135_v63 = vsel %vm139_vm5, %v2132_v59, %v2134_v10 }
 0x8b0   :  { %2321 = vmatpush.msra.mxu0 %v2195_v21  ;;  %2341 = vmatpush.msra.mxu1 %v2196_v16  ;;  %v2146_v20 = vmul.f32 %v2142_v18, %v2135_v63 }
 0x8b2   :  { %2322 = vmatpush.msra.mxu0 %v4108_v27  ;;  %2342 = vmatpush.msra.mxu1 %v4111_v4 }
 0x8b4   :  { %2323 = vmatpush.msra.mxu0 %v2167_v6  ;;  %v2156_v53 = vpop.permute.xlu1 %2155  ;;  %2343 = vmatpush.msra.mxu1 %v2168_v24 }
 0x8b5   :  { %v2108_v25 = vpop.permute.xlu0 %2107  ;;  %v2159_v51 = vsel %vm164_vm4, %v2156_v53, %v4199_v15  ;;  %v2160_v50 = vsel %vm164_vm4, %v4183_v3, %v2156_v53  ;;  %v2093_v15 = vld [vmem:[#allocation8 + $0x10] sm:$0xff]  ;;  %v2080_v37 = vpop.permute.xlu2 %2079 }
 0x8b6   :  { %v2169_v22 = vmul.f32 %v2165_v1, %v2160_v50  ;;  %v2170_v17 = vmul.f32 %v2166_v0, %v2159_v51  ;;  %v2112_v47 = vsel %vm114_vm6, %v4179_v60, %v2108_v25 }
 0x8b7   :  { %v2121_v30 = vmul.f32 %v2117_v29, %v2112_v47 }
 0x8b8   :  { %2363 = vmatpush.msra.mxu2 %v2169_v22  ;;  %2383 = vmatpush.msra.mxu3 %v2170_v17 }
 0x8ba   :  { %2364 = vmatpush.msra.mxu2 %v2145_v42  ;;  %2384 = vmatpush.msra.mxu3 %v2146_v20 }
 0x8bc   :  { %2365 = vmatpush.msra.mxu2 %v2121_v30  ;;  %v2110_v39 = vpop.permute.xlu1 %2109 }
 0x8bd   :  { %v2084_v52 = vpop.permute.xlu0 %2083  ;;  %v2111_v3 = vsel %vm114_vm6, %v2108_v25, %v2110_v39 }
 0x8be   :  { %v2088_v31 = vsel %vm89_vm7, %v4181_v23, %v2084_v52  ;;  %v2122_v55 = vmul.f32 %v2118_v13, %v2111_v3 }
 0x8bf   :  { %v2097_v41 = vmul.f32 %v2093_v15, %v2088_v31 }
 0x8c0   :  { %2385 = vmatpush.msra.mxu3 %v2122_v55 }
 0x8c1   :  { %2366 = vmatpush.msra.mxu2 %v2097_v41 }
 0x8c2   :  { %2463 = vmatmul.msk.f32.vlgmr.msra.gmra.mxu2 %vm321_vm8, %v2540_v40 }
 0x8c4   :  { %v2086_v38 = vpop.permute.xlu1 %2085 }
 0x8c5   :  { %v2128_v9 = vpop.permute.xlu0 %2127  ;;  %v2087_v49 = vsel %vm89_vm7, %v2084_v52, %v2086_v38 }
 0x8c6   :  { %v2137_v26 = vsel %vm139_vm5, %v2128_v9, %v4213_v28  ;;  %v2138_v34 = vsel %vm139_vm5, %v2134_v10, %v2128_v9  ;;  %v2098_v45 = vmul.f32 %v2094_v62, %v2087_v49  ;;  %v2089_v28 = vsel %vm89_vm7, %v2080_v37, %v4181_v23 }
 0x8c7   :  { %v2143_v59 = vmul.f32 %v2139_v46, %v2138_v34  ;;  %v2144_v2 = vmul.f32 %v2140_v5, %v2137_v26  ;;  %v2090_v10 = vsel %vm89_vm7, %v2086_v38, %v2080_v37  ;;  %v2096_v35 = vmul.f32 %v2092_v57, %v2089_v28 }
 0x8c8   :  { %2386 = vmatpush.msra.mxu3 %v2098_v45  ;;  %v2095_v61 = vmul.f32 %v2091_v12, %v2090_v10 }
 0x8c9   :  { %2324 = vmatpush.msra.mxu0 %v2143_v59  ;;  %2344 = vmatpush.msra.mxu1 %v2144_v2 }
 0x8ca   :  { %2464 = vmatmul.msk.f32.vlgmr.msra.gmra.mxu3 %vm321_vm8, %v2540_v40 }
 0x8cc   :  { %v2104_v54 = vpop.permute.xlu1 %2103 }
 0x8cd   :  { %v2113_v14 = vsel %vm114_vm6, %v2104_v54, %v4179_v60  ;;  %v2114_v56 = vsel %vm114_vm6, %v2110_v39, %v2104_v54  ;;  %v2396_v60 = vstv %s2465_s2 }
 0x8ce   :  { %v2119_v19 = vmul.f32 %v2115_v44, %v2114_v56  ;;  %v2120_v21 = vmul.f32 %v2116_v33, %v2113_v14 }
 0x8d0   :  { %2325 = vmatpush.msra.mxu0 %v2119_v19  ;;  %2345 = vmatpush.msra.mxu1 %v2120_v21 }
 0x8d2   :  { %2326 = vmatpush.msra.mxu0 %v2095_v61  ;;  %2346 = vmatpush.msra.mxu1 %v2096_v35 }
 0x8d3   :  { %2461 = vmatmul.msk.f32.vlgmr.msra.gmra.mxu0 %vm321_vm8, %v2540_v40  ;;  %2462 = vmatmul.msk.f32.vlgmr.msra.gmra.mxu1 %vm321_vm8, %v2540_v40 }
 0x945   :  { %v2368_v23 = vpop.f32.mrf.mxu2 }
 0x946   :  { %v2369_v16 = vadd.f32 %v2368_v23, %v2984_v36 }
 0x948   :  { %2531 = vtanh.f32 %v2369_v16 }
 0x94d   :  { %v2388_v7 = vpop.f32.mrf.mxu3 }
 0x94e   :  { %v2532_v11 = vpop.eup %2531  ;;  %v2389_v43 = vadd.f32 %v2388_v7, %v2984_v36 }
 0x94f   :  { %v2399_v6 = vmul.f32 %v2532_v11, %v2396_v60 }
 0x950   :  { %2533 = vtanh.f32 %v2389_v43  ;;  %v2328_v24 = vpop.f32.mrf.mxu0  ;;  %v2348_v1 = vpop.f32.mrf.mxu1 }
 0x951   :  { %v2403_v0 = vadd.f32 %v2399_v6, %v4100_v8  ;;  %v2329_v53 = vadd.f32 %v2328_v24, %v2984_v36  ;;  %v2349_v32 = vadd.f32 %v2348_v1, %v2984_v36 }
 0x953   :  { %2408 = vst [vmem:[#allocation10 + $0xf0] sm:$0xff] %v2403_v0  ;;  %2535 = vtanh.f32 %v2329_v53 }
 0x954   :  { %2537 = vtanh.f32 %v2349_v32 }
 0x956   :  { %v2534_v58 = vpop.eup %2533 }
 0x957   :  { %v2400_v18 = vmul.f32 %v2534_v58, %v2396_v60 }
 0x959   :  { %v2536_v63 = vpop.eup %2535  ;;  %v2404_v25 = vadd.f32 %v2400_v18, %v4103_v48 }
 0x95a   :  { %v2538_v51 = vpop.eup %2537  ;;  %v2397_v50 = vmul.f32 %v2536_v63, %v2396_v60 }
 0x95b   :  { %2409 = vst [vmem:[#allocation10 + $0xf8] sm:$0xff] %v2404_v25  ;;  %v2398_v8 = vmul.f32 %v2538_v51, %v2396_v60 }
 0x95c   :  { %v2401_v36 = vadd.f32 %v2397_v50, %v4108_v27 }
 0x95d   :  { %v2402_v22 = vadd.f32 %v2398_v8, %v4111_v4 }
 0x95e   :  { %2406 = vst [vmem:[#allocation10 + $0xe0] sm:$0xff] %v2401_v36 }
 0x95f   :  { %2407 = vst [vmem:[#allocation10 + $0xe8] sm:$0xff] %v2402_v22 }
 0x960   :  { %2422 = dma.vmem_to_hbm [thread:$0]  %s2415_s28, 4096, %s2417_s6, [#allocation5], %s2636_s0, %s2636_s0, %s2637_s7  }
 0x961   :  { %2631 = dma.done.wait [#allocation5], 4096  }
 0x962   :  { %2632 = vsyncadd [#allocation5], 4294963200 }
 0x963   :  { %2427 = vsyncpa [#allocation4], 1 }
 0x964   :  { %2428 = vsyncpa [#allocation9], 1 }
 0x965   :  { %2429 = vsyncpa [#allocation5], 1 }
 0x966   :  { %2430 = vsyncpa [#allocation6], 1 }

</bundles_post_ra>
